<compile_context>
chip_gen: v7x
topology: tpu7x:2x2x1
jax: 0.10.0
libtpu: 0.0.40
codegen_flags: <defaults>
</compile_context>

<pallas_src>
import jax
import jax.numpy as jnp
from jax.experimental import pallas as pl
from jax.experimental.pallas import tpu as pltpu

block_size = 8      # max sequence length (causal mask size)
n_embd = 384
num_heads = 6
head_size = n_embd // num_heads   # 64


def mha_kernel(x_ref, wqkv_ref, qkv_scale_ref, wp_ref, wp_scale_ref, bp_ref,
               o_ref):
    # x_ref:         (B, T, C)   bf16
    # wqkv_ref:      (C, 3C)     int8  (head-major columns [Q | K | V])
    # qkv_scale_ref: (1, 3C)     f32   per-column dequant scales
    #                                  (attention scale C**-0.5 folded into Q)
    # wp_ref:        (C, C)      int8  pre-transposed output projection
    # wp_scale_ref:  (1, C)      f32   per-column dequant scales
    # bp_ref:        (1, C)      f32   output projection bias
    # o_ref:         (B, T, C)   f32
    B, T, C = x_ref.shape
    H, D = num_heads, head_size

    # int8 -> bf16 is exact (|w| <= 127); per-column scales are applied to the
    # matmul outputs (16 or 8 rows), never to the big weight matrices, so the
    # dequant adds only a tiny amount of VPU work.
    wqkv_bf = wqkv_ref[...].astype(jnp.bfloat16)               # (C, 3C)
    wp_bf = wp_ref[...].astype(jnp.bfloat16)                   # (C, C)
    wp_scale = wp_scale_ref[...]                               # (1, C)
    bias = bp_ref[...]                                         # (1, C)

    # One fused QKV projection for all batches and heads (lane-dense N=3C).
    x2 = x_ref[...].reshape(B * T, C)                          # bf16
    qkv = jnp.dot(x2, wqkv_bf, preferred_element_type=jnp.float32)
    qkv = qkv * qkv_scale_ref[...]                             # (B*T, 3C) f32

    # Causal (lower-triangular) mask; large finite negative is NaN-safe.
    row = jax.lax.broadcasted_iota(jnp.int32, (T, T), 0)
    col = jax.lax.broadcasted_iota(jnp.int32, (T, T), 1)
    causal = row >= col
    neg_big = jnp.float32(-1e30)

    for b in range(B):                       # static unroll (B small)
        qkv_b = qkv[b * T:(b + 1) * T, :]    # (T, 3C) register value
        head_outs = []
        for h in range(H):                   # static unroll over heads
            # q already carries the C**-0.5 scale via its dequant scales.
            q = qkv_b[:, h * D:(h + 1) * D].astype(jnp.bfloat16)
            k = qkv_b[:, C + h * D:C + (h + 1) * D].astype(jnp.bfloat16)
            v = qkv_b[:, 2 * C + h * D:2 * C + (h + 1) * D].astype(jnp.bfloat16)

            # scores = q @ k^T via dot_general (no materialized transpose).
            wei = jax.lax.dot_general(
                q, k, (((1,), (1,)), ((), ())),
                preferred_element_type=jnp.float32)            # (T, T) f32
            wei = jnp.where(causal, wei, neg_big)
            wei = wei - jnp.max(wei, axis=-1, keepdims=True)
            p = jnp.exp(wei)
            p = p / jnp.sum(p, axis=-1, keepdims=True)         # exact softmax
            # dropout(p): identity (eval mode)

            pv = jnp.dot(p.astype(jnp.bfloat16), v,
                         preferred_element_type=jnp.float32)   # (T, D) f32
            head_outs.append(pv.astype(jnp.bfloat16))

        # Head-major concat as a bf16 register value (no scratch, no masked
        # 64-lane stores), then one lane-dense output projection + bias.
        cat_b = jnp.concatenate(head_outs, axis=-1)            # (T, C) bf16
        out_b = jnp.dot(cat_b, wp_bf, preferred_element_type=jnp.float32)
        out_b = out_b * wp_scale + bias                        # dequant + bias
        o_ref[b, :, :] = out_b.astype(o_ref.dtype)


def _quantize_per_column(w):
    """Symmetric per-output-column int8 quantization: w ~= w_q * scale."""
    amax = jnp.max(jnp.abs(w), axis=0, keepdims=True)
    scale = jnp.maximum(amax, 1e-30) / 127.0
    w_q = jnp.clip(jnp.round(w / scale), -127.0, 127.0).astype(jnp.int8)
    return w_q, scale.astype(jnp.float32)


def _prep_weights(wq, wk, wv, wp_t):
    """Fuse + int8-quantize the module's weights (head-major QKV columns)."""
    H, C, D = wq.shape
    scale = C ** (-0.5)   # module scales by n_embd**-0.5 (NOT head_size**-0.5)
    wq_f = jnp.transpose(wq, (1, 0, 2)).reshape(C, H * D)
    wk_f = jnp.transpose(wk, (1, 0, 2)).reshape(C, H * D)
    wv_f = jnp.transpose(wv, (1, 0, 2)).reshape(C, H * D)
    w_qkv = jnp.concatenate([wq_f, wk_f, wv_f], axis=1)        # (C, 3C) f32

    wqkv_q8, wqkv_s = _quantize_per_column(w_qkv)
    # Fold the attention scale into the Q-column dequant scales.
    qkv_scale = jnp.concatenate([wqkv_s[:, :C] * scale, wqkv_s[:, C:]], axis=1)

    wp_q8, wp_s = _quantize_per_column(wp_t)
    return wqkv_q8, qkv_scale, wp_q8, wp_s


def multi_head_attention(x, wq, wk, wv, wp_t, bp):
    """x: (B,T,C) f32; wq/wk/wv: (H,C,D); wp_t: (C,C) pre-transposed; bp: (1,C)."""
    B, T, C = x.shape
    wqkv_q8, qkv_scale, wp_q8, wp_s = _prep_weights(wq, wk, wv, wp_t)
    x_bf = x.astype(jnp.bfloat16)
    bp_f32 = bp.astype(jnp.float32)

    return pl.pallas_call(
        mha_kernel,
        out_shape=jax.ShapeDtypeStruct((B, T, C), x.dtype),
        grid_spec=pltpu.PrefetchScalarGridSpec(
            num_scalar_prefetch=0,
            grid=(1,),   # single invocation: splitting the grid (or the two
                         # v7x TensorCores) would only re-DMA the weights.
            in_specs=[
                pl.BlockSpec((B, T, C), lambda i: (0, 0, 0)),
                pl.BlockSpec((C, 3 * C), lambda i: (0, 0)),
                pl.BlockSpec((1, 3 * C), lambda i: (0, 0)),
                pl.BlockSpec((C, C), lambda i: (0, 0)),
                pl.BlockSpec((1, C), lambda i: (0, 0)),
                pl.BlockSpec((1, C), lambda i: (0, 0)),
            ],
            out_specs=pl.BlockSpec((B, T, C), lambda i: (0, 0, 0)),
        ),
        compiler_params=pltpu.CompilerParams(
            dimension_semantics=("arbitrary",)),
    )(x_bf, wqkv_q8, qkv_scale, wp_q8, wp_s, bp_f32)


def reference_mha_f32(x, wq, wk, wv, wp_t, bp):
    """Pure-JAX f32 reference matching the PyTorch forward (eval mode)."""
    B, T, C = x.shape
    H = wq.shape[0]
    scale = C ** (-0.5)
    mask = jnp.tril(jnp.ones((T, T), dtype=bool))
    hi = jax.lax.Precision.HIGHEST
    outs = []
    for h in range(H):
        q = jnp.einsum('btc,cd->btd', x, wq[h], precision=hi)
        k = jnp.einsum('btc,cd->btd', x, wk[h], precision=hi)
        v = jnp.einsum('btc,cd->btd', x, wv[h], precision=hi)
        wei = jnp.einsum('bqd,bkd->bqk', q, k, precision=hi) * scale
        wei = jnp.where(mask, wei, -jnp.inf)
        p = jax.nn.softmax(wei, axis=-1)
        outs.append(jnp.einsum('bqk,bkd->bqd', p, v, precision=hi))
    cat = jnp.concatenate(outs, axis=-1)
    return jnp.einsum('btc,cd->btd', cat, wp_t, precision=hi) + bp[0]


def reference_mha_quant(x, wq, wk, wv, wp_t, bp):
    """Reference mirroring the kernel numerics (identical int8 quantization,
    bf16 matmul operands, f32 accumulation) for a tight correctness check."""
    B, T, C = x.shape
    H, _, D = wq.shape
    wqkv_q8, qkv_scale, wp_q8, wp_s = _prep_weights(wq, wk, wv, wp_t)
    hi = jax.lax.Precision.HIGHEST
    mask = jnp.tril(jnp.ones((T, T), dtype=bool))

    x2 = x.astype(jnp.bfloat16).reshape(B * T, C)
    qkv = jnp.dot(x2, wqkv_q8.astype(jnp.bfloat16),
                  preferred_element_type=jnp.float32, precision=hi) * qkv_scale
    outs = []
    for b in range(B):
        qkv_b = qkv[b * T:(b + 1) * T, :]
        heads = []
        for h in range(H):
            q = qkv_b[:, h * D:(h + 1) * D].astype(jnp.bfloat16)
            k = qkv_b[:, C + h * D:C + (h + 1) * D].astype(jnp.bfloat16)
            v = qkv_b[:, 2 * C + h * D:2 * C + (h + 1) * D].astype(jnp.bfloat16)
            wei = jnp.dot(q, k.T, preferred_element_type=jnp.float32,
                          precision=hi)
            wei = jnp.where(mask, wei, -1e30)
            p = jax.nn.softmax(wei, axis=-1)
            heads.append(jnp.dot(p.astype(jnp.bfloat16), v,
                                 preferred_element_type=jnp.float32,
                                 precision=hi).astype(jnp.bfloat16))
        cat_b = jnp.concatenate(heads, axis=-1)
        out_b = jnp.dot(cat_b, wp_q8.astype(jnp.bfloat16),
                        preferred_element_type=jnp.float32, precision=hi)
        outs.append(out_b * wp_s + bp)
    return jnp.stack(outs, axis=0)


if __name__ == "__main__":
    key = jax.random.PRNGKey(0)
    kx, kq, kk, kv, kp, kb = jax.random.split(key, 6)

    B, T, C, H, D = 2, block_size, n_embd, num_heads, head_size

    x = jax.random.normal(kx, (B, T, C), dtype=jnp.float32)
    # Deterministic parameter init (scaled like nn.Linear's fan-in magnitude).
    wq = jax.random.normal(kq, (H, C, D), dtype=jnp.float32) * (C ** -0.5)
    wk = jax.random.normal(kk, (H, C, D), dtype=jnp.float32) * (C ** -0.5)
    wv = jax.random.normal(kv, (H, C, D), dtype=jnp.float32) * (C ** -0.5)
    wp_t = jax.random.normal(kp, (C, C), dtype=jnp.float32) * (C ** -0.5)
    bp = jax.random.normal(kb, (1, C), dtype=jnp.float32) * 0.01

    out = multi_head_attention(x, wq, wk, wv, wp_t, bp)
    out = jax.block_until_ready(out)
    assert out.shape == (B, T, C)
    assert bool(jnp.all(jnp.isfinite(out)))

    # Tight check against a reference with identical quantization + bf16 casts.
    ref_q = reference_mha_quant(x, wq, wk, wv, wp_t, bp)
    assert jnp.allclose(out, ref_q, atol=2e-2, rtol=2e-2), \
        "mismatch vs quantized/bf16 reference"

    # Loose sanity check against the exact f32 module math
    # (slack covers int8 weight quantization + bf16 operand rounding).
    ref_f32 = reference_mha_f32(x, wq, wk, wv, wp_t, bp)
    assert jnp.allclose(out, ref_f32, atol=1.2e-1, rtol=1e-1), \
        "mismatch vs f32 reference"

    print("KERNEL_OK")
</pallas_src>

<mosaic_0001>
module attributes {stable_mosaic.version = 11 : i64} {
  func.func @mha_kernel(%arg0: i32, %arg1: memref<2x8x384xbf16, #tpu.memory_space<vmem>>, %arg2: memref<384x1152xi8, #tpu.memory_space<vmem>>, %arg3: memref<1x1152xf32, #tpu.memory_space<vmem>>, %arg4: memref<384x384xi8, #tpu.memory_space<vmem>>, %arg5: memref<1x384xf32, #tpu.memory_space<vmem>>, %arg6: memref<1x384xf32, #tpu.memory_space<vmem>>, %arg7: memref<2x8x384xf32, #tpu.memory_space<vmem>>) attributes {dimension_semantics = [#tpu.dimension_semantics<arbitrary>], iteration_bounds = array<i64: 1>, scalar_prefetch = 0 : i64, scratch_operands = 0 : i64, tpu.core_type = #tpu.core_type<tc>, window_params = [{pipeline_mode = #tpu.pipeline_mode<synchronous>, transform_indices = @transform_0, window_bounds = array<i64: 2, 8, 384>}, {pipeline_mode = #tpu.pipeline_mode<synchronous>, transform_indices = @transform_1, window_bounds = array<i64: 384, 1152>}, {pipeline_mode = #tpu.pipeline_mode<synchronous>, transform_indices = @transform_2, window_bounds = array<i64: 1, 1152>}, {pipeline_mode = #tpu.pipeline_mode<synchronous>, transform_indices = @transform_3, window_bounds = array<i64: 384, 384>}, {pipeline_mode = #tpu.pipeline_mode<synchronous>, transform_indices = @transform_4, window_bounds = array<i64: 1, 384>}, {pipeline_mode = #tpu.pipeline_mode<synchronous>, transform_indices = @transform_5, window_bounds = array<i64: 1, 384>}, {pipeline_mode = #tpu.pipeline_mode<synchronous>, transform_indices = @transform_6, window_bounds = array<i64: 2, 8, 384>}]} {
    %c0 = arith.constant 0 : index
    %c0_0 = arith.constant 0 : index
    %0 = vector.load %arg2[%c0, %c0_0] : memref<384x1152xi8, #tpu.memory_space<vmem>>, vector<384x1152xi8>
    %1 = arith.sitofp %0 : vector<384x1152xi8> to vector<384x1152xbf16>
    %c0_1 = arith.constant 0 : index
    %c0_2 = arith.constant 0 : index
    %2 = vector.load %arg4[%c0_1, %c0_2] : memref<384x384xi8, #tpu.memory_space<vmem>>, vector<384x384xi8>
    %3 = arith.sitofp %2 : vector<384x384xi8> to vector<384x384xbf16>
    %c0_3 = arith.constant 0 : index
    %c0_4 = arith.constant 0 : index
    %4 = vector.load %arg5[%c0_3, %c0_4] : memref<1x384xf32, #tpu.memory_space<vmem>>, vector<1x384xf32>
    %c0_5 = arith.constant 0 : index
    %c0_6 = arith.constant 0 : index
    %5 = vector.load %arg6[%c0_5, %c0_6] : memref<1x384xf32, #tpu.memory_space<vmem>>, vector<1x384xf32>
    %c0_7 = arith.constant 0 : index
    %c0_8 = arith.constant 0 : index
    %c0_9 = arith.constant 0 : index
    %6 = vector.load %arg1[%c0_7, %c0_8, %c0_9] : memref<2x8x384xbf16, #tpu.memory_space<vmem>>, vector<2x8x384xbf16>
    %7 = vector.shape_cast %6 : vector<2x8x384xbf16> to vector<16x384xbf16>
    %cst = arith.constant dense<0.000000e+00> : vector<16x1152xf32>
    %8 = tpu.matmul %7, %1, %cst {dimension_numbers = #tpu.dot_dimension_numbers<[1], [0], [0], [1], [0, 0, 1, 1], [], []>} : vector<16x384xbf16>, vector<384x1152xbf16>, vector<16x1152xf32> -> vector<16x1152xf32>
    %c0_10 = arith.constant 0 : index
    %c0_11 = arith.constant 0 : index
    %9 = vector.load %arg3[%c0_10, %c0_11] : memref<1x1152xf32, #tpu.memory_space<vmem>>, vector<1x1152xf32>
    %10 = vector.broadcast %9 : vector<1x1152xf32> to vector<16x1152xf32>
    %11 = arith.mulf %8, %10 : vector<16x1152xf32>
    %12 = tpu.iota {dimensions = array<i32: 0>} : vector<8x8xi32>
    %13 = tpu.iota {dimensions = array<i32: 1>} : vector<8x8xi32>
    %14 = arith.cmpi sge, %12, %13 : vector<8x8xi32>
    %15 = vector.extract_strided_slice %11 {offsets = [0, 0], sizes = [8, 1152], strides = [1, 1]} : vector<16x1152xf32> to vector<8x1152xf32>
    %16 = vector.extract_strided_slice %15 {offsets = [0, 0], sizes = [8, 64], strides = [1, 1]} : vector<8x1152xf32> to vector<8x64xf32>
    %17 = arith.truncf %16 : vector<8x64xf32> to vector<8x64xbf16>
    %18 = vector.extract_strided_slice %15 {offsets = [0, 384], sizes = [8, 64], strides = [1, 1]} : vector<8x1152xf32> to vector<8x64xf32>
    %19 = arith.truncf %18 : vector<8x64xf32> to vector<8x64xbf16>
    %20 = vector.extract_strided_slice %15 {offsets = [0, 768], sizes = [8, 64], strides = [1, 1]} : vector<8x1152xf32> to vector<8x64xf32>
    %21 = arith.truncf %20 : vector<8x64xf32> to vector<8x64xbf16>
    %cst_12 = arith.constant dense<0.000000e+00> : vector<8x8xf32>
    %22 = tpu.matmul %17, %19, %cst_12 {dimension_numbers = #tpu.dot_dimension_numbers<[1], [1], [0], [0], [0, 0, 1, 0], [], []>} : vector<8x64xbf16>, vector<8x64xbf16>, vector<8x8xf32> -> vector<8x8xf32>
    %cst_13 = arith.constant -1.000000e+30 : f32
    %23 = vector.broadcast %cst_13 : f32 to vector<8x8xf32>
    %24 = arith.select %14, %22, %23 : vector<8x8xi1>, vector<8x8xf32>
    %cst_14 = arith.constant dense<0xFF800000> : vector<8xf32>
    %25 = vector.multi_reduction <maximumf>, %24, %cst_14 [1] : vector<8x8xf32> to vector<8xf32>
    %26 = vector.shape_cast %25 : vector<8xf32> to vector<8x1xf32>
    %27 = vector.broadcast %26 : vector<8x1xf32> to vector<8x8xf32>
    %28 = arith.subf %24, %27 : vector<8x8xf32>
    %29 = math.exp %28 : vector<8x8xf32>
    %cst_15 = arith.constant dense<0.000000e+00> : vector<8xf32>
    %30 = vector.multi_reduction <add>, %29, %cst_15 [1] : vector<8x8xf32> to vector<8xf32>
    %31 = vector.shape_cast %30 : vector<8xf32> to vector<8x1xf32>
    %32 = vector.broadcast %31 : vector<8x1xf32> to vector<8x8xf32>
    %33 = arith.divf %29, %32 : vector<8x8xf32>
    %34 = arith.truncf %33 : vector<8x8xf32> to vector<8x8xbf16>
    %cst_16 = arith.constant dense<0.000000e+00> : vector<8x64xf32>
    %35 = tpu.matmul %34, %21, %cst_16 {dimension_numbers = #tpu.dot_dimension_numbers<[1], [0], [0], [1], [0, 0, 1, 1], [], []>} : vector<8x8xbf16>, vector<8x64xbf16>, vector<8x64xf32> -> vector<8x64xf32>
    %36 = arith.truncf %35 : vector<8x64xf32> to vector<8x64xbf16>
    %37 = vector.extract_strided_slice %15 {offsets = [0, 64], sizes = [8, 64], strides = [1, 1]} : vector<8x1152xf32> to vector<8x64xf32>
    %38 = arith.truncf %37 : vector<8x64xf32> to vector<8x64xbf16>
    %39 = vector.extract_strided_slice %15 {offsets = [0, 448], sizes = [8, 64], strides = [1, 1]} : vector<8x1152xf32> to vector<8x64xf32>
    %40 = arith.truncf %39 : vector<8x64xf32> to vector<8x64xbf16>
    %41 = vector.extract_strided_slice %15 {offsets = [0, 832], sizes = [8, 64], strides = [1, 1]} : vector<8x1152xf32> to vector<8x64xf32>
    %42 = arith.truncf %41 : vector<8x64xf32> to vector<8x64xbf16>
    %cst_17 = arith.constant dense<0.000000e+00> : vector<8x8xf32>
    %43 = tpu.matmul %38, %40, %cst_17 {dimension_numbers = #tpu.dot_dimension_numbers<[1], [1], [0], [0], [0, 0, 1, 0], [], []>} : vector<8x64xbf16>, vector<8x64xbf16>, vector<8x8xf32> -> vector<8x8xf32>
    %cst_18 = arith.constant -1.000000e+30 : f32
    %44 = vector.broadcast %cst_18 : f32 to vector<8x8xf32>
    %45 = arith.select %14, %43, %44 : vector<8x8xi1>, vector<8x8xf32>
    %cst_19 = arith.constant dense<0xFF800000> : vector<8xf32>
    %46 = vector.multi_reduction <maximumf>, %45, %cst_19 [1] : vector<8x8xf32> to vector<8xf32>
    %47 = vector.shape_cast %46 : vector<8xf32> to vector<8x1xf32>
    %48 = vector.broadcast %47 : vector<8x1xf32> to vector<8x8xf32>
    %49 = arith.subf %45, %48 : vector<8x8xf32>
    %50 = math.exp %49 : vector<8x8xf32>
    %cst_20 = arith.constant dense<0.000000e+00> : vector<8xf32>
    %51 = vector.multi_reduction <add>, %50, %cst_20 [1] : vector<8x8xf32> to vector<8xf32>
    %52 = vector.shape_cast %51 : vector<8xf32> to vector<8x1xf32>
    %53 = vector.broadcast %52 : vector<8x1xf32> to vector<8x8xf32>
    %54 = arith.divf %50, %53 : vector<8x8xf32>
    %55 = arith.truncf %54 : vector<8x8xf32> to vector<8x8xbf16>
    %cst_21 = arith.constant dense<0.000000e+00> : vector<8x64xf32>
    %56 = tpu.matmul %55, %42, %cst_21 {dimension_numbers = #tpu.dot_dimension_numbers<[1], [0], [0], [1], [0, 0, 1, 1], [], []>} : vector<8x8xbf16>, vector<8x64xbf16>, vector<8x64xf32> -> vector<8x64xf32>
    %57 = arith.truncf %56 : vector<8x64xf32> to vector<8x64xbf16>
    %58 = vector.extract_strided_slice %15 {offsets = [0, 128], sizes = [8, 64], strides = [1, 1]} : vector<8x1152xf32> to vector<8x64xf32>
    %59 = arith.truncf %58 : vector<8x64xf32> to vector<8x64xbf16>
    %60 = vector.extract_strided_slice %15 {offsets = [0, 512], sizes = [8, 64], strides = [1, 1]} : vector<8x1152xf32> to vector<8x64xf32>
    %61 = arith.truncf %60 : vector<8x64xf32> to vector<8x64xbf16>
    %62 = vector.extract_strided_slice %15 {offsets = [0, 896], sizes = [8, 64], strides = [1, 1]} : vector<8x1152xf32> to vector<8x64xf32>
    %63 = arith.truncf %62 : vector<8x64xf32> to vector<8x64xbf16>
    %cst_22 = arith.constant dense<0.000000e+00> : vector<8x8xf32>
    %64 = tpu.matmul %59, %61, %cst_22 {dimension_numbers = #tpu.dot_dimension_numbers<[1], [1], [0], [0], [0, 0, 1, 0], [], []>} : vector<8x64xbf16>, vector<8x64xbf16>, vector<8x8xf32> -> vector<8x8xf32>
    %cst_23 = arith.constant -1.000000e+30 : f32
    %65 = vector.broadcast %cst_23 : f32 to vector<8x8xf32>
    %66 = arith.select %14, %64, %65 : vector<8x8xi1>, vector<8x8xf32>
    %cst_24 = arith.constant dense<0xFF800000> : vector<8xf32>
    %67 = vector.multi_reduction <maximumf>, %66, %cst_24 [1] : vector<8x8xf32> to vector<8xf32>
    %68 = vector.shape_cast %67 : vector<8xf32> to vector<8x1xf32>
    %69 = vector.broadcast %68 : vector<8x1xf32> to vector<8x8xf32>
    %70 = arith.subf %66, %69 : vector<8x8xf32>
    %71 = math.exp %70 : vector<8x8xf32>
    %cst_25 = arith.constant dense<0.000000e+00> : vector<8xf32>
    %72 = vector.multi_reduction <add>, %71, %cst_25 [1] : vector<8x8xf32> to vector<8xf32>
    %73 = vector.shape_cast %72 : vector<8xf32> to vector<8x1xf32>
    %74 = vector.broadcast %73 : vector<8x1xf32> to vector<8x8xf32>
    %75 = arith.divf %71, %74 : vector<8x8xf32>
    %76 = arith.truncf %75 : vector<8x8xf32> to vector<8x8xbf16>
    %cst_26 = arith.constant dense<0.000000e+00> : vector<8x64xf32>
    %77 = tpu.matmul %76, %63, %cst_26 {dimension_numbers = #tpu.dot_dimension_numbers<[1], [0], [0], [1], [0, 0, 1, 1], [], []>} : vector<8x8xbf16>, vector<8x64xbf16>, vector<8x64xf32> -> vector<8x64xf32>
    %78 = arith.truncf %77 : vector<8x64xf32> to vector<8x64xbf16>
    %79 = vector.extract_strided_slice %15 {offsets = [0, 192], sizes = [8, 64], strides = [1, 1]} : vector<8x1152xf32> to vector<8x64xf32>
    %80 = arith.truncf %79 : vector<8x64xf32> to vector<8x64xbf16>
    %81 = vector.extract_strided_slice %15 {offsets = [0, 576], sizes = [8, 64], strides = [1, 1]} : vector<8x1152xf32> to vector<8x64xf32>
    %82 = arith.truncf %81 : vector<8x64xf32> to vector<8x64xbf16>
    %83 = vector.extract_strided_slice %15 {offsets = [0, 960], sizes = [8, 64], strides = [1, 1]} : vector<8x1152xf32> to vector<8x64xf32>
    %84 = arith.truncf %83 : vector<8x64xf32> to vector<8x64xbf16>
    %cst_27 = arith.constant dense<0.000000e+00> : vector<8x8xf32>
    %85 = tpu.matmul %80, %82, %cst_27 {dimension_numbers = #tpu.dot_dimension_numbers<[1], [1], [0], [0], [0, 0, 1, 0], [], []>} : vector<8x64xbf16>, vector<8x64xbf16>, vector<8x8xf32> -> vector<8x8xf32>
    %cst_28 = arith.constant -1.000000e+30 : f32
    %86 = vector.broadcast %cst_28 : f32 to vector<8x8xf32>
    %87 = arith.select %14, %85, %86 : vector<8x8xi1>, vector<8x8xf32>
    %cst_29 = arith.constant dense<0xFF800000> : vector<8xf32>
    %88 = vector.multi_reduction <maximumf>, %87, %cst_29 [1] : vector<8x8xf32> to vector<8xf32>
    %89 = vector.shape_cast %88 : vector<8xf32> to vector<8x1xf32>
    %90 = vector.broadcast %89 : vector<8x1xf32> to vector<8x8xf32>
    %91 = arith.subf %87, %90 : vector<8x8xf32>
    %92 = math.exp %91 : vector<8x8xf32>
    %cst_30 = arith.constant dense<0.000000e+00> : vector<8xf32>
    %93 = vector.multi_reduction <add>, %92, %cst_30 [1] : vector<8x8xf32> to vector<8xf32>
    %94 = vector.shape_cast %93 : vector<8xf32> to vector<8x1xf32>
    %95 = vector.broadcast %94 : vector<8x1xf32> to vector<8x8xf32>
    %96 = arith.divf %92, %95 : vector<8x8xf32>
    %97 = arith.truncf %96 : vector<8x8xf32> to vector<8x8xbf16>
    %cst_31 = arith.constant dense<0.000000e+00> : vector<8x64xf32>
    %98 = tpu.matmul %97, %84, %cst_31 {dimension_numbers = #tpu.dot_dimension_numbers<[1], [0], [0], [1], [0, 0, 1, 1], [], []>} : vector<8x8xbf16>, vector<8x64xbf16>, vector<8x64xf32> -> vector<8x64xf32>
    %99 = arith.truncf %98 : vector<8x64xf32> to vector<8x64xbf16>
    %100 = vector.extract_strided_slice %15 {offsets = [0, 256], sizes = [8, 64], strides = [1, 1]} : vector<8x1152xf32> to vector<8x64xf32>
    %101 = arith.truncf %100 : vector<8x64xf32> to vector<8x64xbf16>
    %102 = vector.extract_strided_slice %15 {offsets = [0, 640], sizes = [8, 64], strides = [1, 1]} : vector<8x1152xf32> to vector<8x64xf32>
    %103 = arith.truncf %102 : vector<8x64xf32> to vector<8x64xbf16>
    %104 = vector.extract_strided_slice %15 {offsets = [0, 1024], sizes = [8, 64], strides = [1, 1]} : vector<8x1152xf32> to vector<8x64xf32>
    %105 = arith.truncf %104 : vector<8x64xf32> to vector<8x64xbf16>
    %cst_32 = arith.constant dense<0.000000e+00> : vector<8x8xf32>
    %106 = tpu.matmul %101, %103, %cst_32 {dimension_numbers = #tpu.dot_dimension_numbers<[1], [1], [0], [0], [0, 0, 1, 0], [], []>} : vector<8x64xbf16>, vector<8x64xbf16>, vector<8x8xf32> -> vector<8x8xf32>
    %cst_33 = arith.constant -1.000000e+30 : f32
    %107 = vector.broadcast %cst_33 : f32 to vector<8x8xf32>
    %108 = arith.select %14, %106, %107 : vector<8x8xi1>, vector<8x8xf32>
    %cst_34 = arith.constant dense<0xFF800000> : vector<8xf32>
    %109 = vector.multi_reduction <maximumf>, %108, %cst_34 [1] : vector<8x8xf32> to vector<8xf32>
    %110 = vector.shape_cast %109 : vector<8xf32> to vector<8x1xf32>
    %111 = vector.broadcast %110 : vector<8x1xf32> to vector<8x8xf32>
    %112 = arith.subf %108, %111 : vector<8x8xf32>
    %113 = math.exp %112 : vector<8x8xf32>
    %cst_35 = arith.constant dense<0.000000e+00> : vector<8xf32>
    %114 = vector.multi_reduction <add>, %113, %cst_35 [1] : vector<8x8xf32> to vector<8xf32>
    %115 = vector.shape_cast %114 : vector<8xf32> to vector<8x1xf32>
    %116 = vector.broadcast %115 : vector<8x1xf32> to vector<8x8xf32>
    %117 = arith.divf %113, %116 : vector<8x8xf32>
    %118 = arith.truncf %117 : vector<8x8xf32> to vector<8x8xbf16>
    %cst_36 = arith.constant dense<0.000000e+00> : vector<8x64xf32>
    %119 = tpu.matmul %118, %105, %cst_36 {dimension_numbers = #tpu.dot_dimension_numbers<[1], [0], [0], [1], [0, 0, 1, 1], [], []>} : vector<8x8xbf16>, vector<8x64xbf16>, vector<8x64xf32> -> vector<8x64xf32>
    %120 = arith.truncf %119 : vector<8x64xf32> to vector<8x64xbf16>
    %121 = vector.extract_strided_slice %15 {offsets = [0, 320], sizes = [8, 64], strides = [1, 1]} : vector<8x1152xf32> to vector<8x64xf32>
    %122 = arith.truncf %121 : vector<8x64xf32> to vector<8x64xbf16>
    %123 = vector.extract_strided_slice %15 {offsets = [0, 704], sizes = [8, 64], strides = [1, 1]} : vector<8x1152xf32> to vector<8x64xf32>
    %124 = arith.truncf %123 : vector<8x64xf32> to vector<8x64xbf16>
    %125 = vector.extract_strided_slice %15 {offsets = [0, 1088], sizes = [8, 64], strides = [1, 1]} : vector<8x1152xf32> to vector<8x64xf32>
    %126 = arith.truncf %125 : vector<8x64xf32> to vector<8x64xbf16>
    %cst_37 = arith.constant dense<0.000000e+00> : vector<8x8xf32>
    %127 = tpu.matmul %122, %124, %cst_37 {dimension_numbers = #tpu.dot_dimension_numbers<[1], [1], [0], [0], [0, 0, 1, 0], [], []>} : vector<8x64xbf16>, vector<8x64xbf16>, vector<8x8xf32> -> vector<8x8xf32>
    %cst_38 = arith.constant -1.000000e+30 : f32
    %128 = vector.broadcast %cst_38 : f32 to vector<8x8xf32>
    %129 = arith.select %14, %127, %128 : vector<8x8xi1>, vector<8x8xf32>
    %cst_39 = arith.constant dense<0xFF800000> : vector<8xf32>
    %130 = vector.multi_reduction <maximumf>, %129, %cst_39 [1] : vector<8x8xf32> to vector<8xf32>
    %131 = vector.shape_cast %130 : vector<8xf32> to vector<8x1xf32>
    %132 = vector.broadcast %131 : vector<8x1xf32> to vector<8x8xf32>
    %133 = arith.subf %129, %132 : vector<8x8xf32>
    %134 = math.exp %133 : vector<8x8xf32>
    %cst_40 = arith.constant dense<0.000000e+00> : vector<8xf32>
    %135 = vector.multi_reduction <add>, %134, %cst_40 [1] : vector<8x8xf32> to vector<8xf32>
    %136 = vector.shape_cast %135 : vector<8xf32> to vector<8x1xf32>
    %137 = vector.broadcast %136 : vector<8x1xf32> to vector<8x8xf32>
    %138 = arith.divf %134, %137 : vector<8x8xf32>
    %139 = arith.truncf %138 : vector<8x8xf32> to vector<8x8xbf16>
    %cst_41 = arith.constant dense<0.000000e+00> : vector<8x64xf32>
    %140 = tpu.matmul %139, %126, %cst_41 {dimension_numbers = #tpu.dot_dimension_numbers<[1], [0], [0], [1], [0, 0, 1, 1], [], []>} : vector<8x8xbf16>, vector<8x64xbf16>, vector<8x64xf32> -> vector<8x64xf32>
    %141 = arith.truncf %140 : vector<8x64xf32> to vector<8x64xbf16>
    %142 = tpu.concatenate %36, %57, %78, %99, %120, %141 in 1 : vector<8x64xbf16>, vector<8x64xbf16>, vector<8x64xbf16>, vector<8x64xbf16>, vector<8x64xbf16>, vector<8x64xbf16> -> vector<8x384xbf16>
    %cst_42 = arith.constant dense<0.000000e+00> : vector<8x384xf32>
    %143 = tpu.matmul %142, %3, %cst_42 {dimension_numbers = #tpu.dot_dimension_numbers<[1], [0], [0], [1], [0, 0, 1, 1], [], []>} : vector<8x384xbf16>, vector<384x384xbf16>, vector<8x384xf32> -> vector<8x384xf32>
    %144 = vector.broadcast %4 : vector<1x384xf32> to vector<8x384xf32>
    %145 = arith.mulf %143, %144 : vector<8x384xf32>
    %146 = vector.broadcast %5 : vector<1x384xf32> to vector<8x384xf32>
    %147 = arith.addf %145, %146 : vector<8x384xf32>
    %c0_43 = arith.constant 0 : index
    %c0_44 = arith.constant 0 : index
    %c0_45 = arith.constant 0 : index
    %148 = vector.load %arg7[%c0_43, %c0_44, %c0_45] : memref<2x8x384xf32, #tpu.memory_space<vmem>>, vector<1x8x384xf32>
    %149 = vector.shape_cast %148 : vector<1x8x384xf32> to vector<8x384xf32>
    %150 = vector.shape_cast %147 : vector<8x384xf32> to vector<1x8x384xf32>
    tpu.vector_store %arg7[%c0_43, %c0_44, %c0_45], %150 {strides = array<i32>} : memref<2x8x384xf32, #tpu.memory_space<vmem>>, vector<1x8x384xf32>,
    %151 = vector.extract_strided_slice %11 {offsets = [8, 0], sizes = [8, 1152], strides = [1, 1]} : vector<16x1152xf32> to vector<8x1152xf32>
    %152 = vector.extract_strided_slice %151 {offsets = [0, 0], sizes = [8, 64], strides = [1, 1]} : vector<8x1152xf32> to vector<8x64xf32>
    %153 = arith.truncf %152 : vector<8x64xf32> to vector<8x64xbf16>
    %154 = vector.extract_strided_slice %151 {offsets = [0, 384], sizes = [8, 64], strides = [1, 1]} : vector<8x1152xf32> to vector<8x64xf32>
    %155 = arith.truncf %154 : vector<8x64xf32> to vector<8x64xbf16>
    %156 = vector.extract_strided_slice %151 {offsets = [0, 768], sizes = [8, 64], strides = [1, 1]} : vector<8x1152xf32> to vector<8x64xf32>
    %157 = arith.truncf %156 : vector<8x64xf32> to vector<8x64xbf16>
    %cst_46 = arith.constant dense<0.000000e+00> : vector<8x8xf32>
    %158 = tpu.matmul %153, %155, %cst_46 {dimension_numbers = #tpu.dot_dimension_numbers<[1], [1], [0], [0], [0, 0, 1, 0], [], []>} : vector<8x64xbf16>, vector<8x64xbf16>, vector<8x8xf32> -> vector<8x8xf32>
    %cst_47 = arith.constant -1.000000e+30 : f32
    %159 = vector.broadcast %cst_47 : f32 to vector<8x8xf32>
    %160 = arith.select %14, %158, %159 : vector<8x8xi1>, vector<8x8xf32>
    %cst_48 = arith.constant dense<0xFF800000> : vector<8xf32>
    %161 = vector.multi_reduction <maximumf>, %160, %cst_48 [1] : vector<8x8xf32> to vector<8xf32>
    %162 = vector.shape_cast %161 : vector<8xf32> to vector<8x1xf32>
    %163 = vector.broadcast %162 : vector<8x1xf32> to vector<8x8xf32>
    %164 = arith.subf %160, %163 : vector<8x8xf32>
    %165 = math.exp %164 : vector<8x8xf32>
    %cst_49 = arith.constant dense<0.000000e+00> : vector<8xf32>
    %166 = vector.multi_reduction <add>, %165, %cst_49 [1] : vector<8x8xf32> to vector<8xf32>
    %167 = vector.shape_cast %166 : vector<8xf32> to vector<8x1xf32>
    %168 = vector.broadcast %167 : vector<8x1xf32> to vector<8x8xf32>
    %169 = arith.divf %165, %168 : vector<8x8xf32>
    %170 = arith.truncf %169 : vector<8x8xf32> to vector<8x8xbf16>
    %cst_50 = arith.constant dense<0.000000e+00> : vector<8x64xf32>
    %171 = tpu.matmul %170, %157, %cst_50 {dimension_numbers = #tpu.dot_dimension_numbers<[1], [0], [0], [1], [0, 0, 1, 1], [], []>} : vector<8x8xbf16>, vector<8x64xbf16>, vector<8x64xf32> -> vector<8x64xf32>
    %172 = arith.truncf %171 : vector<8x64xf32> to vector<8x64xbf16>
    %173 = vector.extract_strided_slice %151 {offsets = [0, 64], sizes = [8, 64], strides = [1, 1]} : vector<8x1152xf32> to vector<8x64xf32>
    %174 = arith.truncf %173 : vector<8x64xf32> to vector<8x64xbf16>
    %175 = vector.extract_strided_slice %151 {offsets = [0, 448], sizes = [8, 64], strides = [1, 1]} : vector<8x1152xf32> to vector<8x64xf32>
    %176 = arith.truncf %175 : vector<8x64xf32> to vector<8x64xbf16>
    %177 = vector.extract_strided_slice %151 {offsets = [0, 832], sizes = [8, 64], strides = [1, 1]} : vector<8x1152xf32> to vector<8x64xf32>
    %178 = arith.truncf %177 : vector<8x64xf32> to vector<8x64xbf16>
    %cst_51 = arith.constant dense<0.000000e+00> : vector<8x8xf32>
    %179 = tpu.matmul %174, %176, %cst_51 {dimension_numbers = #tpu.dot_dimension_numbers<[1], [1], [0], [0], [0, 0, 1, 0], [], []>} : vector<8x64xbf16>, vector<8x64xbf16>, vector<8x8xf32> -> vector<8x8xf32>
    %cst_52 = arith.constant -1.000000e+30 : f32
    %180 = vector.broadcast %cst_52 : f32 to vector<8x8xf32>
    %181 = arith.select %14, %179, %180 : vector<8x8xi1>, vector<8x8xf32>
    %cst_53 = arith.constant dense<0xFF800000> : vector<8xf32>
    %182 = vector.multi_reduction <maximumf>, %181, %cst_53 [1] : vector<8x8xf32> to vector<8xf32>
    %183 = vector.shape_cast %182 : vector<8xf32> to vector<8x1xf32>
    %184 = vector.broadcast %183 : vector<8x1xf32> to vector<8x8xf32>
    %185 = arith.subf %181, %184 : vector<8x8xf32>
    %186 = math.exp %185 : vector<8x8xf32>
    %cst_54 = arith.constant dense<0.000000e+00> : vector<8xf32>
    %187 = vector.multi_reduction <add>, %186, %cst_54 [1] : vector<8x8xf32> to vector<8xf32>
    %188 = vector.shape_cast %187 : vector<8xf32> to vector<8x1xf32>
    %189 = vector.broadcast %188 : vector<8x1xf32> to vector<8x8xf32>
    %190 = arith.divf %186, %189 : vector<8x8xf32>
    %191 = arith.truncf %190 : vector<8x8xf32> to vector<8x8xbf16>
    %cst_55 = arith.constant dense<0.000000e+00> : vector<8x64xf32>
    %192 = tpu.matmul %191, %178, %cst_55 {dimension_numbers = #tpu.dot_dimension_numbers<[1], [0], [0], [1], [0, 0, 1, 1], [], []>} : vector<8x8xbf16>, vector<8x64xbf16>, vector<8x64xf32> -> vector<8x64xf32>
    %193 = arith.truncf %192 : vector<8x64xf32> to vector<8x64xbf16>
    %194 = vector.extract_strided_slice %151 {offsets = [0, 128], sizes = [8, 64], strides = [1, 1]} : vector<8x1152xf32> to vector<8x64xf32>
    %195 = arith.truncf %194 : vector<8x64xf32> to vector<8x64xbf16>
    %196 = vector.extract_strided_slice %151 {offsets = [0, 512], sizes = [8, 64], strides = [1, 1]} : vector<8x1152xf32> to vector<8x64xf32>
    %197 = arith.truncf %196 : vector<8x64xf32> to vector<8x64xbf16>
    %198 = vector.extract_strided_slice %151 {offsets = [0, 896], sizes = [8, 64], strides = [1, 1]} : vector<8x1152xf32> to vector<8x64xf32>
    %199 = arith.truncf %198 : vector<8x64xf32> to vector<8x64xbf16>
    %cst_56 = arith.constant dense<0.000000e+00> : vector<8x8xf32>
    %200 = tpu.matmul %195, %197, %cst_56 {dimension_numbers = #tpu.dot_dimension_numbers<[1], [1], [0], [0], [0, 0, 1, 0], [], []>} : vector<8x64xbf16>, vector<8x64xbf16>, vector<8x8xf32> -> vector<8x8xf32>
    %cst_57 = arith.constant -1.000000e+30 : f32
    %201 = vector.broadcast %cst_57 : f32 to vector<8x8xf32>
    %202 = arith.select %14, %200, %201 : vector<8x8xi1>, vector<8x8xf32>
    %cst_58 = arith.constant dense<0xFF800000> : vector<8xf32>
    %203 = vector.multi_reduction <maximumf>, %202, %cst_58 [1] : vector<8x8xf32> to vector<8xf32>
    %204 = vector.shape_cast %203 : vector<8xf32> to vector<8x1xf32>
    %205 = vector.broadcast %204 : vector<8x1xf32> to vector<8x8xf32>
    %206 = arith.subf %202, %205 : vector<8x8xf32>
    %207 = math.exp %206 : vector<8x8xf32>
    %cst_59 = arith.constant dense<0.000000e+00> : vector<8xf32>
    %208 = vector.multi_reduction <add>, %207, %cst_59 [1] : vector<8x8xf32> to vector<8xf32>
    %209 = vector.shape_cast %208 : vector<8xf32> to vector<8x1xf32>
    %210 = vector.broadcast %209 : vector<8x1xf32> to vector<8x8xf32>
    %211 = arith.divf %207, %210 : vector<8x8xf32>
    %212 = arith.truncf %211 : vector<8x8xf32> to vector<8x8xbf16>
    %cst_60 = arith.constant dense<0.000000e+00> : vector<8x64xf32>
    %213 = tpu.matmul %212, %199, %cst_60 {dimension_numbers = #tpu.dot_dimension_numbers<[1], [0], [0], [1], [0, 0, 1, 1], [], []>} : vector<8x8xbf16>, vector<8x64xbf16>, vector<8x64xf32> -> vector<8x64xf32>
    %214 = arith.truncf %213 : vector<8x64xf32> to vector<8x64xbf16>
    %215 = vector.extract_strided_slice %151 {offsets = [0, 192], sizes = [8, 64], strides = [1, 1]} : vector<8x1152xf32> to vector<8x64xf32>
    %216 = arith.truncf %215 : vector<8x64xf32> to vector<8x64xbf16>
    %217 = vector.extract_strided_slice %151 {offsets = [0, 576], sizes = [8, 64], strides = [1, 1]} : vector<8x1152xf32> to vector<8x64xf32>
    %218 = arith.truncf %217 : vector<8x64xf32> to vector<8x64xbf16>
    %219 = vector.extract_strided_slice %151 {offsets = [0, 960], sizes = [8, 64], strides = [1, 1]} : vector<8x1152xf32> to vector<8x64xf32>
    %220 = arith.truncf %219 : vector<8x64xf32> to vector<8x64xbf16>
    %cst_61 = arith.constant dense<0.000000e+00> : vector<8x8xf32>
    %221 = tpu.matmul %216, %218, %cst_61 {dimension_numbers = #tpu.dot_dimension_numbers<[1], [1], [0], [0], [0, 0, 1, 0], [], []>} : vector<8x64xbf16>, vector<8x64xbf16>, vector<8x8xf32> -> vector<8x8xf32>
    %cst_62 = arith.constant -1.000000e+30 : f32
    %222 = vector.broadcast %cst_62 : f32 to vector<8x8xf32>
    %223 = arith.select %14, %221, %222 : vector<8x8xi1>, vector<8x8xf32>
    %cst_63 = arith.constant dense<0xFF800000> : vector<8xf32>
    %224 = vector.multi_reduction <maximumf>, %223, %cst_63 [1] : vector<8x8xf32> to vector<8xf32>
    %225 = vector.shape_cast %224 : vector<8xf32> to vector<8x1xf32>
    %226 = vector.broadcast %225 : vector<8x1xf32> to vector<8x8xf32>
    %227 = arith.subf %223, %226 : vector<8x8xf32>
    %228 = math.exp %227 : vector<8x8xf32>
    %cst_64 = arith.constant dense<0.000000e+00> : vector<8xf32>
    %229 = vector.multi_reduction <add>, %228, %cst_64 [1] : vector<8x8xf32> to vector<8xf32>
    %230 = vector.shape_cast %229 : vector<8xf32> to vector<8x1xf32>
    %231 = vector.broadcast %230 : vector<8x1xf32> to vector<8x8xf32>
    %232 = arith.divf %228, %231 : vector<8x8xf32>
    %233 = arith.truncf %232 : vector<8x8xf32> to vector<8x8xbf16>
    %cst_65 = arith.constant dense<0.000000e+00> : vector<8x64xf32>
    %234 = tpu.matmul %233, %220, %cst_65 {dimension_numbers = #tpu.dot_dimension_numbers<[1], [0], [0], [1], [0, 0, 1, 1], [], []>} : vector<8x8xbf16>, vector<8x64xbf16>, vector<8x64xf32> -> vector<8x64xf32>
    %235 = arith.truncf %234 : vector<8x64xf32> to vector<8x64xbf16>
    %236 = vector.extract_strided_slice %151 {offsets = [0, 256], sizes = [8, 64], strides = [1, 1]} : vector<8x1152xf32> to vector<8x64xf32>
    %237 = arith.truncf %236 : vector<8x64xf32> to vector<8x64xbf16>
    %238 = vector.extract_strided_slice %151 {offsets = [0, 640], sizes = [8, 64], strides = [1, 1]} : vector<8x1152xf32> to vector<8x64xf32>
    %239 = arith.truncf %238 : vector<8x64xf32> to vector<8x64xbf16>
    %240 = vector.extract_strided_slice %151 {offsets = [0, 1024], sizes = [8, 64], strides = [1, 1]} : vector<8x1152xf32> to vector<8x64xf32>
    %241 = arith.truncf %240 : vector<8x64xf32> to vector<8x64xbf16>
    %cst_66 = arith.constant dense<0.000000e+00> : vector<8x8xf32>
    %242 = tpu.matmul %237, %239, %cst_66 {dimension_numbers = #tpu.dot_dimension_numbers<[1], [1], [0], [0], [0, 0, 1, 0], [], []>} : vector<8x64xbf16>, vector<8x64xbf16>, vector<8x8xf32> -> vector<8x8xf32>
    %cst_67 = arith.constant -1.000000e+30 : f32
    %243 = vector.broadcast %cst_67 : f32 to vector<8x8xf32>
    %244 = arith.select %14, %242, %243 : vector<8x8xi1>, vector<8x8xf32>
    %cst_68 = arith.constant dense<0xFF800000> : vector<8xf32>
    %245 = vector.multi_reduction <maximumf>, %244, %cst_68 [1] : vector<8x8xf32> to vector<8xf32>
    %246 = vector.shape_cast %245 : vector<8xf32> to vector<8x1xf32>
    %247 = vector.broadcast %246 : vector<8x1xf32> to vector<8x8xf32>
    %248 = arith.subf %244, %247 : vector<8x8xf32>
    %249 = math.exp %248 : vector<8x8xf32>
    %cst_69 = arith.constant dense<0.000000e+00> : vector<8xf32>
    %250 = vector.multi_reduction <add>, %249, %cst_69 [1] : vector<8x8xf32> to vector<8xf32>
    %251 = vector.shape_cast %250 : vector<8xf32> to vector<8x1xf32>
    %252 = vector.broadcast %251 : vector<8x1xf32> to vector<8x8xf32>
    %253 = arith.divf %249, %252 : vector<8x8xf32>
    %254 = arith.truncf %253 : vector<8x8xf32> to vector<8x8xbf16>
    %cst_70 = arith.constant dense<0.000000e+00> : vector<8x64xf32>
    %255 = tpu.matmul %254, %241, %cst_70 {dimension_numbers = #tpu.dot_dimension_numbers<[1], [0], [0], [1], [0, 0, 1, 1], [], []>} : vector<8x8xbf16>, vector<8x64xbf16>, vector<8x64xf32> -> vector<8x64xf32>
    %256 = arith.truncf %255 : vector<8x64xf32> to vector<8x64xbf16>
    %257 = vector.extract_strided_slice %151 {offsets = [0, 320], sizes = [8, 64], strides = [1, 1]} : vector<8x1152xf32> to vector<8x64xf32>
    %258 = arith.truncf %257 : vector<8x64xf32> to vector<8x64xbf16>
    %259 = vector.extract_strided_slice %151 {offsets = [0, 704], sizes = [8, 64], strides = [1, 1]} : vector<8x1152xf32> to vector<8x64xf32>
    %260 = arith.truncf %259 : vector<8x64xf32> to vector<8x64xbf16>
    %261 = vector.extract_strided_slice %151 {offsets = [0, 1088], sizes = [8, 64], strides = [1, 1]} : vector<8x1152xf32> to vector<8x64xf32>
    %262 = arith.truncf %261 : vector<8x64xf32> to vector<8x64xbf16>
    %cst_71 = arith.constant dense<0.000000e+00> : vector<8x8xf32>
    %263 = tpu.matmul %258, %260, %cst_71 {dimension_numbers = #tpu.dot_dimension_numbers<[1], [1], [0], [0], [0, 0, 1, 0], [], []>} : vector<8x64xbf16>, vector<8x64xbf16>, vector<8x8xf32> -> vector<8x8xf32>
    %cst_72 = arith.constant -1.000000e+30 : f32
    %264 = vector.broadcast %cst_72 : f32 to vector<8x8xf32>
    %265 = arith.select %14, %263, %264 : vector<8x8xi1>, vector<8x8xf32>
    %cst_73 = arith.constant dense<0xFF800000> : vector<8xf32>
    %266 = vector.multi_reduction <maximumf>, %265, %cst_73 [1] : vector<8x8xf32> to vector<8xf32>
    %267 = vector.shape_cast %266 : vector<8xf32> to vector<8x1xf32>
    %268 = vector.broadcast %267 : vector<8x1xf32> to vector<8x8xf32>
    %269 = arith.subf %265, %268 : vector<8x8xf32>
    %270 = math.exp %269 : vector<8x8xf32>
    %cst_74 = arith.constant dense<0.000000e+00> : vector<8xf32>
    %271 = vector.multi_reduction <add>, %270, %cst_74 [1] : vector<8x8xf32> to vector<8xf32>
    %272 = vector.shape_cast %271 : vector<8xf32> to vector<8x1xf32>
    %273 = vector.broadcast %272 : vector<8x1xf32> to vector<8x8xf32>
    %274 = arith.divf %270, %273 : vector<8x8xf32>
    %275 = arith.truncf %274 : vector<8x8xf32> to vector<8x8xbf16>
    %cst_75 = arith.constant dense<0.000000e+00> : vector<8x64xf32>
    %276 = tpu.matmul %275, %262, %cst_75 {dimension_numbers = #tpu.dot_dimension_numbers<[1], [0], [0], [1], [0, 0, 1, 1], [], []>} : vector<8x8xbf16>, vector<8x64xbf16>, vector<8x64xf32> -> vector<8x64xf32>
    %277 = arith.truncf %276 : vector<8x64xf32> to vector<8x64xbf16>
    %278 = tpu.concatenate %172, %193, %214, %235, %256, %277 in 1 : vector<8x64xbf16>, vector<8x64xbf16>, vector<8x64xbf16>, vector<8x64xbf16>, vector<8x64xbf16>, vector<8x64xbf16> -> vector<8x384xbf16>
    %cst_76 = arith.constant dense<0.000000e+00> : vector<8x384xf32>
    %279 = tpu.matmul %278, %3, %cst_76 {dimension_numbers = #tpu.dot_dimension_numbers<[1], [0], [0], [1], [0, 0, 1, 1], [], []>} : vector<8x384xbf16>, vector<384x384xbf16>, vector<8x384xf32> -> vector<8x384xf32>
    %280 = vector.broadcast %4 : vector<1x384xf32> to vector<8x384xf32>
    %281 = arith.mulf %279, %280 : vector<8x384xf32>
    %282 = vector.broadcast %5 : vector<1x384xf32> to vector<8x384xf32>
    %283 = arith.addf %281, %282 : vector<8x384xf32>
    %c1 = arith.constant 1 : index
    %c0_77 = arith.constant 0 : index
    %c0_78 = arith.constant 0 : index
    %284 = vector.load %arg7[%c1, %c0_77, %c0_78] : memref<2x8x384xf32, #tpu.memory_space<vmem>>, vector<1x8x384xf32>
    %285 = vector.shape_cast %284 : vector<1x8x384xf32> to vector<8x384xf32>
    %286 = vector.shape_cast %283 : vector<8x384xf32> to vector<1x8x384xf32>
    tpu.vector_store %arg7[%c1, %c0_77, %c0_78], %286 {strides = array<i32>} : memref<2x8x384xf32, #tpu.memory_space<vmem>>, vector<1x8x384xf32>,
    return
  }
  func.func @transform_0(%arg0: i32) -> (i32, i32, i32) {
    %c0_i32 = arith.constant 0 : i32
    %c0_i32_0 = arith.constant 0 : i32
    %c0_i32_1 = arith.constant 0 : i32
    %c0_i32_2 = arith.constant 0 : i32
    return %c0_i32, %c0_i32_0, %c0_i32_1 : i32, i32, i32
  }
  func.func @transform_1(%arg0: i32) -> (i32, i32) {
    %c0_i32 = arith.constant 0 : i32
    %c0_i32_0 = arith.constant 0 : i32
    %c0_i32_1 = arith.constant 0 : i32
    return %c0_i32, %c0_i32_0 : i32, i32
  }
  func.func @transform_2(%arg0: i32) -> (i32, i32) {
    %c0_i32 = arith.constant 0 : i32
    %c0_i32_0 = arith.constant 0 : i32
    %c0_i32_1 = arith.constant 0 : i32
    return %c0_i32, %c0_i32_0 : i32, i32
  }
  func.func @transform_3(%arg0: i32) -> (i32, i32) {
    %c0_i32 = arith.constant 0 : i32
    %c0_i32_0 = arith.constant 0 : i32
    %c0_i32_1 = arith.constant 0 : i32
    return %c0_i32, %c0_i32_0 : i32, i32
  }
  func.func @transform_4(%arg0: i32) -> (i32, i32) {
    %c0_i32 = arith.constant 0 : i32
    %c0_i32_0 = arith.constant 0 : i32
    %c0_i32_1 = arith.constant 0 : i32
    return %c0_i32, %c0_i32_0 : i32, i32
  }
  func.func @transform_5(%arg0: i32) -> (i32, i32) {
    %c0_i32 = arith.constant 0 : i32
    %c0_i32_0 = arith.constant 0 : i32
    %c0_i32_1 = arith.constant 0 : i32
    return %c0_i32, %c0_i32_0 : i32, i32
  }
  func.func @transform_6(%arg0: i32) -> (i32, i32, i32) {
    %c0_i32 = arith.constant 0 : i32
    %c0_i32_0 = arith.constant 0 : i32
    %c0_i32_1 = arith.constant 0 : i32
    %c0_i32_2 = arith.constant 0 : i32
    return %c0_i32, %c0_i32_0, %c0_i32_1 : i32, i32, i32
  }
}

</mosaic_0001>

<bundles_post_ra>
// kernel: tpu_custom_call.1
= control target key start
LH: loop header
LB: loop body
LE: loop exit
PB: predicated region body
PF: predicated region fallthrough
CT: control target
= control target key end

     0   :  { %11 = vsyncpa [#allocation3], 0  ;;  %s4365_s0 = inlined_call_operand.hbm [shape: bf16[2,8,384], index: 0, kind: input, shape index: {}]   ;;  %s4366_s1 = inlined_call_operand.hbm [shape: s8[384,1152], index: 1, kind: input, shape index: {}]   ;;  %s4367_s2 = inlined_call_operand.hbm [shape: f32[1,1152], index: 2, kind: input, shape index: {}]   ;;  %s4368_s3 = inlined_call_operand.hbm [shape: s8[384,384], index: 3, kind: input, shape index: {}]   ;;  %s4369_s4 = inlined_call_operand.vmem [shape: f32[1,384], index: 4, kind: input, shape index: {}]   ;;  %s4370_s5 = inlined_call_operand.vmem [shape: f32[1,384], index: 5, kind: input, shape index: {}]   ;;  %s4371_s6 = inlined_call_operand.hbm [shape: f32[2,8,384], index: 6, kind: output, shape index: {}]  }
   0x1   :  { %12 = vsyncpa [#allocation6], 0 }
   0x2   :  { %13 = vsyncpa [#allocation9], 0 }
   0x3   :  { %14 = vsyncpa [#allocation4], 0  ;;  %s3395_s21 = smov [#allocation5]   ;;  %s3277_s25 = scalar_lea.hbm %s4366_s1, 13824 }
   0x4   :  { %s32_s22 = sshll.u32 %s3395_s21, 4  ;;  %p3278_p0 = scmp.ne.s32.totalorder %s4366_s1, %s3277_s25  ;;  %s33_s22 = int_to_ptr.vmem [resolvable:$true] %s32_s22 }
   0x5   :  { %p3281_p1 = scmp.lt.u32.totalorder %s3277_s25, %s4366_s1 }
   0x7   :  { %p3283_p2 = pnand %p3281_p1, %p3278_p0 }
   0x9   :  { %3286 = shalt.err (!%p3283_p2)
}
   0xa   :  { %s3287_s30 = scalar_lea.vmem %s33_s22, 13824  ;;  %p3292_p4 = scmp.lt.s32.totalorder %s33_s22, %s33_s22 }
   0xb   :  { %p3288_p3 = scmp.ne.s32.totalorder %s33_s22, %s3287_s30  ;;  %p3293_p5 = scmp.lt.s32.totalorder %s3287_s30, %s3287_s30 }
   0xd   :  { %p3294_p6 = por %p3293_p5, %p3292_p4 }
   0xf   :  { %p3295_p7 = pnand %p3294_p6, %p3288_p3 }
  0x11   :  { %3298 = shalt.err (!%p3295_p7)
}
  0x12   :  { %s3396_s7 = smov 1152   ;;  %s3397_s8 = smov 72  }
  0x13   :  { %38 = dma.hbm_to_vmem [thread:$0]  %s4366_s1, 13824, %s33_s22, [#allocation6], %s3396_s7, %s3396_s7, %s3397_s8  }
  0x14   :  { %s3398_s11 = smov [#allocation2]   ;;  %s3299_s15 = scalar_lea.hbm %s4365_s0, 384 }
  0x15   :  { %s20_s12 = sshll.u32 %s3398_s11, 4  ;;  %p3300_p8 = scmp.ne.s32.totalorder %s4365_s0, %s3299_s15  ;;  %s21_s12 = int_to_ptr.vmem [resolvable:$true] %s20_s12 }
  0x16   :  { %p3303_p9 = scmp.lt.u32.totalorder %s3299_s15, %s4365_s0 }
  0x18   :  { %p3305_p10 = pnand %p3303_p9, %p3300_p8 }
  0x1a   :  { %3308 = shalt.err (!%p3305_p10)
}
  0x1b   :  { %s3309_s20 = scalar_lea.vmem %s21_s12, 384  ;;  %p3314_p12 = scmp.lt.s32.totalorder %s21_s12, %s21_s12 }
  0x1c   :  { %p3310_p11 = scmp.ne.s32.totalorder %s21_s12, %s3309_s20  ;;  %p3315_p13 = scmp.lt.s32.totalorder %s3309_s20, %s3309_s20 }
  0x1e   :  { %p3316_p0 = por %p3315_p13, %p3314_p12 }
  0x20   :  { %p3317_p1 = pnand %p3316_p0, %p3310_p11 }
  0x22   :  { %3320 = shalt.err (!%p3317_p1)
}
  0x23   :  { %s3399_s1 = smov 192   ;;  %s3400_s21 = smov 12  }
  0x24   :  { %26 = dma.hbm_to_vmem [thread:$0]  %s4365_s0, 384, %s21_s12, [#allocation3], %s3399_s1, %s3399_s1, %s3400_s21  }
  0x25   :  { %s3401_s24 = smov [#allocation7]   ;;  %s3402_s26 = smov [#allocation8]  }
  0x26   :  { %s45_s25 = sshll.u32 %s3401_s24, 4  ;;  %s54_s27 = sshll.u32 %s3402_s26, 4  ;;  %s46_s25 = int_to_ptr.vmem [resolvable:$true] %s45_s25  ;;  %s3469_s27 = int_to_ptr.vmem [resolvable:$true] %s54_s27 }
  0x27   :  { %s3321_s30 = scalar_lea.hbm %s4367_s2, 144 }
  0x28   :  { %p3322_p2 = scmp.ne.s32.totalorder %s4367_s2, %s3321_s30  ;;  %p3325_p3 = scmp.lt.u32.totalorder %s3321_s30, %s4367_s2 }
  0x2a   :  { %p3327_p4 = pnand %p3325_p3, %p3322_p2 }
  0x2c   :  { %3330 = shalt.err (!%p3327_p4)
}
  0x2d   :  { %s3331_s0 = scalar_lea.vmem %s46_s25, 144  ;;  %s3335_s11 = scalar_lea.vmem %s46_s25, 160 }
  0x2e   :  { %p3332_p5 = scmp.ne.s32.totalorder %s46_s25, %s3331_s0  ;;  %p3336_p6 = scmp.lt.s32.totalorder %s46_s25, %s46_s25 }
  0x2f   :  { %p3337_p7 = scmp.lt.s32.totalorder %s3335_s11, %s3331_s0 }
  0x31   :  { %p3338_p8 = por %p3337_p7, %p3336_p6 }
  0x33   :  { %p3339_p9 = pnand %p3338_p8, %p3332_p5 }
  0x35   :  { %3342 = shalt.err (!%p3339_p9)
}
  0x36   :  { %48 = dma.hbm_to_vmem [thread:$0]  %s4367_s2, 144, %s46_s25, [#allocation6]  }
  0x37   :  { %s3343_s16 = scalar_lea.hbm %s4368_s3, 4608 }
  0x38   :  { %p3344_p10 = scmp.ne.s32.totalorder %s4368_s3, %s3343_s16  ;;  %p3347_p11 = scmp.lt.u32.totalorder %s3343_s16, %s4368_s3 }
  0x3a   :  { %p3349_p12 = pnand %p3347_p11, %p3344_p10 }
  0x3c   :  { %3352 = shalt.err (!%p3349_p12)
}
  0x3d   :  { %s3353_s1 = scalar_lea.vmem %s3469_s27, 4608  ;;  %p3358_p0 = scmp.lt.s32.totalorder %s3469_s27, %s3469_s27 }
  0x3e   :  { %p3354_p13 = scmp.ne.s32.totalorder %s3469_s27, %s3353_s1  ;;  %p3359_p1 = scmp.lt.s32.totalorder %s3353_s1, %s3353_s1 }
  0x40   :  { %p3360_p2 = por %p3359_p1, %p3358_p0 }
  0x42   :  { %p3361_p3 = pnand %p3360_p2, %p3354_p13 }
  0x44   :  { %3364 = shalt.err (!%p3361_p3)
}
  0x45   :  { %s3403_s2 = smov 384   ;;  %s3404_s21 = smov 24  }
  0x46   :  { %60 = dma.hbm_to_vmem [thread:$0]  %s4368_s3, 4608, %s3469_s27, [#allocation9], %s3403_s2, %s3403_s2, %s3404_s21  }
  0x47   :  { %3387 = dma.done.wait [#allocation3], 384  }
  0x48   :  { %3388 = vsyncadd [#allocation3], 4294966912 }
  0x49   :  { %3389 = dma.done.wait [#allocation6], 13968  }
  0x4a   :  { %3390 = vsyncadd [#allocation6], 4294953328 }
  0x4b   :  { %3391 = dma.done.wait [#allocation9], 4608  }
  0x4c   :  { %3392 = vsyncadd [#allocation9], 4294962688  ;;  %v79_v0 = vld [vmem:[#allocation5 + $0x8] sm:$0xff]  ;;  %v81_v1 = vld [vmem:[#allocation5 + $0x18] sm:$0xff]  ;;  %vm3407_vm0 = vmmov 0   ;;  %vm1033_vm1 = vcmask 523264  }
  0x4d   :  { %v78_v2 = vld [vmem:[#allocation5] sm:$0xff]  ;;  %v187_v3 = vunpack.c.l.s8.bf16 %v79_v0  ;;  %v196_v4 = vunpack.c.h.s8.bf16 %v79_v0  ;;  %v189_v5 = vunpack.c.l.s8.bf16 %v81_v1  ;;  %v198_v6 = vunpack.c.h.s8.bf16 %v81_v1  ;;  %v80_v7 = vld [vmem:[#allocation5 + $0x10] sm:$0xff]  ;;  %v87_v16 = vld [vmem:[#allocation5 + $0x48] sm:$0xff]  ;;  %s3408_s3 = smov 64  }
  0x4e   :  { %v186_v8 = vunpack.c.l.s8.bf16 %v78_v2  ;;  %v188_v9 = vunpack.c.l.s8.bf16 %v80_v7  ;;  %v88_v10 = vld [vmem:[#allocation5 + $0x50] sm:$0xff]  ;;  %v90_v11 = vld [vmem:[#allocation5 + $0x60] sm:$0xff]  ;;  %v195_v12 = vunpack.c.h.s8.bf16 %v78_v2  ;;  %v197_v13 = vunpack.c.h.s8.bf16 %v80_v7  ;;  %v89_v17 = vld [vmem:[#allocation5 + $0x58] sm:$0xff] }
  0x4f   :  { %532 = vmatprep.subr.bf16.mxu0 %v187_v3  ;;  %618 = vmatprep.subr.bf16.mxu1 %v189_v5  ;;  %v205_v14 = vunpack.c.l.s8.bf16 %v88_v10  ;;  %v207_v15 = vunpack.c.l.s8.bf16 %v90_v11  ;;  %v204_v18 = vunpack.c.l.s8.bf16 %v87_v16  ;;  %v206_v19 = vunpack.c.l.s8.bf16 %v89_v17  ;;  %v97_v22 = vld [vmem:[#allocation5 + $0x98] sm:$0xff]  ;;  %v99_v23 = vld [vmem:[#allocation5 + $0xa8] sm:$0xff]  ;;  %v96_v29 = vld [vmem:[#allocation5 + $0x90] sm:$0xff] }
  0x50   :  { %533 = vmatpush1.bf16.msra.mxu0 %v186_v8  ;;  %619 = vmatpush1.bf16.msra.mxu1 %v188_v9  ;;  %v214_v20 = vunpack.c.h.s8.bf16 %v88_v10  ;;  %v216_v21 = vunpack.c.h.s8.bf16 %v90_v11  ;;  %v3503_v24 = vld [vmem:[#allocation2 + $0x4] ss:$12 sps:$4 sm:$0xff]   ;;  %v213_v25 = vunpack.c.h.s8.bf16 %v87_v16  ;;  %v215_v26 = vunpack.c.h.s8.bf16 %v89_v17  ;;  %v98_v30 = vld [vmem:[#allocation5 + $0xa0] sm:$0xff]  ;;  %v108_v36 = vld [vmem:[#allocation5 + $0xf0] sm:$0xff] }
  0x51   :  { %534 = vmatprep.subr.bf16.mxu0 %v196_v4  ;;  %620 = vmatprep.subr.bf16.mxu1 %v198_v6  ;;  %v223_v27 = vunpack.c.l.s8.bf16 %v97_v22  ;;  %v225_v28 = vunpack.c.l.s8.bf16 %v99_v23  ;;  %v222_v31 = vunpack.c.l.s8.bf16 %v96_v29  ;;  %v224_v32 = vunpack.c.l.s8.bf16 %v98_v30  ;;  %v106_v35 = vld [vmem:[#allocation5 + $0xe0] sm:$0xff]  ;;  %v105_v41 = vld [vmem:[#allocation5 + $0xd8] sm:$0xff]  ;;  %v107_v42 = vld [vmem:[#allocation5 + $0xe8] sm:$0xff] }
  0x52   :  { %564 = vmatprep.mubr.bf16.mxu0 %v3503_v24  ;;  %650 = vmatprep.mubr.bf16.mxu1 %v3503_v24  ;;  %v232_v33 = vunpack.c.h.s8.bf16 %v97_v22  ;;  %v234_v34 = vunpack.c.h.s8.bf16 %v99_v23  ;;  %v231_v37 = vunpack.c.h.s8.bf16 %v96_v29  ;;  %v233_v38 = vunpack.c.h.s8.bf16 %v98_v30  ;;  %v115_v47 = vld [vmem:[#allocation5 + $0x128] sm:$0xff]  ;;  %v117_v48 = vld [vmem:[#allocation5 + $0x138] sm:$0xff]  ;;  %v114_v53 = vld [vmem:[#allocation5 + $0x120] sm:$0xff] }
  0x53   :  { %v241_v39 = vunpack.c.l.s8.bf16 %v106_v35  ;;  %v243_v40 = vunpack.c.l.s8.bf16 %v108_v36  ;;  %v240_v43 = vunpack.c.l.s8.bf16 %v105_v41  ;;  %v242_v44 = vunpack.c.l.s8.bf16 %v107_v42  ;;  %v116_v54 = vld [vmem:[#allocation5 + $0x130] sm:$0xff]  ;;  %v126_v60 = vld [vmem:[#allocation5 + $0x180] sm:$0xff]  ;;  %v123_v1 = vld [vmem:[#allocation5 + $0x168] sm:$0xff] }
  0x54   :  { %535 = vmatpush1.bf16.msra.mxu0 %v195_v12  ;;  %621 = vmatpush1.bf16.msra.mxu1 %v197_v13  ;;  %v250_v45 = vunpack.c.h.s8.bf16 %v106_v35  ;;  %v252_v46 = vunpack.c.h.s8.bf16 %v108_v36  ;;  %v249_v49 = vunpack.c.h.s8.bf16 %v105_v41  ;;  %v251_v50 = vunpack.c.h.s8.bf16 %v107_v42  ;;  %v124_v59 = vld [vmem:[#allocation5 + $0x170] sm:$0xff]  ;;  %v125_v2 = vld [vmem:[#allocation5 + $0x178] sm:$0xff]  ;;  %v135_v8 = vld [vmem:[#allocation5 + $0x1c8] sm:$0xff] }
  0x55   :  { %536 = vmatprep.subr.bf16.mxu0 %v205_v14  ;;  %622 = vmatprep.subr.bf16.mxu1 %v207_v15  ;;  %v259_v51 = vunpack.c.l.s8.bf16 %v115_v47  ;;  %v261_v52 = vunpack.c.l.s8.bf16 %v117_v48  ;;  %v258_v55 = vunpack.c.l.s8.bf16 %v114_v53  ;;  %v260_v56 = vunpack.c.l.s8.bf16 %v116_v54  ;;  %v133_v7 = vld [vmem:[#allocation5 + $0x1b8] sm:$0xff]  ;;  %v132_v13 = vld [vmem:[#allocation5 + $0x1b0] sm:$0xff]  ;;  %v134_v14 = vld [vmem:[#allocation5 + $0x1c0] sm:$0xff] }
  0x56   :  { %v268_v57 = vunpack.c.h.s8.bf16 %v115_v47  ;;  %v270_v58 = vunpack.c.h.s8.bf16 %v117_v48  ;;  %v267_v61 = vunpack.c.h.s8.bf16 %v114_v53  ;;  %v269_v62 = vunpack.c.h.s8.bf16 %v116_v54 }
  0x57   :  { %v277_v63 = vunpack.c.l.s8.bf16 %v124_v59  ;;  %v279_v0 = vunpack.c.l.s8.bf16 %v126_v60  ;;  %v276_v3 = vunpack.c.l.s8.bf16 %v123_v1  ;;  %v278_v4 = vunpack.c.l.s8.bf16 %v125_v2 }
  0x58   :  { %537 = vmatpush1.bf16.msra.mxu0 %v204_v18  ;;  %623 = vmatpush1.bf16.msra.mxu1 %v206_v19  ;;  %v286_v5 = vunpack.c.h.s8.bf16 %v124_v59  ;;  %v288_v6 = vunpack.c.h.s8.bf16 %v126_v60  ;;  %v285_v9 = vunpack.c.h.s8.bf16 %v123_v1  ;;  %v287_v10 = vunpack.c.h.s8.bf16 %v125_v2  ;;  %v142_v19 = vld [vmem:[#allocation5 + $0x200] sm:$0xff]  ;;  %v171_v59 = vld [vmem:[#allocation5 + $0x2e8] sm:$0xff] }
  0x59   :  { %538 = vmatprep.subr.bf16.mxu0 %v214_v20  ;;  %624 = vmatprep.subr.bf16.mxu1 %v216_v21  ;;  %v295_v11 = vunpack.c.l.s8.bf16 %v133_v7  ;;  %v297_v12 = vunpack.c.l.s8.bf16 %v135_v8  ;;  %v294_v15 = vunpack.c.l.s8.bf16 %v132_v13  ;;  %v296_v16 = vunpack.c.l.s8.bf16 %v134_v14  ;;  %v144_v20 = vld [vmem:[#allocation5 + $0x210] sm:$0xff]  ;;  %v170_v1 = vld [vmem:[#allocation5 + $0x2e0] sm:$0xff] }
  0x5a   :  { %v304_v17 = vunpack.c.h.s8.bf16 %v133_v7  ;;  %v306_v18 = vunpack.c.h.s8.bf16 %v135_v8  ;;  %v303_v21 = vunpack.c.h.s8.bf16 %v132_v13  ;;  %v305_v22 = vunpack.c.h.s8.bf16 %v134_v14  ;;  %v180_v7 = vld [vmem:[#allocation5 + $0x330] sm:$0xff]  ;;  %v179_v13 = vld [vmem:[#allocation5 + $0x328] sm:$0xff] }
  0x5b   :  { %v313_v23 = vunpack.c.l.s8.bf16 %v142_v19  ;;  %v322_v30 = vunpack.c.h.s8.bf16 %v142_v19  ;;  %v4421_v53 = vmov 0   ;;  %v85_v19 = vld [vmem:[#allocation5 + $0x38] sm:$0xff]  ;;  %vm1097_vm2 = vcmask 1043456  }
  0x5c   :  { %539 = vmatpush1.bf16.msra.mxu0 %v213_v25  ;;  %625 = vmatpush1.bf16.msra.mxu1 %v215_v26  ;;  %v315_v25 = vunpack.c.l.s8.bf16 %v144_v20  ;;  %v141_v26 = vld [vmem:[#allocation5 + $0x1f8] sm:$0xff]  ;;  %vm1081_vm4 = vcmask 64512  }
  0x5d   :  { %540 = vmatprep.subr.bf16.mxu0 %v223_v27  ;;  %626 = vmatprep.subr.bf16.mxu1 %v225_v28  ;;  %v143_v27 = vld [vmem:[#allocation5 + $0x208] sm:$0xff]  ;;  %v312_v28 = vunpack.c.l.s8.bf16 %v141_v26 }
  0x5e   :  { %v314_v29 = vunpack.c.l.s8.bf16 %v143_v27  ;;  %v323_v35 = vunpack.c.h.s8.bf16 %v143_v27  ;;  %v3513_v27 = vld [vmem:[#allocation2 + $0x8] ss:$12 sps:$4 sm:$0xff]  }
  0x60   :  { %541 = vmatpush1.bf16.msra.mxu0 %v222_v31  ;;  %627 = vmatpush1.bf16.msra.mxu1 %v224_v32  ;;  %v324_v31 = vunpack.c.h.s8.bf16 %v144_v20  ;;  %v151_v32 = vld [vmem:[#allocation5 + $0x248] sm:$0xff] }
  0x61   :  { %542 = vmatprep.subr.bf16.mxu0 %v232_v33  ;;  %628 = vmatprep.subr.bf16.mxu1 %v234_v34  ;;  %v153_v33 = vld [vmem:[#allocation5 + $0x258] sm:$0xff]  ;;  %v321_v34 = vunpack.c.h.s8.bf16 %v141_v26  ;;  %v331_v36 = vunpack.c.l.s8.bf16 %v151_v32  ;;  %v84_v26 = vld [vmem:[#allocation5 + $0x30] sm:$0xff] }
  0x64   :  { %543 = vmatpush1.bf16.msra.mxu0 %v231_v37  ;;  %629 = vmatpush1.bf16.msra.mxu1 %v233_v38  ;;  %v333_v37 = vunpack.c.l.s8.bf16 %v153_v33  ;;  %v150_v38 = vld [vmem:[#allocation5 + $0x240] sm:$0xff] }
  0x65   :  { %544 = vmatprep.subr.bf16.mxu0 %v241_v39  ;;  %630 = vmatprep.subr.bf16.mxu1 %v243_v40  ;;  %v152_v39 = vld [vmem:[#allocation5 + $0x250] sm:$0xff]  ;;  %v330_v41 = vunpack.c.l.s8.bf16 %v150_v38  ;;  %v339_v47 = vunpack.c.h.s8.bf16 %v150_v38 }
  0x66   :  { %v3507_v40 = vld [vmem:[#allocation2] ss:$12 sps:$4 sm:$0xff]   ;;  %v332_v42 = vunpack.c.l.s8.bf16 %v152_v39  ;;  %v341_v48 = vunpack.c.h.s8.bf16 %v152_v39  ;;  %v93_v39 = vld [vmem:[#allocation5 + $0x78] sm:$0xff] }
  0x68   :  { %545 = vmatpush1.bf16.msra.mxu0 %v240_v43  ;;  %631 = vmatpush1.bf16.msra.mxu1 %v242_v44  ;;  %v340_v43 = vunpack.c.h.s8.bf16 %v151_v32  ;;  %v342_v44 = vunpack.c.h.s8.bf16 %v153_v33  ;;  %v92_v32 = vld [vmem:[#allocation5 + $0x70] sm:$0xff]  ;;  %v94_v33 = vld [vmem:[#allocation5 + $0x80] sm:$0xff] }
  0x69   :  { %546 = vmatprep.subr.bf16.mxu0 %v250_v45  ;;  %632 = vmatprep.subr.bf16.mxu1 %v252_v46  ;;  %v160_v45 = vld [vmem:[#allocation5 + $0x290] sm:$0xff]  ;;  %v162_v46 = vld [vmem:[#allocation5 + $0x2a0] sm:$0xff]  ;;  %v211_v38 = vunpack.c.l.s8.bf16 %v94_v33 }
  0x6c   :  { %547 = vmatpush1.bf16.msra.mxu0 %v249_v49  ;;  %633 = vmatpush1.bf16.msra.mxu1 %v251_v50  ;;  %v349_v49 = vunpack.c.l.s8.bf16 %v160_v45  ;;  %v351_v50 = vunpack.c.l.s8.bf16 %v162_v46 }
  0x6d   :  { %548 = vmatprep.subr.bf16.mxu0 %v259_v51  ;;  %634 = vmatprep.subr.bf16.mxu1 %v261_v52  ;;  %v159_v51 = vld [vmem:[#allocation5 + $0x288] sm:$0xff]  ;;  %v161_v52 = vld [vmem:[#allocation5 + $0x298] sm:$0xff] }
  0x6e   :  { %v348_v54 = vunpack.c.l.s8.bf16 %v159_v51  ;;  %v357_v60 = vunpack.c.h.s8.bf16 %v159_v51 }
  0x70   :  { %549 = vmatpush1.bf16.msra.mxu0 %v258_v55  ;;  %635 = vmatpush1.bf16.msra.mxu1 %v260_v56  ;;  %v350_v55 = vunpack.c.l.s8.bf16 %v161_v52  ;;  %v358_v56 = vunpack.c.h.s8.bf16 %v160_v45  ;;  %v101_v45 = vld [vmem:[#allocation5 + $0xb8] sm:$0xff] }
  0x71   :  { %550 = vmatprep.subr.bf16.mxu0 %v268_v57  ;;  %636 = vmatprep.subr.bf16.mxu1 %v270_v58  ;;  %v360_v57 = vunpack.c.h.s8.bf16 %v162_v46  ;;  %v169_v58 = vld [vmem:[#allocation5 + $0x2d8] sm:$0xff]  ;;  %v103_v46 = vld [vmem:[#allocation5 + $0xc8] sm:$0xff] }
  0x72   :  { %v229_v51 = vunpack.c.l.s8.bf16 %v103_v46 }
  0x74   :  { %551 = vmatpush1.bf16.msra.mxu0 %v267_v61  ;;  %637 = vmatpush1.bf16.msra.mxu1 %v269_v62  ;;  %v359_v61 = vunpack.c.h.s8.bf16 %v161_v52  ;;  %v367_v62 = vunpack.c.l.s8.bf16 %v169_v58  ;;  %v102_v52 = vld [vmem:[#allocation5 + $0xc0] sm:$0xff] }
  0x75   :  { %552 = vmatprep.subr.bf16.mxu0 %v277_v63  ;;  %638 = vmatprep.subr.bf16.mxu1 %v279_v0  ;;  %v369_v63 = vunpack.c.l.s8.bf16 %v171_v59  ;;  %v168_v0 = vld [vmem:[#allocation5 + $0x2d0] sm:$0xff] }
  0x76   :  { %v366_v2 = vunpack.c.l.s8.bf16 %v168_v0  ;;  %v375_v8 = vunpack.c.h.s8.bf16 %v168_v0 }
  0x78   :  { %553 = vmatpush1.bf16.msra.mxu0 %v276_v3  ;;  %639 = vmatpush1.bf16.msra.mxu1 %v278_v4  ;;  %v368_v3 = vunpack.c.l.s8.bf16 %v170_v1  ;;  %v376_v4 = vunpack.c.h.s8.bf16 %v169_v58  ;;  %v110_v58 = vld [vmem:[#allocation5 + $0x100] sm:$0xff] }
  0x79   :  { %554 = vmatprep.subr.bf16.mxu0 %v286_v5  ;;  %640 = vmatprep.subr.bf16.mxu1 %v288_v6  ;;  %v378_v5 = vunpack.c.h.s8.bf16 %v171_v59  ;;  %v178_v6 = vld [vmem:[#allocation5 + $0x320] sm:$0xff]  ;;  %v112_v59 = vld [vmem:[#allocation5 + $0x110] sm:$0xff] }
  0x7a   :  { %v247_v0 = vunpack.c.l.s8.bf16 %v112_v59 }
  0x7c   :  { %555 = vmatpush1.bf16.msra.mxu0 %v285_v9  ;;  %641 = vmatpush1.bf16.msra.mxu1 %v287_v10  ;;  %v377_v9 = vunpack.c.h.s8.bf16 %v170_v1  ;;  %v385_v10 = vunpack.c.l.s8.bf16 %v178_v6  ;;  %v111_v1 = vld [vmem:[#allocation5 + $0x108] sm:$0xff] }
  0x7d   :  { %556 = vmatprep.subr.bf16.mxu0 %v295_v11  ;;  %642 = vmatprep.subr.bf16.mxu1 %v297_v12  ;;  %v387_v11 = vunpack.c.l.s8.bf16 %v180_v7  ;;  %v177_v12 = vld [vmem:[#allocation5 + $0x318] sm:$0xff] }
  0x7e   :  { %v384_v14 = vunpack.c.l.s8.bf16 %v177_v12  ;;  %v393_v20 = vunpack.c.h.s8.bf16 %v177_v12 }
  0x80   :  { %557 = vmatpush1.bf16.msra.mxu0 %v294_v15  ;;  %643 = vmatpush1.bf16.msra.mxu1 %v296_v16  ;;  %v386_v15 = vunpack.c.l.s8.bf16 %v179_v13  ;;  %v394_v16 = vunpack.c.h.s8.bf16 %v178_v6  ;;  %v119_v6 = vld [vmem:[#allocation5 + $0x148] sm:$0xff] }
  0x81   :  { %558 = vmatprep.subr.bf16.mxu0 %v304_v17  ;;  %644 = vmatprep.subr.bf16.mxu1 %v306_v18  ;;  %v396_v17 = vunpack.c.h.s8.bf16 %v180_v7  ;;  %v83_v18 = vld [vmem:[#allocation5 + $0x28] sm:$0xff]  ;;  %v121_v7 = vld [vmem:[#allocation5 + $0x158] sm:$0xff] }
  0x82   :  { %v265_v12 = vunpack.c.l.s8.bf16 %v121_v7 }
  0x84   :  { %559 = vmatpush1.bf16.msra.mxu0 %v303_v21  ;;  %645 = vmatpush1.bf16.msra.mxu1 %v305_v22  ;;  %v395_v21 = vunpack.c.h.s8.bf16 %v179_v13  ;;  %v191_v22 = vunpack.c.l.s8.bf16 %v83_v18  ;;  %v120_v13 = vld [vmem:[#allocation5 + $0x150] sm:$0xff] }
  0x85   :  { %560 = vmatprep.subr.bf16.mxu0 %v313_v23  ;;  %646 = vmatprep.subr.bf16.mxu1 %v315_v25  ;;  %v82_v23 = vld [vmem:[#allocation5 + $0x20] sm:$0xff]  ;;  %v193_v25 = vunpack.c.l.s8.bf16 %v85_v19 }
  0x88   :  { %561 = vmatpush1.bf16.msra.mxu0 %v312_v28  ;;  %647 = vmatpush1.bf16.msra.mxu1 %v314_v29  ;;  %v190_v28 = vunpack.c.l.s8.bf16 %v82_v23  ;;  %v192_v29 = vunpack.c.l.s8.bf16 %v84_v26 }
  0x89   :  { %562 = vmatprep.subr.bf16.mxu0 %v322_v30  ;;  %648 = vmatprep.subr.bf16.mxu1 %v324_v31  ;;  %v200_v30 = vunpack.c.h.s8.bf16 %v83_v18  ;;  %v202_v31 = vunpack.c.h.s8.bf16 %v85_v19  ;;  %v128_v18 = vld [vmem:[#allocation5 + $0x190] sm:$0xff]  ;;  %v130_v19 = vld [vmem:[#allocation5 + $0x1a0] sm:$0xff] }
  0x8c   :  { %563 = vmatpush1.bf16.msra.mxu0 %v321_v34  ;;  %649 = vmatpush1.bf16.msra.mxu1 %v323_v35  ;;  %v199_v34 = vunpack.c.h.s8.bf16 %v82_v23  ;;  %v201_v35 = vunpack.c.h.s8.bf16 %v84_v26  ;;  %v127_v23 = vld [vmem:[#allocation5 + $0x188] sm:$0xff]  ;;  %v129_v26 = vld [vmem:[#allocation5 + $0x198] sm:$0xff] }
  0x8d   :  { %575 = vmatprep.subr.bf16.mxu0 %v331_v36  ;;  %661 = vmatprep.subr.bf16.mxu1 %v333_v37  ;;  %v209_v36 = vunpack.c.l.s8.bf16 %v92_v32  ;;  %v91_v37 = vld [vmem:[#allocation5 + $0x68] sm:$0xff] }
  0x8f   :  { %565 = vmatmul.mubr.bf16.vlgmr.msra.gmra.mrb[0].mxu0 %v3507_v40  ;;  %651 = vmatmul.mubr.bf16.vlgmr.msra.gmra.mrb[0].mxu1 %v3507_v40 }
  0x90   :  { %576 = vmatpush1.bf16.msra.mxu0 %v330_v41  ;;  %662 = vmatpush1.bf16.msra.mxu1 %v332_v42  ;;  %v208_v41 = vunpack.c.l.s8.bf16 %v91_v37  ;;  %v210_v42 = vunpack.c.l.s8.bf16 %v93_v39 }
  0x91   :  { %577 = vmatprep.subr.bf16.mxu0 %v340_v43  ;;  %663 = vmatprep.subr.bf16.mxu1 %v342_v44  ;;  %v218_v43 = vunpack.c.h.s8.bf16 %v92_v32  ;;  %v220_v44 = vunpack.c.h.s8.bf16 %v94_v33  ;;  %v137_v32 = vld [vmem:[#allocation5 + $0x1d8] sm:$0xff]  ;;  %v139_v33 = vld [vmem:[#allocation5 + $0x1e8] sm:$0xff] }
  0x92   :  { %607 = vmatprep.mubr.bf16.mxu0 %v4421_v53  ;;  %693 = vmatprep.mubr.bf16.mxu1 %v4421_v53 }
  0x94   :  { %578 = vmatpush1.bf16.msra.mxu0 %v339_v47  ;;  %664 = vmatpush1.bf16.msra.mxu1 %v341_v48  ;;  %v217_v47 = vunpack.c.h.s8.bf16 %v91_v37  ;;  %v219_v48 = vunpack.c.h.s8.bf16 %v93_v39  ;;  %v136_v37 = vld [vmem:[#allocation5 + $0x1d0] sm:$0xff]  ;;  %v138_v39 = vld [vmem:[#allocation5 + $0x1e0] sm:$0xff] }
  0x95   :  { %579 = vmatprep.subr.bf16.mxu0 %v349_v49  ;;  %665 = vmatprep.subr.bf16.mxu1 %v351_v50  ;;  %v227_v49 = vunpack.c.l.s8.bf16 %v101_v45  ;;  %v100_v50 = vld [vmem:[#allocation5 + $0xb0] sm:$0xff] }
  0x98   :  { %580 = vmatpush1.bf16.msra.mxu0 %v348_v54  ;;  %666 = vmatpush1.bf16.msra.mxu1 %v350_v55  ;;  %v226_v54 = vunpack.c.l.s8.bf16 %v100_v50  ;;  %v228_v55 = vunpack.c.l.s8.bf16 %v102_v52 }
  0x99   :  { %581 = vmatprep.subr.bf16.mxu0 %v358_v56  ;;  %667 = vmatprep.subr.bf16.mxu1 %v360_v57  ;;  %v236_v56 = vunpack.c.h.s8.bf16 %v101_v45  ;;  %v238_v57 = vunpack.c.h.s8.bf16 %v103_v46  ;;  %v146_v45 = vld [vmem:[#allocation5 + $0x220] sm:$0xff]  ;;  %v148_v46 = vld [vmem:[#allocation5 + $0x230] sm:$0xff] }
  0x9c   :  { %582 = vmatpush1.bf16.msra.mxu0 %v357_v60  ;;  %668 = vmatpush1.bf16.msra.mxu1 %v359_v61  ;;  %v235_v60 = vunpack.c.h.s8.bf16 %v100_v50  ;;  %v237_v61 = vunpack.c.h.s8.bf16 %v102_v52  ;;  %v145_v50 = vld [vmem:[#allocation5 + $0x218] sm:$0xff]  ;;  %v147_v52 = vld [vmem:[#allocation5 + $0x228] sm:$0xff] }
  0x9d   :  { %583 = vmatprep.subr.bf16.mxu0 %v367_v62  ;;  %669 = vmatprep.subr.bf16.mxu1 %v369_v63  ;;  %v245_v62 = vunpack.c.l.s8.bf16 %v110_v58  ;;  %v109_v63 = vld [vmem:[#allocation5 + $0xf8] sm:$0xff] }
  0xa0   :  { %584 = vmatpush1.bf16.msra.mxu0 %v366_v2  ;;  %670 = vmatpush1.bf16.msra.mxu1 %v368_v3  ;;  %v244_v2 = vunpack.c.l.s8.bf16 %v109_v63  ;;  %v246_v3 = vunpack.c.l.s8.bf16 %v111_v1 }
  0xa1   :  { %585 = vmatprep.subr.bf16.mxu0 %v376_v4  ;;  %671 = vmatprep.subr.bf16.mxu1 %v378_v5  ;;  %v254_v4 = vunpack.c.h.s8.bf16 %v110_v58  ;;  %v256_v5 = vunpack.c.h.s8.bf16 %v112_v59  ;;  %v155_v58 = vld [vmem:[#allocation5 + $0x268] sm:$0xff]  ;;  %v157_v59 = vld [vmem:[#allocation5 + $0x278] sm:$0xff] }
  0xa4   :  { %586 = vmatpush1.bf16.msra.mxu0 %v375_v8  ;;  %672 = vmatpush1.bf16.msra.mxu1 %v377_v9  ;;  %v253_v8 = vunpack.c.h.s8.bf16 %v109_v63  ;;  %v255_v9 = vunpack.c.h.s8.bf16 %v111_v1  ;;  %v154_v63 = vld [vmem:[#allocation5 + $0x260] sm:$0xff]  ;;  %v156_v1 = vld [vmem:[#allocation5 + $0x270] sm:$0xff] }
  0xa5   :  { %587 = vmatprep.subr.bf16.mxu0 %v385_v10  ;;  %673 = vmatprep.subr.bf16.mxu1 %v387_v11  ;;  %v263_v10 = vunpack.c.l.s8.bf16 %v119_v6  ;;  %v118_v11 = vld [vmem:[#allocation5 + $0x140] sm:$0xff] }
  0xa8   :  { %588 = vmatpush1.bf16.msra.mxu0 %v384_v14  ;;  %674 = vmatpush1.bf16.msra.mxu1 %v386_v15  ;;  %v262_v14 = vunpack.c.l.s8.bf16 %v118_v11  ;;  %v264_v15 = vunpack.c.l.s8.bf16 %v120_v13 }
  0xa9   :  { %589 = vmatprep.subr.bf16.mxu0 %v394_v16  ;;  %675 = vmatprep.subr.bf16.mxu1 %v396_v17  ;;  %v272_v16 = vunpack.c.h.s8.bf16 %v119_v6  ;;  %v274_v17 = vunpack.c.h.s8.bf16 %v121_v7  ;;  %v346_v6 = vunpack.c.h.s8.bf16 %v157_v59  ;;  %v166_v7 = vld [vmem:[#allocation5 + $0x2c0] sm:$0xff] }
  0xac   :  { %590 = vmatpush1.bf16.msra.mxu0 %v393_v20  ;;  %676 = vmatpush1.bf16.msra.mxu1 %v395_v21  ;;  %v271_v20 = vunpack.c.h.s8.bf16 %v118_v11  ;;  %v273_v21 = vunpack.c.h.s8.bf16 %v120_v13  ;;  %v345_v11 = vunpack.c.h.s8.bf16 %v156_v1  ;;  %v165_v13 = vld [vmem:[#allocation5 + $0x2b8] sm:$0xff] }
  0xad   :  { %704 = vmatprep.subr.bf16.mxu0 %v191_v22  ;;  %790 = vmatprep.subr.bf16.mxu1 %v193_v25  ;;  %v281_v22 = vunpack.c.l.s8.bf16 %v128_v18  ;;  %v283_v25 = vunpack.c.l.s8.bf16 %v130_v19 }
  0xaf   :  { %608 = vmatmul.mubr.bf16.vlgmr.msra.gmra.mrb[0].mxu0 %v3513_v27  ;;  %694 = vmatmul.mubr.bf16.vlgmr.msra.gmra.mrb[0].mxu1 %v3513_v27 }
  0xb0   :  { %705 = vmatpush1.bf16.msra.mxu0 %v190_v28  ;;  %791 = vmatpush1.bf16.msra.mxu1 %v192_v29  ;;  %v280_v28 = vunpack.c.l.s8.bf16 %v127_v23  ;;  %v282_v29 = vunpack.c.l.s8.bf16 %v129_v26 }
  0xb1   :  { %706 = vmatprep.subr.bf16.mxu0 %v200_v30  ;;  %792 = vmatprep.subr.bf16.mxu1 %v202_v31  ;;  %v290_v30 = vunpack.c.h.s8.bf16 %v128_v18  ;;  %v292_v31 = vunpack.c.h.s8.bf16 %v130_v19  ;;  %v364_v18 = vunpack.c.h.s8.bf16 %v166_v7  ;;  %v175_v19 = vld [vmem:[#allocation5 + $0x308] sm:$0xff] }
  0xb2   :  { %736 = vmatprep.mubr.bf16.mxu0 %v3503_v24  ;;  %822 = vmatprep.mubr.bf16.mxu1 %v3503_v24 }
  0xb4   :  { %707 = vmatpush1.bf16.msra.mxu0 %v199_v34  ;;  %793 = vmatpush1.bf16.msra.mxu1 %v201_v35  ;;  %v289_v34 = vunpack.c.h.s8.bf16 %v127_v23  ;;  %v291_v35 = vunpack.c.h.s8.bf16 %v129_v26  ;;  %v363_v23 = vunpack.c.h.s8.bf16 %v165_v13  ;;  %v174_v26 = vld [vmem:[#allocation5 + $0x300] sm:$0xff] }
  0xb5   :  { %708 = vmatprep.subr.bf16.mxu0 %v209_v36  ;;  %794 = vmatprep.subr.bf16.mxu1 %v211_v38  ;;  %v299_v36 = vunpack.c.l.s8.bf16 %v137_v32  ;;  %v301_v38 = vunpack.c.l.s8.bf16 %v139_v33 }
  0xb8   :  { %709 = vmatpush1.bf16.msra.mxu0 %v208_v41  ;;  %795 = vmatpush1.bf16.msra.mxu1 %v210_v42  ;;  %v298_v41 = vunpack.c.l.s8.bf16 %v136_v37  ;;  %v300_v42 = vunpack.c.l.s8.bf16 %v138_v39 }
  0xb9   :  { %710 = vmatprep.subr.bf16.mxu0 %v218_v43  ;;  %796 = vmatprep.subr.bf16.mxu1 %v220_v44  ;;  %v308_v43 = vunpack.c.h.s8.bf16 %v137_v32  ;;  %v310_v44 = vunpack.c.h.s8.bf16 %v139_v33  ;;  %v382_v32 = vunpack.c.h.s8.bf16 %v175_v19  ;;  %v184_v33 = vld [vmem:[#allocation5 + $0x350] sm:$0xff] }
  0xbc   :  { %711 = vmatpush1.bf16.msra.mxu0 %v217_v47  ;;  %797 = vmatpush1.bf16.msra.mxu1 %v219_v48  ;;  %v307_v47 = vunpack.c.h.s8.bf16 %v136_v37  ;;  %v309_v48 = vunpack.c.h.s8.bf16 %v138_v39  ;;  %v381_v37 = vunpack.c.h.s8.bf16 %v174_v26  ;;  %v183_v39 = vld [vmem:[#allocation5 + $0x348] sm:$0xff] }
  0xbd   :  { %712 = vmatprep.subr.bf16.mxu0 %v227_v49  ;;  %798 = vmatprep.subr.bf16.mxu1 %v229_v51  ;;  %v317_v49 = vunpack.c.l.s8.bf16 %v146_v45  ;;  %v319_v51 = vunpack.c.l.s8.bf16 %v148_v46 }
  0xc0   :  { %713 = vmatpush1.bf16.msra.mxu0 %v226_v54  ;;  %799 = vmatpush1.bf16.msra.mxu1 %v228_v55  ;;  %v316_v54 = vunpack.c.l.s8.bf16 %v145_v50  ;;  %v318_v55 = vunpack.c.l.s8.bf16 %v147_v52 }
  0xc1   :  { %714 = vmatprep.subr.bf16.mxu0 %v236_v56  ;;  %800 = vmatprep.subr.bf16.mxu1 %v238_v57  ;;  %v326_v56 = vunpack.c.h.s8.bf16 %v146_v45  ;;  %v328_v57 = vunpack.c.h.s8.bf16 %v148_v46  ;;  %v122_v45 = vld [vmem:[#allocation5 + $0x160] sm:$0xff] }
  0xc4   :  { %715 = vmatpush1.bf16.msra.mxu0 %v235_v60  ;;  %801 = vmatpush1.bf16.msra.mxu1 %v237_v61  ;;  %v325_v60 = vunpack.c.h.s8.bf16 %v145_v50  ;;  %v327_v61 = vunpack.c.h.s8.bf16 %v147_v52  ;;  %v158_v50 = vld [vmem:[#allocation5 + $0x280] sm:$0xff] }
  0xc5   :  { %716 = vmatprep.subr.bf16.mxu0 %v245_v62  ;;  %802 = vmatprep.subr.bf16.mxu1 %v247_v0  ;;  %v335_v62 = vunpack.c.l.s8.bf16 %v155_v58  ;;  %v337_v0 = vunpack.c.l.s8.bf16 %v157_v59  ;;  %v338_v52 = vunpack.c.l.s8.bf16 %v158_v50 }
  0xc8   :  { %717 = vmatpush1.bf16.msra.mxu0 %v244_v2  ;;  %803 = vmatpush1.bf16.msra.mxu1 %v246_v3  ;;  %v334_v2 = vunpack.c.l.s8.bf16 %v154_v63  ;;  %v344_v3 = vunpack.c.h.s8.bf16 %v155_v58  ;;  %v347_v58 = vunpack.c.h.s8.bf16 %v158_v50 }
  0xc9   :  { %718 = vmatprep.subr.bf16.mxu0 %v254_v4  ;;  %804 = vmatprep.subr.bf16.mxu1 %v256_v5  ;;  %v336_v4 = vunpack.c.l.s8.bf16 %v156_v1  ;;  %v164_v5 = vld [vmem:[#allocation5 + $0x2b0] sm:$0xff] }
  0xca   :  { %v140_v1 = vld [vmem:[#allocation5 + $0x1f0] sm:$0xff] }
  0xcc   :  { %719 = vmatpush1.bf16.msra.mxu0 %v253_v8  ;;  %805 = vmatpush1.bf16.msra.mxu1 %v255_v9  ;;  %v343_v8 = vunpack.c.h.s8.bf16 %v154_v63  ;;  %v353_v9 = vunpack.c.l.s8.bf16 %v164_v5 }
  0xcd   :  { %720 = vmatprep.subr.bf16.mxu0 %v263_v10  ;;  %806 = vmatprep.subr.bf16.mxu1 %v265_v12  ;;  %v163_v10 = vld [vmem:[#allocation5 + $0x2a8] sm:$0xff]  ;;  %v355_v12 = vunpack.c.l.s8.bf16 %v166_v7 }
  0xd0   :  { %721 = vmatpush1.bf16.msra.mxu0 %v262_v14  ;;  %807 = vmatpush1.bf16.msra.mxu1 %v264_v15  ;;  %v352_v14 = vunpack.c.l.s8.bf16 %v163_v10  ;;  %v362_v15 = vunpack.c.h.s8.bf16 %v164_v5  ;;  %v176_v5 = vld [vmem:[#allocation5 + $0x310] sm:$0xff] }
  0xd1   :  { %722 = vmatprep.subr.bf16.mxu0 %v272_v16  ;;  %808 = vmatprep.subr.bf16.mxu1 %v274_v17  ;;  %v354_v16 = vunpack.c.l.s8.bf16 %v165_v13  ;;  %v173_v17 = vld [vmem:[#allocation5 + $0x2f8] sm:$0xff]  ;;  %v374_v7 = vunpack.c.l.s8.bf16 %v176_v5 }
  0xd2   :  { %v113_v13 = vld [vmem:[#allocation5 + $0x118] sm:$0xff] }
  0xd4   :  { %723 = vmatpush1.bf16.msra.mxu0 %v271_v20  ;;  %809 = vmatpush1.bf16.msra.mxu1 %v273_v21  ;;  %v361_v20 = vunpack.c.h.s8.bf16 %v163_v10  ;;  %v371_v21 = vunpack.c.l.s8.bf16 %v173_v17 }
  0xd5   :  { %724 = vmatprep.subr.bf16.mxu0 %v281_v22  ;;  %810 = vmatprep.subr.bf16.mxu1 %v283_v25  ;;  %v172_v22 = vld [vmem:[#allocation5 + $0x2f0] sm:$0xff]  ;;  %v373_v25 = vunpack.c.l.s8.bf16 %v175_v19 }
  0xd8   :  { %725 = vmatpush1.bf16.msra.mxu0 %v280_v28  ;;  %811 = vmatpush1.bf16.msra.mxu1 %v282_v29  ;;  %v370_v28 = vunpack.c.l.s8.bf16 %v172_v22  ;;  %v380_v29 = vunpack.c.h.s8.bf16 %v173_v17 }
  0xd9   :  { %726 = vmatprep.subr.bf16.mxu0 %v290_v30  ;;  %812 = vmatprep.subr.bf16.mxu1 %v292_v31  ;;  %v372_v30 = vunpack.c.l.s8.bf16 %v174_v26  ;;  %v182_v31 = vld [vmem:[#allocation5 + $0x340] sm:$0xff] }
  0xdc   :  { %727 = vmatpush1.bf16.msra.mxu0 %v289_v34  ;;  %813 = vmatpush1.bf16.msra.mxu1 %v291_v35  ;;  %v379_v34 = vunpack.c.h.s8.bf16 %v172_v22  ;;  %v389_v35 = vunpack.c.l.s8.bf16 %v182_v31 }
  0xdd   :  { %728 = vmatprep.subr.bf16.mxu0 %v299_v36  ;;  %814 = vmatprep.subr.bf16.mxu1 %v301_v38  ;;  %v181_v36 = vld [vmem:[#allocation5 + $0x338] sm:$0xff]  ;;  %v391_v38 = vunpack.c.l.s8.bf16 %v184_v33 }
  0xde   :  { %v397_v46 = vunpack.c.h.s8.bf16 %v181_v36 }
  0xe0   :  { %729 = vmatpush1.bf16.msra.mxu0 %v298_v41  ;;  %815 = vmatpush1.bf16.msra.mxu1 %v300_v42  ;;  %v388_v41 = vunpack.c.l.s8.bf16 %v181_v36  ;;  %v398_v42 = vunpack.c.h.s8.bf16 %v182_v31 }
  0xe1   :  { %730 = vmatprep.subr.bf16.mxu0 %v308_v43  ;;  %816 = vmatprep.subr.bf16.mxu1 %v310_v44  ;;  %v390_v43 = vunpack.c.l.s8.bf16 %v183_v39  ;;  %v400_v44 = vunpack.c.h.s8.bf16 %v184_v33 }
  0xe4   :  { %731 = vmatpush1.bf16.msra.mxu0 %v307_v47  ;;  %817 = vmatpush1.bf16.msra.mxu1 %v309_v48  ;;  %v399_v47 = vunpack.c.h.s8.bf16 %v183_v39  ;;  %v266_v48 = vunpack.c.l.s8.bf16 %v122_v45 }
  0xe5   :  { %732 = vmatprep.subr.bf16.mxu0 %v317_v49  ;;  %818 = vmatprep.subr.bf16.mxu1 %v319_v51  ;;  %v86_v49 = vld [vmem:[#allocation5 + $0x40] sm:$0xff] }
  0xe6   :  { %v194_v51 = vunpack.c.l.s8.bf16 %v86_v49 }
  0xe8   :  { %733 = vmatpush1.bf16.msra.mxu0 %v316_v54  ;;  %819 = vmatpush1.bf16.msra.mxu1 %v318_v55  ;;  %v275_v54 = vunpack.c.h.s8.bf16 %v122_v45  ;;  %v4445_v55 = vmov 0.0  }
  0xe9   :  { %734 = vmatprep.subr.bf16.mxu0 %v326_v56  ;;  %820 = vmatprep.subr.bf16.mxu1 %v328_v57  ;;  %v131_v56 = vld [vmem:[#allocation5 + $0x1a8] sm:$0xff]  ;;  %v203_v57 = vunpack.c.h.s8.bf16 %v86_v49 }
  0xea   :  { %v284_v59 = vunpack.c.l.s8.bf16 %v131_v56 }
  0xec   :  { %735 = vmatpush1.bf16.msra.mxu0 %v325_v60  ;;  %821 = vmatpush1.bf16.msra.mxu1 %v327_v61  ;;  %v95_v60 = vld [vmem:[#allocation5 + $0x88] sm:$0xff] }
  0xed   :  { %747 = vmatprep.subr.bf16.mxu0 %v335_v62  ;;  %833 = vmatprep.subr.bf16.mxu1 %v337_v0  ;;  %v167_v61 = vld [vmem:[#allocation5 + $0x2c8] sm:$0xff]  ;;  %v212_v62 = vunpack.c.l.s8.bf16 %v95_v60  ;;  %v293_v0 = vunpack.c.h.s8.bf16 %v131_v56 }
  0xee   :  { %v356_v63 = vunpack.c.l.s8.bf16 %v167_v61 }
  0xef   :  { %737 = vmatmul.mubr.bf16.vlgmr.msra.gmra.mrb[4].mxu0 %v3507_v40  ;;  %823 = vmatmul.mubr.bf16.vlgmr.msra.gmra.mrb[4].mxu1 %v3507_v40 }
  0xf0   :  { %748 = vmatpush1.bf16.msra.mxu0 %v334_v2  ;;  %779 = vmatprep.mubr.bf16.mxu0 %v4421_v53  ;;  %v221_v2 = vunpack.c.h.s8.bf16 %v95_v60 }
  0xf1   :  { %749 = vmatprep.subr.bf16.mxu0 %v344_v3  ;;  %834 = vmatpush1.bf16.msra.mxu1 %v336_v4  ;;  %v365_v3 = vunpack.c.h.s8.bf16 %v167_v61  ;;  %v302_v4 = vunpack.c.l.s8.bf16 %v140_v1 }
  0xf2   :  { %835 = vmatprep.subr.bf16.mxu1 %v346_v6  ;;  %865 = vmatprep.mubr.bf16.mxu1 %v4421_v53 }
  0xf4   :  { %750 = vmatpush1.bf16.msra.mxu0 %v343_v8  ;;  %v311_v8 = vunpack.c.h.s8.bf16 %v140_v1 }
  0xf5   :  { %751 = vmatprep.subr.bf16.mxu0 %v353_v9  ;;  %836 = vmatpush1.bf16.msra.mxu1 %v345_v11  ;;  %v149_v9 = vld [vmem:[#allocation5 + $0x238] sm:$0xff]  ;;  %v383_v11 = vunpack.c.h.s8.bf16 %v176_v5 }
  0xf6   :  { %837 = vmatprep.subr.bf16.mxu1 %v355_v12  ;;  %v320_v12 = vunpack.c.l.s8.bf16 %v149_v9  ;;  %v329_v17 = vunpack.c.h.s8.bf16 %v149_v9 }
  0xf8   :  { %752 = vmatpush1.bf16.msra.mxu0 %v352_v14  ;;  %v185_v14 = vld [vmem:[#allocation5 + $0x358] sm:$0xff] }
  0xf9   :  { %753 = vmatprep.subr.bf16.mxu0 %v362_v15  ;;  %838 = vmatpush1.bf16.msra.mxu1 %v354_v16  ;;  %v248_v15 = vunpack.c.l.s8.bf16 %v113_v13  ;;  %v392_v16 = vunpack.c.l.s8.bf16 %v185_v14  ;;  %v401_v19 = vunpack.c.h.s8.bf16 %v185_v14 }
  0xfa   :  { %839 = vmatprep.subr.bf16.mxu1 %v364_v18  ;;  %v257_v18 = vunpack.c.h.s8.bf16 %v113_v13 }
  0xfc   :  { %754 = vmatpush1.bf16.msra.mxu0 %v361_v20  ;;  %v962_v20 = vlaneseq }
  0xfd   :  { %755 = vmatprep.subr.bf16.mxu0 %v371_v21  ;;  %840 = vmatpush1.bf16.msra.mxu1 %v363_v23  ;;  %v958_v23 = vld [vmem:[#allocation7] sm:$0xff] }
  0xfe   :  { %841 = vmatprep.subr.bf16.mxu1 %v373_v25  ;;  %v3545_v21 = vshrl.u32 %v962_v20, 7 }
 0x100   :  { %756 = vmatpush1.bf16.msra.mxu0 %v370_v28  ;;  %v976_v22 = vsub.s32 3, %v3545_v21  ;;  %v3549_v25 = vsub.s32 0, %v3545_v21 }
 0x101   :  { %757 = vmatprep.subr.bf16.mxu0 %v380_v29  ;;  %842 = vmatpush1.bf16.msra.mxu1 %v372_v30 }
 0x102   :  { %843 = vmatprep.subr.bf16.mxu1 %v382_v32  ;;  %v977_v26 = vrot.slane %v958_v23, %v976_v22  ;;  %v965_v29 = vrot.slane %v958_v23, %v3549_v25 }
 0x104   :  { %758 = vmatpush1.bf16.msra.mxu0 %v379_v34 }
 0x105   :  { %759 = vmatprep.subr.bf16.mxu0 %v389_v35  ;;  %844 = vmatpush1.bf16.msra.mxu1 %v381_v37 }
 0x106   :  { %845 = vmatprep.subr.bf16.mxu1 %v391_v38 }
 0x108   :  { %760 = vmatpush1.bf16.msra.mxu0 %v388_v41 }
 0x109   :  { %761 = vmatprep.subr.bf16.mxu0 %v398_v42  ;;  %846 = vmatpush1.bf16.msra.mxu1 %v390_v43 }
 0x10a   :  { %847 = vmatprep.subr.bf16.mxu1 %v400_v44 }
 0x10c   :  { %762 = vmatpush1.bf16.msra.mxu0 %v397_v46 }
 0x10d   :  { %848 = vmatpush1.bf16.msra.mxu1 %v399_v47  ;;  %2841 = vmatprep.subr.bf16.mxu0 %v266_v48 }
 0x10e   :  { %2982 = vmatprep.subr.bf16.mxu1 %v4445_v55 }
 0x10f   :  { %780 = vmatmul.mubr.bf16.vlgmr.msra.gmra.mrb[4].mxu0 %v3513_v27 }
 0x110   :  { %866 = vmatmul.mubr.bf16.vlgmr.msra.gmra.mrb[4].mxu1 %v3513_v27  ;;  %2842 = vmatpush3.bf16.msra.mxu0 %v194_v51  ;;  %v980_v51 = vsub.s32 4, %v3545_v21 }
 0x111   :  { %2983 = vmatpush3.bf16.msra.mxu1 %v338_v52  ;;  %2843 = vmatprep.subr.bf16.mxu0 %v275_v54  ;;  %v984_v52 = vsub.s32 5, %v3545_v21  ;;  %v988_v54 = vsub.s32 6, %v3545_v21 }
 0x112   :  { %2984 = vmatprep.subr.bf16.mxu1 %v4445_v55  ;;  %908 = vmatprep.mubr.bf16.mxu0 %v3503_v24  ;;  %v104_v24 = vld [vmem:[#allocation5 + $0xd0] sm:$0xff]  ;;  %v981_v56 = vrot.slane %v958_v23, %v980_v51 }
 0x113   :  { %2998 = vmatprep.mubr.msk.bf16.mxu1 %vm3407_vm0, %v4445_v55  ;;  %v230_v6 = vunpack.c.l.s8.bf16 %v104_v24  ;;  %v239_v10 = vunpack.c.h.s8.bf16 %v104_v24 }
 0x114   :  { %2844 = vmatpush3.bf16.msra.mxu0 %v203_v57  ;;  %v992_v57 = vsub.s32 7, %v3545_v21 }
 0x115   :  { %2985 = vmatpush3.bf16.msra.mxu1 %v347_v58  ;;  %2845 = vmatprep.subr.bf16.mxu0 %v284_v59  ;;  %v985_v58 = vrot.slane %v958_v23, %v984_v52  ;;  %v989_v59 = vrot.slane %v958_v23, %v988_v54 }
 0x116   :  { %2986 = vmatprep.subr.bf16.mxu1 %v4445_v55 }
 0x118   :  { %2846 = vmatpush3.bf16.msra.mxu0 %v212_v62 }
 0x119   :  { %2987 = vmatpush3.bf16.msra.mxu1 %v356_v63  ;;  %2847 = vmatprep.subr.bf16.mxu0 %v293_v0  ;;  %v3580_v0 = vrot.slane %v958_v23, %v992_v57 }
 0x11a   :  { %2988 = vmatprep.subr.bf16.mxu1 %v4445_v55 }
 0x11c   :  { %2848 = vmatpush3.bf16.msra.mxu0 %v221_v2 }
 0x11d   :  { %2989 = vmatpush3.bf16.msra.mxu1 %v365_v3  ;;  %2849 = vmatprep.subr.bf16.mxu0 %v302_v4 }
 0x11e   :  { %2990 = vmatprep.subr.bf16.mxu1 %v4445_v55 }
 0x120   :  { %2850 = vmatpush3.bf16.msra.mxu0 %v230_v6 }
 0x121   :  { %2991 = vmatpush3.bf16.msra.mxu1 %v374_v7  ;;  %2851 = vmatprep.subr.bf16.mxu0 %v311_v8 }
 0x122   :  { %2992 = vmatprep.subr.bf16.mxu1 %v4445_v55 }
 0x124   :  { %2852 = vmatpush3.bf16.msra.mxu0 %v239_v10 }
 0x125   :  { %2993 = vmatpush3.bf16.msra.mxu1 %v383_v11  ;;  %2853 = vmatprep.subr.bf16.mxu0 %v320_v12 }
 0x126   :  { %2994 = vmatprep.subr.bf16.mxu1 %v4445_v55 }
 0x128   :  { %2854 = vmatpush3.bf16.msra.mxu0 %v248_v15 }
 0x129   :  { %2995 = vmatpush3.bf16.msra.mxu1 %v392_v16  ;;  %2855 = vmatprep.subr.bf16.mxu0 %v329_v17 }
 0x12a   :  { %2996 = vmatprep.subr.bf16.mxu1 %v4445_v55 }
 0x12c   :  { %2856 = vmatpush3.bf16.msra.mxu0 %v257_v18 }
 0x12d   :  { %2997 = vmatpush3.bf16.msra.mxu1 %v401_v19  ;;  %3026 = vmatprep.subr.bf16.mxu0 %v4445_v55 }
 0x12e   :  { %3002 = vmatprep.subr.bf16.mxu1 %v4445_v55 }
 0x12f   :  { %909 = vmatmul.mubr.bf16.vlgmr.msra.gmra.mrb[8].mxu0 %v3507_v40  ;;  %v3552_v40 = vsub.s32 2, %v3545_v21 }
 0x130   :  { %2999 = vmatmul.mubr.bf16.vlgmr.msra.gmra.mrb[8].mxu1 %v3513_v27  ;;  %3028 = vmatprep.mubr.msk.bf16.mxu0 %vm3407_vm0, %v4445_v55  ;;  %v3555_v27 = vsub.s32 1, %v3545_v21 }
 0x131   :  { %3004 = vmatprep.mubr.msk.bf16.mxu1 %vm3407_vm0, %v4445_v55  ;;  %v973_v31 = vrot.slane %v958_v23, %v3552_v40 }
 0x132   :  { %v969_v34 = vrot.slane %v958_v23, %v3555_v27 }
 0x182   :  { %v609_v28 = vpop.f32.mrb[0].mxu0  ;;  %v695_v30 = vpop.f32.mrb[0].mxu1 }
 0x183   :  { %v611_v32 = vpop.f32.mrb[1].mxu0  ;;  %v697_v33 = vpop.f32.mrb[1].mxu1  ;;  %v1007_v43 = vmul.f32 %v965_v29, %v609_v28  ;;  %v1009_v24 = vmul.f32 %v973_v31, %v695_v30 }
 0x184   :  { %v1010_v35 = vmul.f32 %v977_v26, %v697_v33  ;;  %v613_v36 = vpop.f32.mrb[2].mxu0  ;;  %v699_v37 = vpop.f32.mrb[2].mxu1  ;;  %v1008_v49 = vmul.f32 %v969_v34, %v611_v32 }
 0x185   :  { %v3560_v38 = vmul.f32 %v965_v29, %v613_v36  ;;  %v3562_v39 = vmul.f32 %v973_v31, %v699_v37  ;;  %v615_v41 = vpop.f32.mrb[3].mxu0  ;;  %v701_v42 = vpop.f32.mrb[3].mxu1  ;;  %v1030_v48 = vpack.c.bf16 %v1007_v43, %v1007_v43  ;;  %v3603_v17 = vpack.c.bf16 %v1009_v24, %v1009_v24 }
 0x186   :  { %v1031_v44 = vpack.c.bf16 %v1010_v35, %v1010_v35  ;;  %v3564_v45 = vmul.f32 %v969_v34, %v615_v41  ;;  %v3566_v46 = vmul.f32 %v977_v26, %v701_v42  ;;  %v1257_v50 = vpack.c.bf16 %v1008_v49, %v1008_v49  ;;  %v3613_v34 = vld [vmem:[#allocation7 + $0x8] ss:$0 sm:$0xff] }
 0x187   :  { %v1028_v37 = vand.u32 127, %v962_v20 }
 0x188   :  { %v1038_v47 = vsel %vm1033_vm1, %v1031_v44, 0  ;;  %1146 = vrot.lane.b32.xlu1 %v1031_v44, %s3408_s3 }
 0x189   :  { %3003 = vmatpush3.bf16.xpose.msra.mxu1 %v1038_v47  ;;  %vm3620_vm3 = vcmp.ge.s32.totalorder %v3545_v21, %v1028_v37 }
 0x18a   :  { %3008 = vmatprep.subr.bf16.mxu1 %v4445_v55 }
 0x18c   :  { %1143 = vrot.lane.b32.xlu1 %v1030_v48, %s3408_s3 }
 0x190   :  { %3005 = vmatmul.mubr.msk.bf16.vlgmr.msra.gmra.mrb[12].mxu1 %vm1033_vm1, %v1030_v48  ;;  %1367 = vrot.lane.b32.xlu1 %v1257_v50, %s3408_s3 }
 0x191   :  { %3010 = vmatprep.mubr.msk.bf16.mxu1 %vm3407_vm0, %v4445_v55 }
 0x1e2   :  { %v781_v60 = vpop.f32.mrb[4].mxu0 }
 0x1e3   :  { %v1011_v61 = vmul.f32 %v981_v56, %v781_v60  ;;  %v783_v62 = vpop.f32.mrb[5].mxu0  ;;  %v867_v63 = vpop.f32.mrb[4].mxu1 }
 0x1e4   :  { %v1012_v1 = vmul.f32 %v985_v58, %v783_v62  ;;  %v1013_v2 = vmul.f32 %v989_v59, %v867_v63  ;;  %v3582_v3 = vpop.f32.mrb[5].mxu1  ;;  %v785_v4 = vpop.f32.mrb[6].mxu0 }
 0x1e5   :  { %v1258_v5 = vpack.c.bf16 %v1011_v61, %v1011_v61  ;;  %v871_v6 = vpop.f32.mrb[6].mxu1  ;;  %v3584_v7 = vmul.f32 %v981_v56, %v785_v4  ;;  %v787_v8 = vpop.f32.mrb[7].mxu0 }
 0x1e6   :  { %v3586_v9 = vpack.c.bf16 %v1012_v1, %v1012_v1  ;;  %v3588_v10 = vpack.c.bf16 %v1013_v2, %v1013_v2  ;;  %v3590_v11 = vmul.f32 %v989_v59, %v871_v6  ;;  %v873_v12 = vpop.f32.mrb[7].mxu1  ;;  %v3592_v13 = vmul.f32 %v985_v58, %v787_v8 }
 0x1e7   :  { %v1264_v14 = vsel %vm1033_vm1, %v1258_v5, 0  ;;  %v3596_v15 = vmul.f32 %v3580_v0, %v873_v12 }
 0x1e8   :  { %3027 = vmatpush3.bf16.xpose.msra.mxu0 %v1264_v14  ;;  %1594 = vrot.lane.b32.xlu1 %v3586_v9, %s3408_s3  ;;  %v1099_v16 = vsel %vm1097_vm2, %v3588_v10, 0 }
 0x1e9   :  { %3009 = vmatpush3.bf16.msra.mxu1 %v1099_v16  ;;  %3038 = vmatprep.subr.bf16.mxu0 %v4445_v55 }
 0x1ea   :  { %3014 = vmatprep.subr.bf16.mxu1 %v4445_v55 }
 0x1ec   :  { %1591 = vrot.lane.b32.xlu1 %v3603_v17, %s3408_s3 }
 0x1ef   :  { %3029 = vmatmul.mubr.msk.bf16.vlgmr.msra.gmra.mrb[12].mxu0 %vm1033_vm1, %v1257_v50 }
 0x1f0   :  { %3040 = vmatprep.mubr.msk.bf16.mxu0 %vm3407_vm0, %v4445_v55 }
 0x1fa   :  { %v1147_v61 = vpop.permute.xlu1 %1146 }
 0x1fb   :  { %v1152_v12 = vsel %vm1033_vm1, %v1147_v61, 0 }
 0x1fe   :  { %v1144_v2 = vpop.permute.xlu1 %1143 }
 0x202   :  { %v2857_v18 = vpop.f32.mrb[8].mxu0  ;;  %v1368_v24 = vpop.permute.xlu1 %1367 }
 0x203   :  { %v2858_v19 = vpop.f32.mrb[9].mxu0  ;;  %v951_v22 = vpop.f32.mrb[8].mxu1 }
 0x204   :  { %v2859_v23 = vadd.f32 %v2858_v19, %v2857_v18  ;;  %v2860_v26 = vpop.f32.mrb[10].mxu0  ;;  %v3000_v28 = vpop.f32.mrb[9].mxu1 }
 0x205   :  { %v2861_v29 = vpop.f32.mrb[11].mxu0  ;;  %v954_v30 = vpop.f32.mrb[10].mxu1 }
 0x206   :  { %v3611_v31 = vadd.f32 %v2859_v23, %v951_v22  ;;  %v2862_v32 = vadd.f32 %v2861_v29, %v2860_v26  ;;  %v3001_v33 = vpop.f32.mrb[11].mxu1 }
 0x208   :  { %v955_v35 = vadd.f32 %v2862_v32, %v954_v30 }
 0x20a   :  { %v3616_v36 = vmul.f32 %v3613_v34, %v955_v35 }
 0x263   :  { %v1074_v42 = vpop.f32.mrb[12].mxu1 }
 0x264   :  { %v1080_v43 = vsel %vm3620_vm3, %v1074_v42, -1e+30  ;;  %v3006_v44 = vpop.f32.mrb[13].mxu1 }
 0x265   :  { %v1077_v47 = vpop.f32.mrb[14].mxu1  ;;  %v1082_v48 = vsel %vm1081_vm4, %v1080_v43, -inf }
 0x266   :  { %1083 = vmax.xlane.f32.xlu0 %v1082_v48  ;;  %v3007_v49 = vpop.f32.mrb[15].mxu1 }
 0x2c2   :  { %v1300_v50 = vpop.f32.mrb[12].mxu0 }
 0x2c3   :  { %v3030_v51 = vpop.f32.mrb[13].mxu0  ;;  %v1306_v59 = vsel %vm3620_vm3, %v1300_v50, -1e+30 }
 0x2c4   :  { %v1303_v52 = vpop.f32.mrb[14].mxu0  ;;  %v1307_v60 = vsel %vm1081_vm4, %v1306_v59, -inf }
 0x2c5   :  { %v3031_v20 = vpop.f32.mrb[15].mxu0 }
 0x2f3   :  { %v1084_v54 = vpop.xlane.xlu0 %1083 }
 0x2f4   :  { %v1085_v21 = vsub.f32 %v1080_v43, %v1084_v54 }
 0x2f6   :  { %v1086_v56 = vmul.f32 1.442695, %v1085_v21 }
 0x2f8   :  { %3229 = vpow2.f32 %v1086_v56 }
 0x302   :  { %v3230_v57 = vpop.eup %3229 }
 0x303   :  { %v1088_v58 = vsel %vm1081_vm4, %v3230_v57, 0.0 }
 0x304   :  { %1089 = vadd.xlane.f32.xlu0 %v1088_v58 }
 0x31a   :  { %1370 = vrot.lane.b32.xlu0 %v1258_v5, %s3408_s3  ;;  %v1488_v5 = vsel %vm1033_vm1, %v3586_v9, 0  ;;  %v1595_v9 = vpop.permute.xlu1 %1594 }
 0x31b   :  { %v1600_v14 = vsel %vm1033_vm1, %v1595_v9, 0 }
 0x31e   :  { %v1592_v16 = vpop.permute.xlu1 %1591 }
 0x339   :  { %1308 = vmax.xlane.f32.xlu0 %v1307_v60 }
 0x391   :  { %v1090_v62 = vpop.xlane.xlu0 %1089 }
 0x392   :  { %3231 = vrcp.f32 %v1090_v62 }
 0x395   :  { %v1371_v63 = vpop.permute.xlu0 %1370 }
 0x396   :  { %v1376_v1 = vsel %vm1033_vm1, %v1371_v63, 0 }
 0x397   :  { %3039 = vmatpush3.bf16.xpose.msra.mxu0 %v1376_v1 }
 0x398   :  { %3050 = vmatprep.subr.bf16.mxu0 %v4445_v55 }
 0x39c   :  { %v3232_v4 = vpop.eup %3231 }
 0x39d   :  { %v1092_v6 = vmul.f32 %v3232_v4, %v3230_v57 }
 0x39e   :  { %3041 = vmatmul.mubr.msk.bf16.vlgmr.msra.gmra.mrb[16].mxu0 %vm1033_vm1, %v1368_v24 }
 0x39f   :  { %3051 = vmatpush3.bf16.xpose.msra.mxu0 %v1488_v5  ;;  %v1093_v8 = vpack.c.bf16 %v1092_v6, %v1092_v6  ;;  %3052 = vmatprep.mubr.msk.bf16.mxu0 %vm3407_vm0, %v4445_v55 }
 0x3a0   :  { %3062 = vmatprep.subr.bf16.mxu0 %v4445_v55 }
 0x3a1   :  { %3011 = vmatmul.mubr.msk.bf16.vlgmr.msra.gmra.mrb[16].mxu1 %vm1081_vm4, %v1093_v8 }
 0x3a2   :  { %3015 = vmatpush3.bf16.xpose.msra.mxu1 %v1152_v12  ;;  %3016 = vmatprep.mubr.msk.bf16.mxu1 %vm3407_vm0, %v4445_v55 }
 0x3a3   :  { %3020 = vmatprep.subr.bf16.mxu1 %v4445_v55 }
 0x3a6   :  { %3053 = vmatmul.mubr.msk.bf16.vlgmr.msra.gmra.mrb[20].mxu0 %vm1033_vm1, %v3603_v17 }
 0x3a7   :  { %3063 = vmatpush3.bf16.xpose.msra.mxu0 %v1600_v14  ;;  %3064 = vmatprep.mubr.msk.bf16.mxu0 %vm3407_vm0, %v4445_v55 }
 0x3a9   :  { %3017 = vmatmul.mubr.msk.bf16.vlgmr.msra.gmra.mrb[20].mxu1 %vm1033_vm1, %v1144_v2 }
 0x3aa   :  { %3022 = vmatprep.mubr.msk.bf16.mxu1 %vm3407_vm0, %v4445_v55 }
 0x3ae   :  { %3065 = vmatmul.mubr.msk.bf16.vlgmr.msra.gmra.mrb[24].mxu0 %vm1033_vm1, %v1592_v16 }
 0x3c6   :  { %v1309_v18 = vpop.xlane.xlu0 %1308 }
 0x3c7   :  { %v1310_v22 = vsub.f32 %v1306_v59, %v1309_v18 }
 0x3c9   :  { %v1311_v30 = vmul.f32 1.442695, %v1310_v22 }
 0x3cb   :  { %3233 = vpow2.f32 %v1311_v30  ;;  %v1015_v30 = vmul.f32 %v3613_v34, %v3611_v31 }
 0x3d5   :  { %v3234_v60 = vpop.eup %3233 }
 0x3d6   :  { %v1313_v63 = vsel %vm1081_vm4, %v3234_v60, 0.0 }
 0x471   :  { %v1412_v19 = vpop.f32.mrb[16].mxu0 }
 0x472   :  { %v3042_v23 = vpop.f32.mrb[17].mxu0  ;;  %v1418_v51 = vsel %vm3620_vm3, %v1412_v19, -1e+30 }
 0x473   :  { %v1415_v26 = vpop.f32.mrb[18].mxu0  ;;  %v1419_v56 = vsel %vm1081_vm4, %v1418_v51, -inf }
 0x474   :  { %v3654_v28 = vpop.f32.mrb[16].mxu1  ;;  %v3043_v17 = vpop.f32.mrb[19].mxu0 }
 0x475   :  { %v3012_v29 = vpop.f32.mrb[17].mxu1 }
 0x476   :  { %v1138_v32 = vpop.f32.mrb[18].mxu1  ;;  %v1014_v29 = vmul.f32 %v3580_v0, %v3582_v3 }
 0x477   :  { %v3013_v33 = vpop.f32.mrb[19].mxu1 }
 0x478   :  { %v1259_v32 = vpack.c.bf16 %v1014_v29, %v1014_v29  ;;  %v1483_v33 = vpack.c.bf16 %v1015_v30, %v1015_v30  ;;  %v3733_v29 = vld [vmem:[#allocation8 + $0x88] sm:$0xff] }
 0x479   :  { %v1524_v35 = vpop.f32.mrb[20].mxu0 }
 0x47a   :  { %v3054_v37 = vpop.f32.mrb[21].mxu0  ;;  %v1530_v57 = vsel %vm3620_vm3, %v1524_v35, -1e+30 }
 0x47b   :  { %v1527_v42 = vpop.f32.mrb[22].mxu0  ;;  %v1531_v62 = vsel %vm1081_vm4, %v1530_v57, -inf }
 0x47c   :  { %v1188_v43 = vpop.f32.mrb[20].mxu1  ;;  %v3055_v44 = vpop.f32.mrb[23].mxu0 }
 0x47d   :  { %v1194_v47 = vsel %vm3620_vm3, %v1188_v43, -1e+30  ;;  %v3018_v48 = vpop.f32.mrb[21].mxu1 }
 0x47e   :  { %v1191_v49 = vpop.f32.mrb[22].mxu1  ;;  %v1195_v50 = vsel %vm1081_vm4, %v1194_v47, -inf }
 0x47f   :  { %v3019_v52 = vpop.f32.mrb[23].mxu1  ;;  %1196 = vmax.xlane.f32.xlu1 %v1195_v50  ;;  %v1323_v49 = vsel %vm1097_vm2, %v1259_v32, 0 }
 0x481   :  { %v1636_v20 = vpop.f32.mrb[24].mxu0 }
 0x482   :  { %v1642_v54 = vsel %vm3620_vm3, %v1636_v20, -1e+30  ;;  %v3066_v21 = vpop.f32.mrb[25].mxu0 }
 0x483   :  { %1420 = vmax.xlane.f32.xlu1 %v1419_v56  ;;  %v1639_v58 = vpop.f32.mrb[26].mxu0  ;;  %v1643_v59 = vsel %vm1081_vm4, %v1642_v54, -inf }
 0x484   :  { %1644 = vmax.xlane.f32.xlu0 %v1643_v59  ;;  %v3067_v61 = vpop.f32.mrb[27].mxu0 }
 0x487   :  { %1532 = vmax.xlane.f32.xlu1 %v1531_v62 }
 0x488   :  { %1314 = vadd.xlane.f32.xlu0 %v1313_v63 }
 0x49e   :  { %1208 = vrot.lane.b32.xlu0 %v3588_v10, %s3408_s3 }
 0x50c   :  { %v1197_v1 = vpop.xlane.xlu1 %1196 }
 0x50d   :  { %v1198_v2 = vsub.f32 %v1194_v47, %v1197_v1 }
 0x50f   :  { %v1199_v8 = vmul.f32 1.442695, %v1198_v2 }
 0x510   :  { %v1421_v4 = vpop.xlane.xlu1 %1420 }
 0x511   :  { %v1422_v24 = vsub.f32 %v1418_v51, %v1421_v4  ;;  %v1645_v6 = vpop.xlane.xlu0 %1644 }
 0x512   :  { %v1646_v5 = vsub.f32 %v1642_v54, %v1645_v6  ;;  %v3707_v6 = vld [vmem:[#allocation8 + $0x8] sm:$0xff] }
 0x513   :  { %v1423_v12 = vmul.f32 1.442695, %v1422_v24 }
 0x514   :  { %v1647_v9 = vmul.f32 1.442695, %v1646_v5  ;;  %v1533_v35 = vpop.xlane.xlu1 %1532  ;;  %v3709_v5 = vld [vmem:[#allocation8] sm:$0xff] }
 0x515   :  { %3235 = vpow2.f32 %v1423_v12  ;;  %v1315_v14 = vpop.xlane.xlu0 %1314  ;;  %v1534_v37 = vsub.f32 %v1530_v57, %v1533_v35  ;;  %v1547_v57 = vsel %vm1097_vm2, %v1483_v33, 0  ;;  %v4443_v12 = vunpack.c.l.s8.bf16 %v3709_v5 }
 0x516   :  { %3237 = vpow2.f32 %v1647_v9  ;;  %v4442_v9 = vunpack.c.h.s8.bf16 %v3707_v6  ;;  %v4381_v35 = vunpack.c.l.s8.bf16 %v3733_v29 }
 0x517   :  { %3239 = vpow2.f32 %v1199_v8  ;;  %v1535_v42 = vmul.f32 1.442695, %v1534_v37  ;;  %v4444_v8 = vunpack.c.l.s8.bf16 %v3707_v6  ;;  %v3749_v37 = vld [vmem:[#allocation8 + $0x28] sm:$0xff] }
 0x519   :  { %v1209_v16 = vpop.permute.xlu0 %1208  ;;  %3241 = vpow2.f32 %v1535_v42  ;;  %1726 = vmatprep.subr.bf16.mxu0 %v4444_v8  ;;  %v3751_v42 = vld [vmem:[#allocation8 + $0x38] sm:$0xff] }
 0x51a   :  { %v1214_v18 = vsel %vm1097_vm2, %v1209_v16, 0  ;;  %v3718_v16 = vld [vmem:[#allocation8 + $0x70] sm:$0xff]  ;;  %1727 = vmatpush1.bf16.msra.mxu0 %v4443_v12 }
 0x51b   :  { %3021 = vmatpush3.bf16.msra.mxu1 %v1214_v18  ;;  %v3720_v18 = vld [vmem:[#allocation8 + $0x10] sm:$0xff]  ;;  %1728 = vmatprep.subr.bf16.mxu0 %v4442_v9 }
 0x51c   :  { %3032 = vmatprep.subr.bf16.mxu1 %v4445_v55 }
 0x51f   :  { %v3236_v10 = vpop.eup %3235 }
 0x520   :  { %v3673_v19 = vpop.eup %3237  ;;  %v1425_v22 = vsel %vm1081_vm4, %v3236_v10, 0.0 }
 0x521   :  { %v3240_v23 = vpop.eup %3239  ;;  %1426 = vadd.xlane.f32.xlu1 %v1425_v22  ;;  %v1649_v26 = vsel %vm1081_vm4, %v3673_v19, 0.0  ;;  %v3728_v22 = vld [vmem:[#allocation8 + $0x18] sm:$0xff] }
 0x522   :  { %1650 = vadd.xlane.f32.xlu0 %v1649_v26  ;;  %v1201_v17 = vsel %vm1081_vm4, %v3240_v23, 0.0  ;;  %v4384_v26 = vunpack.c.l.s8.bf16 %v3720_v18  ;;  %v4439_v30 = vunpack.c.l.s8.bf16 %v3728_v22 }
 0x523   :  { %v3242_v43 = vpop.eup %3241 }
 0x524   :  { %v1537_v44 = vsel %vm1081_vm4, %v3242_v43, 0.0 }
 0x525   :  { %1202 = vadd.xlane.f32.xlu1 %v1201_v17  ;;  %v4383_v17 = vunpack.c.h.s8.bf16 %v3718_v16 }
 0x536   :  { %1432 = vrot.lane.b32.xlu1 %v1259_v32, %s3408_s3  ;;  %v4382_v32 = vunpack.c.h.s8.bf16 %v3720_v18 }
 0x538   :  { %1656 = vrot.lane.b32.xlu0 %v1483_v33, %s3408_s3 }
 0x55a   :  { %1538 = vadd.xlane.f32.xlu1 %v1537_v44  ;;  %v4380_v44 = vunpack.c.l.s8.bf16 %v3749_v37 }
 0x5ae   :  { %v1427_v47 = vpop.xlane.xlu1 %1426 }
 0x5af   :  { %v1651_v59 = vpop.xlane.xlu0 %1650 }
 0x5b2   :  { %v1203_v48 = vpop.xlane.xlu1 %1202 }
 0x5b3   :  { %3243 = vrcp.f32 %v1203_v48  ;;  %v1657_v62 = vpop.permute.xlu0 %1656  ;;  %v3762_v48 = vld [vmem:[#allocation8 + $0x30] sm:$0xff] }
 0x5b4   :  { %3245 = vrcp.f32 %v1315_v14  ;;  %v1662_v2 = vsel %vm1097_vm2, %v1657_v62, 0  ;;  %v3714_v14 = vld [vmem:[#allocation8 + $0x20] sm:$0xff] }
 0x5b5   :  { %3247 = vrcp.f32 %v1427_v47  ;;  %v4413_v33 = vunpack.c.h.s8.bf16 %v3714_v14  ;;  %v4411_v47 = vunpack.c.l.s8.bf16 %v3751_v42 }
 0x5b6   :  { %v1433_v51 = vpop.permute.xlu1 %1432 }
 0x5b7   :  { %v1438_v54 = vsel %vm1097_vm2, %v1433_v51, 0  ;;  %v3781_v51 = vld [vmem:[#allocation8 + $0x40] sm:$0xff] }
 0x5bd   :  { %v3244_v0 = vpop.eup %3243 }
 0x5be   :  { %v1205_v3 = vmul.f32 %v3244_v0, %v3240_v23  ;;  %v3246_v34 = vpop.eup %3245  ;;  %v4385_v23 = vunpack.c.l.s8.bf16 %v3718_v16  ;;  %v4378_v0 = vunpack.c.h.s8.bf16 %v3733_v29 }
 0x5bf   :  { %v1317_v50 = vmul.f32 %v3246_v34, %v3234_v60  ;;  %v3248_v20 = vpop.eup %3247  ;;  %v4377_v34 = vunpack.c.h.s8.bf16 %v3749_v37 }
 0x5c0   :  { %v1206_v31 = vpack.c.bf16 %v1205_v3, %v1205_v3  ;;  %v1429_v21 = vmul.f32 %v3248_v20, %v3236_v10  ;;  %v4441_v10 = vunpack.c.h.s8.bf16 %v3709_v5  ;;  %v3767_v3 = vld [vmem:[#allocation8 + $0xa0] sm:$0xff]  ;;  %v4407_v20 = vunpack.c.h.s8.bf16 %v3762_v48 }
 0x5c1   :  { %v1318_v52 = vpack.c.bf16 %v1317_v50, %v1317_v50  ;;  %v4375_v50 = vunpack.c.l.s8.bf16 %v3767_v3 }
 0x5c2   :  { %3023 = vmatmul.mubr.msk.bf16.vlgmr.msra.gmra.mrb[24].mxu1 %vm1081_vm4, %v1206_v31  ;;  %v1430_v56 = vpack.c.bf16 %v1429_v21, %v1429_v21  ;;  %1729 = vmatpush1.bf16.msra.mxu0 %v4441_v10  ;;  %v4410_v31 = vunpack.c.l.s8.bf16 %v3762_v48 }
 0x5c3   :  { %3033 = vmatpush3.bf16.msra.mxu1 %v1323_v49  ;;  %3034 = vmatprep.mubr.msk.bf16.mxu1 %vm3407_vm0, %v4445_v55  ;;  %v4409_v49 = vunpack.c.h.s8.bf16 %v3751_v42 }
 0x5c4   :  { %3044 = vmatprep.subr.bf16.mxu1 %v4445_v55 }
 0x5ca   :  { %3035 = vmatmul.mubr.msk.bf16.vlgmr.msra.gmra.mrb[28].mxu1 %vm1081_vm4, %v1318_v52  ;;  %v3783_v52 = vld [vmem:[#allocation8 + $0x50] sm:$0xff] }
 0x5cb   :  { %3045 = vmatpush3.bf16.msra.mxu1 %v1438_v54  ;;  %3046 = vmatprep.mubr.msk.bf16.mxu1 %vm3407_vm0, %v4445_v55  ;;  %v4373_v54 = vunpack.c.l.s8.bf16 %v3781_v51  ;;  %v4405_v21 = vunpack.c.l.s8.bf16 %v3783_v52 }
 0x5cc   :  { %3056 = vmatprep.subr.bf16.mxu1 %v4445_v55 }
 0x5d2   :  { %3047 = vmatmul.mubr.msk.bf16.vlgmr.msra.gmra.mrb[32].mxu1 %vm1081_vm4, %v1430_v56  ;;  %v3794_v56 = vld [vmem:[#allocation8 + $0x48] sm:$0xff] }
 0x5d3   :  { %3057 = vmatpush3.bf16.msra.mxu1 %v1547_v57  ;;  %3058 = vmatprep.mubr.msk.bf16.mxu1 %vm3407_vm0, %v4445_v55  ;;  %v4372_v57 = vunpack.c.h.s8.bf16 %v3767_v3 }
 0x5d4   :  { %3068 = vmatprep.subr.bf16.mxu1 %v4445_v55 }
 0x5e7   :  { %v1539_v58 = vpop.xlane.xlu1 %1538 }
 0x5e8   :  { %3249 = vrcp.f32 %v1539_v58  ;;  %v3799_v58 = vld [vmem:[#allocation8 + $0xb8] sm:$0xff] }
 0x5e9   :  { %3251 = vrcp.f32 %v1651_v59  ;;  %v4400_v59 = vunpack.c.l.s8.bf16 %v3794_v56  ;;  %v4376_v62 = vunpack.c.l.s8.bf16 %v3799_v58 }
 0x5f2   :  { %v3250_v60 = vpop.eup %3249 }
 0x5f3   :  { %v1541_v61 = vmul.f32 %v3250_v60, %v3242_v43  ;;  %v3252_v1 = vpop.eup %3251  ;;  %v4412_v43 = vunpack.c.h.s8.bf16 %v3728_v22  ;;  %v4374_v60 = vunpack.c.h.s8.bf16 %v3781_v51 }
 0x5f4   :  { %v1653_v4 = vmul.f32 %v3252_v1, %v3673_v19  ;;  %v4440_v19 = vunpack.c.l.s8.bf16 %v3714_v14  ;;  %v3815_v1 = vld [vmem:[#allocation8 + $0x68] sm:$0xff] }
 0x5f5   :  { %v1542_v63 = vpack.c.bf16 %v1541_v61, %v1541_v61  ;;  %v4399_v61 = vunpack.c.h.s8.bf16 %v3783_v52 }
 0x5f6   :  { %v1654_v24 = vpack.c.bf16 %v1653_v4, %v1653_v4  ;;  %1730 = vmatprep.subr.bf16.mxu0 %v4440_v19 }
 0x5f7   :  { %3059 = vmatmul.mubr.msk.bf16.vlgmr.msra.gmra.mrb[36].mxu1 %vm1081_vm4, %v1542_v63  ;;  %1731 = vmatpush1.bf16.msra.mxu0 %v4439_v30  ;;  %v3813_v63 = vld [vmem:[#allocation8 + $0x58] sm:$0xff] }
 0x5f8   :  { %3069 = vmatpush3.bf16.msra.mxu1 %v1662_v2  ;;  %3070 = vmatprep.mubr.msk.bf16.mxu1 %vm3407_vm0, %v4445_v55  ;;  %v4397_v2 = vunpack.c.h.s8.bf16 %v3794_v56  ;;  %v4379_v4 = vunpack.c.l.s8.bf16 %v3813_v63 }
 0x5f9   :  { %2896 = vmatprep.subr.bf16.mxu1 %v4385_v23  ;;  %1732 = vmatprep.subr.bf16.mxu0 %v4413_v33 }
 0x5fb   :  { %1733 = vmatpush1.bf16.msra.mxu0 %v4412_v43 }
 0x5fc   :  { %1734 = vmatprep.subr.bf16.mxu0 %v4411_v47 }
 0x5ff   :  { %3071 = vmatmul.mubr.msk.bf16.vlgmr.msra.gmra.mrb[40].mxu1 %vm1081_vm4, %v1654_v24  ;;  %1735 = vmatpush1.bf16.msra.mxu0 %v4410_v31  ;;  %v4395_v24 = vunpack.c.l.s8.bf16 %v3815_v1 }
 0x600   :  { %2897 = vmatpush3.bf16.msra.mxu1 %v4384_v26  ;;  %1736 = vmatprep.subr.bf16.mxu0 %v4409_v49  ;;  %v3862_v26 = vld [vmem:[#allocation8 + $0x90] sm:$0xff] }
 0x601   :  { %2898 = vmatprep.subr.bf16.mxu1 %v4383_v17  ;;  %v4392_v23 = vunpack.c.l.s8.bf16 %v3862_v26 }
 0x603   :  { %1737 = vmatpush1.bf16.msra.mxu0 %v4407_v20 }
 0x604   :  { %2899 = vmatpush3.bf16.msra.mxu1 %v4382_v32  ;;  %1738 = vmatprep.subr.bf16.mxu0 %v4405_v21 }
 0x605   :  { %2900 = vmatprep.subr.bf16.mxu1 %v4381_v35  ;;  %v3854_v35 = vld [vmem:[#allocation8 + $0x98] sm:$0xff] }
 0x606   :  { %v4391_v17 = vunpack.c.l.s8.bf16 %v3854_v35 }
 0x607   :  { %1739 = vmatpush1.bf16.msra.mxu0 %v4400_v59 }
 0x608   :  { %2901 = vmatpush3.bf16.msra.mxu1 %v4380_v44  ;;  %1740 = vmatprep.subr.bf16.mxu0 %v4399_v61  ;;  %v4408_v61 = vunpack.c.h.s8.bf16 %v3813_v63 }
 0x609   :  { %2902 = vmatprep.subr.bf16.mxu1 %v4378_v0  ;;  %v3846_v0 = vld [vmem:[#allocation8 + $0x78] sm:$0xff] }
 0x60a   :  { %v4390_v32 = vunpack.c.h.s8.bf16 %v3846_v0 }
 0x60b   :  { %1741 = vmatpush1.bf16.msra.mxu0 %v4397_v2  ;;  %v4404_v2 = vunpack.c.h.s8.bf16 %v3799_v58 }
 0x60c   :  { %2903 = vmatpush3.bf16.msra.mxu1 %v4377_v34  ;;  %1742 = vmatprep.subr.bf16.mxu0 %v4395_v24 }
 0x60d   :  { %2904 = vmatprep.subr.bf16.mxu1 %v4375_v50  ;;  %v3838_v50 = vld [vmem:[#allocation8 + $0x80] sm:$0xff] }
 0x60e   :  { %v4386_v34 = vunpack.c.l.s8.bf16 %v3838_v50  ;;  %v4388_v44 = vunpack.c.h.s8.bf16 %v3838_v50 }
 0x610   :  { %2905 = vmatpush3.bf16.msra.mxu1 %v4373_v54 }
 0x611   :  { %2906 = vmatprep.subr.bf16.mxu1 %v4372_v57  ;;  %v3826_v57 = vld [vmem:[#allocation8 + $0x60] sm:$0xff] }
 0x612   :  { %v4394_v54 = vunpack.c.l.s8.bf16 %v3826_v57 }
 0x614   :  { %2907 = vmatpush3.bf16.msra.mxu1 %v4374_v60  ;;  %v4393_v60 = vunpack.c.h.s8.bf16 %v3815_v1  ;;  %1743 = vmatpush1.bf16.msra.mxu0 %v4394_v54 }
 0x615   :  { %2908 = vmatprep.subr.bf16.mxu1 %v4376_v62  ;;  %v4389_v62 = vunpack.c.h.s8.bf16 %v3826_v57 }
 0x616   :  { %1744 = vmatprep.subr.bf16.mxu0 %v4393_v60 }
 0x618   :  { %2909 = vmatpush3.bf16.msra.mxu1 %v4379_v4  ;;  %1745 = vmatpush1.bf16.msra.mxu0 %v4389_v62  ;;  %v4387_v4 = vunpack.c.l.s8.bf16 %v3846_v0 }
 0x619   :  { %1746 = vmatprep.subr.bf16.mxu0 %v4386_v34  ;;  %v4396_v34 = vunpack.c.h.s8.bf16 %v3854_v35  ;;  %2910 = vmatprep.subr.bf16.mxu1 %v4404_v2 }
 0x61c   :  { %1747 = vmatpush1.bf16.msra.mxu0 %v4387_v4  ;;  %v3870_v4 = vld [vmem:[#allocation8 + $0xb0] sm:$0xff]  ;;  %2911 = vmatpush3.bf16.msra.mxu1 %v4408_v61 }
 0x61d   :  { %1748 = vmatprep.subr.bf16.mxu0 %v4388_v44  ;;  %v4398_v44 = vunpack.c.h.s8.bf16 %v3862_v26  ;;  %v4403_v62 = vunpack.c.l.s8.bf16 %v3870_v4  ;;  %3074 = vmatprep.subr.bf16.mxu1 %v4445_v55 }
 0x620   :  { %1749 = vmatpush1.bf16.msra.mxu0 %v4390_v32  ;;  %v3878_v32 = vld [vmem:[#allocation8 + $0xa8] sm:$0xff] }
 0x621   :  { %1750 = vmatprep.subr.bf16.mxu0 %v4391_v17  ;;  %v4401_v17 = vunpack.c.l.s8.bf16 %v3878_v32 }
 0x624   :  { %1751 = vmatpush1.bf16.msra.mxu0 %v4392_v23 }
 0x625   :  { %1752 = vmatprep.subr.bf16.mxu0 %v4396_v34  ;;  %v4402_v34 = vunpack.c.h.s8.bf16 %v3870_v4 }
 0x628   :  { %1753 = vmatpush1.bf16.msra.mxu0 %v4398_v44  ;;  %v4406_v44 = vunpack.c.h.s8.bf16 %v3878_v32 }
 0x629   :  { %1754 = vmatprep.subr.bf16.mxu0 %v4403_v62 }
 0x62c   :  { %1755 = vmatpush1.bf16.msra.mxu0 %v4401_v17 }
 0x62d   :  { %1756 = vmatprep.subr.bf16.mxu0 %v4402_v34 }
 0x630   :  { %1757 = vmatpush1.bf16.msra.mxu0 %v4406_v44 }
 0x695   :  { %v1250_v23 = vpop.f32.mrb[24].mxu1 }
 0x696   :  { %v3024_v60 = vpop.f32.mrb[25].mxu1  ;;  %v1256_v20 = vpack.c.bf16 %v1250_v23, %v1250_v23 }
 0x697   :  { %v1253_v54 = vpop.f32.mrb[26].mxu1 }
 0x698   :  { %v3025_v24 = vpop.f32.mrb[27].mxu1 }
 0x699   :  { %v3900_v24 = vld [vmem:[#allocation8 + $0xc8] sm:$0xff] }
 0x69a   :  { %v4414_v34 = vunpack.c.l.s8.bf16 %v3900_v24 }
 0x69c   :  { %1767 = vmatprep.subr.bf16.mxu0 %v4414_v34  ;;  %v3910_v34 = vld [vmem:[#allocation8 + $0xc0] sm:$0xff] }
 0x69d   :  { %v1359_v59 = vpop.f32.mrb[28].mxu1 }
 0x69e   :  { %v3036_v17 = vpop.f32.mrb[29].mxu1 }
 0x69f   :  { %v1362_v54 = vpop.f32.mrb[30].mxu1 }
 0x6a0   :  { %v3037_v60 = vpop.f32.mrb[31].mxu1 }
 0x6a5   :  { %v1474_v62 = vpop.f32.mrb[32].mxu1 }
 0x6a6   :  { %v1480_v2 = vpack.c.bf16 %v1474_v62, %v1474_v62  ;;  %v3048_v17 = vpop.f32.mrb[33].mxu1 }
 0x6a7   :  { %v1477_v21 = vpop.f32.mrb[34].mxu1  ;;  %v1365_v17 = vpack.c.bf16 %v1359_v59, %v1359_v59  ;;  %v3921_v59 = vld [vmem:[#allocation8 + $0xe0] sm:$0xff] }
 0x6a8   :  { %1709 = vrot.lane.b32.xlu1 %v1480_v2, %s3408_s3  ;;  %v3049_v44 = vpop.f32.mrb[35].mxu1  ;;  %v4415_v2 = vunpack.c.l.s8.bf16 %v3921_v59 }
 0x6a9   :  { %v3912_v44 = vld [vmem:[#allocation8 + $0xd0] sm:$0xff] }
 0x6ac   :  { %1706 = vrot.lane.b32.xlu1 %v1256_v20, %s3408_s3 }
 0x6ca   :  { %v3907_v54 = vpop.f32.mrb[36].mxu1 }
 0x6cb   :  { %v3060_v60 = vpop.f32.mrb[37].mxu1 }
 0x6cc   :  { %v1586_v61 = vpop.f32.mrb[38].mxu1  ;;  %v3933_v60 = vld [vmem:[#allocation8 + $0xd8] sm:$0xff] }
 0x6cd   :  { %v3061_v49 = vpop.f32.mrb[39].mxu1  ;;  %v4416_v61 = vunpack.c.h.s8.bf16 %v3912_v44 }
 0x6ce   :  { %v1141_v49 = vpack.c.bf16 %v3654_v28, %v3654_v28  ;;  %v4417_v28 = vunpack.c.h.s8.bf16 %v3910_v34 }
 0x6d2   :  { %v1698_v31 = vpop.f32.mrb[40].mxu1 }
 0x6d3   :  { %v1704_v47 = vpack.c.bf16 %v1698_v31, %v1698_v31  ;;  %v3072_v43 = vpop.f32.mrb[41].mxu1  ;;  %v4438_v31 = vunpack.c.l.s8.bf16 %v3910_v34 }
 0x6d4   :  { %v1701_v33 = vpop.f32.mrb[42].mxu1 }
 0x6d5   :  { %1712 = vrot.lane.b32.xlu0 %v1704_v47, %s3408_s3  ;;  %v3073_v62 = vpop.f32.mrb[43].mxu1  ;;  %v4426_v33 = vunpack.c.l.s8.bf16 %v3912_v44  ;;  %v4425_v47 = vunpack.c.h.s8.bf16 %v3900_v24 }
 0x6d6   :  { %v3935_v62 = vld [vmem:[#allocation8 + $0xe8] sm:$0xff] }
 0x71a   :  { %v1710_v21 = vpop.permute.xlu1 %1709 }
 0x71b   :  { %v1720_v23 = vsel %vm1033_vm1, %v1365_v17, %v1710_v21  ;;  %v4419_v17 = vunpack.c.l.s8.bf16 %v3933_v60  ;;  %v4418_v21 = vunpack.c.l.s8.bf16 %v3935_v62 }
 0x71c   :  { %1758 = vmatprep.mubr.bf16.mxu0 %v1720_v23  ;;  %1840 = vmatprep.mubr.bf16.mxu1 %v1720_v23  ;;  %v4420_v23 = vunpack.c.h.s8.bf16 %v3921_v59 }
 0x71e   :  { %v1707_v43 = vpop.permute.xlu1 %1706 }
 0x71f   :  { %v1716_v20 = vsel %vm1033_vm1, %v1141_v49, %v1707_v43  ;;  %v3950_v49 = vld [vmem:[#allocation8 + $0xf8] sm:$0xff]  ;;  %v4423_v43 = vunpack.c.h.s8.bf16 %v3933_v60 }
 0x720   :  { %1759 = vmatmul.mubr.bf16.vlgmr.msra.gmra.mrb[28].mxu0 %v1716_v20  ;;  %1841 = vmatmul.mubr.bf16.vlgmr.msra.gmra.mrb[44].mxu1 %v1716_v20  ;;  %v4422_v20 = vunpack.c.h.s8.bf16 %v3935_v62 }
 0x721   :  { %1768 = vmatpush1.bf16.msra.mxu0 %v4438_v31  ;;  %3075 = vmatpush3.bf16.msra.mxu1 %v4426_v33  ;;  %v3990_v33 = vld [vmem:[#allocation8 + $0x118] sm:$0xff] }
 0x722   :  { %1769 = vmatprep.subr.bf16.mxu0 %v4425_v47  ;;  %3076 = vmatprep.subr.bf16.mxu1 %v4445_v55  ;;  %v3988_v47 = vld [vmem:[#allocation8 + $0x108] sm:$0xff]  ;;  %4463 = vst [vmem:[#allocation19_spill] sm:$0xff] %v3990_v33 }
 0x723   :  { %1799 = vmatprep.mubr.bf16.mxu0 %v4421_v53  ;;  %3090 = vmatprep.mubr.msk.bf16.mxu1 %vm3407_vm0, %v4445_v55  ;;  %v3976_v53 = vld [vmem:[#allocation8 + $0x110] sm:$0xff]  ;;  %4462 = vst [vmem:[#allocation18_spill] sm:$0xff] %v3988_v47 }
 0x724   :  { %4461 = vst [vmem:[#allocation17_spill] sm:$0xff] %v3976_v53 }
 0x725   :  { %1770 = vmatpush1.bf16.msra.mxu0 %v4417_v28  ;;  %3077 = vmatpush3.bf16.msra.mxu1 %v4416_v61  ;;  %v3962_v61 = vld [vmem:[#allocation8 + $0xf0] sm:$0xff]  ;;  %v3964_v28 = vld [vmem:[#allocation8 + $0x100] sm:$0xff] }
 0x726   :  { %1771 = vmatprep.subr.bf16.mxu0 %v4415_v2  ;;  %3078 = vmatprep.subr.bf16.mxu1 %v4445_v55  ;;  %v4424_v2 = vunpack.c.l.s8.bf16 %v3950_v49  ;;  %4459 = vst [vmem:[#allocation15_spill] sm:$0xff] %v3962_v61  ;;  %4460 = vst [vmem:[#allocation16_spill] sm:$0xff] %v3964_v28 }
 0x729   :  { %1772 = vmatpush1.bf16.msra.mxu0 %v4419_v17  ;;  %3079 = vmatpush3.bf16.msra.mxu1 %v4418_v21  ;;  %v4428_v21 = vunpack.c.l.s8.bf16 %v3962_v61  ;;  %v4427_v17 = vunpack.c.l.s8.bf16 %v3964_v28 }
 0x72a   :  { %1773 = vmatprep.subr.bf16.mxu0 %v4420_v23  ;;  %3080 = vmatprep.subr.bf16.mxu1 %v4445_v55  ;;  %v4429_v23 = vunpack.c.h.s8.bf16 %v3950_v49 }
 0x72d   :  { %1774 = vmatpush1.bf16.msra.mxu0 %v4423_v43  ;;  %3081 = vmatpush3.bf16.msra.mxu1 %v4422_v20  ;;  %v4430_v20 = vunpack.c.h.s8.bf16 %v3962_v61  ;;  %v4431_v43 = vunpack.c.h.s8.bf16 %v3964_v28 }
 0x72e   :  { %1775 = vmatprep.subr.bf16.mxu0 %v4424_v2  ;;  %3082 = vmatprep.subr.bf16.mxu1 %v4445_v55  ;;  %v4435_v2 = vunpack.c.l.s8.bf16 %v3976_v53 }
 0x731   :  { %1776 = vmatpush1.bf16.msra.mxu0 %v4428_v21  ;;  %3083 = vmatpush3.bf16.msra.mxu1 %v4427_v17  ;;  %v4433_v17 = vunpack.c.l.s8.bf16 %v3988_v47  ;;  %v4432_v21 = vunpack.c.l.s8.bf16 %v3990_v33 }
 0x732   :  { %1777 = vmatprep.subr.bf16.mxu0 %v4429_v23  ;;  %3084 = vmatprep.subr.bf16.mxu1 %v4445_v55  ;;  %v4434_v23 = vunpack.c.h.s8.bf16 %v3976_v53 }
 0x735   :  { %1778 = vmatpush1.bf16.msra.mxu0 %v4430_v20  ;;  %3085 = vmatpush3.bf16.msra.mxu1 %v4431_v43  ;;  %v4436_v20 = vunpack.c.h.s8.bf16 %v3988_v47  ;;  %v4437_v43 = vunpack.c.h.s8.bf16 %v3990_v33 }
 0x736   :  { %1779 = vmatprep.subr.bf16.mxu0 %v4435_v2  ;;  %3086 = vmatprep.subr.bf16.mxu1 %v4445_v55 }
 0x739   :  { %1780 = vmatpush1.bf16.msra.mxu0 %v4433_v17  ;;  %3087 = vmatpush3.bf16.msra.mxu1 %v4432_v21  ;;  %v4019_v21 = vpack.c.bf16 %v3566_v46, %v3566_v46  ;;  %v4023_v17 = vpack.c.bf16 %v3584_v7, %v3584_v7  ;;  %v4040_v46 = vpack.c.bf16 %v3590_v11, %v3590_v11 }
 0x73a   :  { %1781 = vmatprep.subr.bf16.mxu0 %v4434_v23  ;;  %3088 = vmatprep.subr.bf16.mxu1 %v4445_v55  ;;  %v1589_v23 = vpack.c.bf16 %v3907_v54, %v3907_v54  ;;  %v1929_v7 = vpack.c.bf16 %v3560_v38, %v3560_v38  ;;  %v4046_v54 = vpack.c.bf16 %v3564_v45, %v3564_v45 }
 0x73b   :  { %v2160_v31 = vsel %vm1033_vm1, %v4023_v17, 0 }
 0x73d   :  { %1782 = vmatpush1.bf16.msra.mxu0 %v4436_v20  ;;  %3089 = vmatpush3.bf16.msra.mxu1 %v4437_v43  ;;  %v1936_v43 = vsel %vm1033_vm1, %v4019_v21, 0 }
 0x73e   :  { %3094 = vmatprep.subr.bf16.mxu1 %v4445_v55  ;;  %3118 = vmatprep.subr.bf16.mxu0 %v4445_v55 }
 0x747   :  { %v1713_v2 = vpop.permute.xlu0 %1712 }
 0x748   :  { %v1724_v20 = vsel %vm1033_vm1, %v1589_v23, %v1713_v2 }
 0x749   :  { %1800 = vmatmul.mubr.bf16.vlgmr.msra.gmra.mrb[28].mxu0 %v1724_v20  ;;  %3091 = vmatmul.mubr.bf16.vlgmr.msra.gmra.mrb[48].mxu1 %v1724_v20  ;;  %v511_v20 = vld [vmem:[%s4370_s5] sm:$0x7] }
 0x74a   :  { %3095 = vmatpush3.bf16.xpose.msra.mxu1 %v1936_v43  ;;  %3119 = vmatpush3.bf16.xpose.msra.mxu0 %v2160_v31  ;;  %v1995_v31 = vsel %vm1097_vm2, %v4040_v46, 0  ;;  %v510_v43 = vld [vmem:[%s4369_s4] sm:$0x7]  ;;  %v4071_v19 = vrot.slane %v511_v20, %v3549_v25  ;;  %v4081_v12 = vrot.slane %v511_v20, %v3552_v40  ;;  %s3409_s4 = smov [#allocation10]  }
 0x74b   :  { %3096 = vmatprep.mubr.msk.bf16.mxu1 %vm3407_vm0, %v4445_v55  ;;  %3100 = vmatprep.subr.bf16.mxu1 %v4445_v55  ;;  %v4068_v30 = vrot.slane %v510_v43, %v3555_v27  ;;  %s2799_s5 = sshll.u32 %s3409_s4, 4  ;;  %s2800_s5 = int_to_ptr.vmem [resolvable:$true] %s2799_s5 }
 0x74c   :  { %3120 = vmatprep.mubr.msk.bf16.mxu0 %vm3407_vm0, %v4445_v55  ;;  %3130 = vmatprep.subr.bf16.mxu0 %v4445_v55  ;;  %s3365_s28 = scalar_lea.vmem %s2800_s5, 768  ;;  %p3370_p5 = scmp.lt.s32.totalorder %s2800_s5, %s2800_s5 }
 0x74d   :  { %p3366_p4 = scmp.ne.s32.totalorder %s2800_s5, %s3365_s28  ;;  %p3371_p6 = scmp.lt.s32.totalorder %s3365_s28, %s3365_s28 }
 0x74f   :  { %p3372_p7 = por %p3371_p6, %p3370_p5 }
 0x751   :  { %3097 = vmatmul.mubr.msk.bf16.vlgmr.msra.gmra.mrb[52].mxu1 %vm1033_vm1, %v1929_v7  ;;  %3121 = vmatmul.mubr.msk.bf16.vlgmr.msra.gmra.mrb[32].mxu0 %vm1033_vm1, %v4046_v54  ;;  %p3373_p8 = pnand %p3372_p7, %p3366_p4 }
 0x752   :  { %3101 = vmatpush3.bf16.msra.mxu1 %v1995_v31  ;;  %3132 = vmatprep.mubr.msk.bf16.mxu0 %vm3407_vm0, %v4445_v55  ;;  %v4065_v31 = vrot.slane %v510_v43, %v3549_v25 }
 0x753   :  { %3102 = vmatprep.mubr.msk.bf16.mxu1 %vm3407_vm0, %v4445_v55  ;;  %3106 = vmatprep.subr.bf16.mxu1 %v4445_v55 }
 0x7f3   :  { %v2912_v38 = vpop.f32.mrb[44].mxu1 }
 0x7f4   :  { %v2913_v45 = vpop.f32.mrb[45].mxu1 }
 0x7f5   :  { %v2914_v11 = vadd.f32 %v2913_v45, %v2912_v38  ;;  %v2915_v2 = vpop.f32.mrb[46].mxu1  ;;  %v4074_v38 = vrot.slane %v510_v43, %v3552_v40 }
 0x7f6   :  { %v2916_v23 = vpop.f32.mrb[47].mxu1 }
 0x7f7   :  { %v4077_v23 = vrot.slane %v511_v20, %v3555_v27 }
 0x81c   :  { %v1801_v45 = vpop.f32.mrb[28].mxu0  ;;  %v1882_v2 = vpop.f32.mrb[48].mxu1 }
 0x81d   :  { %v1904_v10 = vmul.f32 %v4065_v31, %v1801_v45  ;;  %v1883_v9 = vadd.f32 %v2914_v11, %v1882_v2  ;;  %v1803_v8 = vpop.f32.mrb[29].mxu0  ;;  %v3092_v55 = vpop.f32.mrb[49].mxu1 }
 0x81e   :  { %v1905_v33 = vmul.f32 %v4068_v30, %v1803_v8  ;;  %v1805_v25 = vpop.f32.mrb[30].mxu0  ;;  %v1885_v47 = vpop.f32.mrb[50].mxu1 }
 0x81f   :  { %v1923_v43 = vadd.f32 %v4071_v19, %v1904_v10  ;;  %v1906_v53 = vmul.f32 %v4074_v38, %v1883_v9  ;;  %v1806_v28 = vpop.f32.mrb[31].mxu0  ;;  %v3093_v61 = vpop.f32.mrb[51].mxu1 }
 0x820   :  { %v1924_v27 = vadd.f32 %v4077_v23, %v1905_v33 }
 0x821   :  { %1926 = vst [vmem:[#allocation10] sm:$0xff] %v1923_v43  ;;  %v1925_v11 = vadd.f32 %v4081_v12, %v1906_v53  ;;  %v2378_v53 = vpack.c.bf16 %v3592_v13, %v3592_v13  ;;  %v2377_v13 = vpack.c.bf16 %v3562_v39, %v3562_v39 }
 0x822   :  { %1927 = vst [vmem:[#allocation10 + $0x8] sm:$0xff] %v1924_v27 }
 0x823   :  { %1928 = vst [vmem:[#allocation10 + $0x10] sm:$0xff] %v1925_v11 }
 0x824   :  { %v1972_v40 = vpop.f32.mrb[52].mxu1  ;;  %v2196_v20 = vpop.f32.mrb[32].mxu0 }
 0x825   :  { %v1978_v55 = vsel %vm3620_vm3, %v1972_v40, -1e+30  ;;  %v3098_v8 = vpop.f32.mrb[53].mxu1  ;;  %v3122_v47 = vpop.f32.mrb[33].mxu0  ;;  %v4464_v40 = vmov 0.0  }
 0x826   :  { %v1975_v45 = vpop.f32.mrb[54].mxu1  ;;  %v2199_v10 = vpop.f32.mrb[34].mxu0  ;;  %v1979_v9 = vsel %vm1081_vm4, %v1978_v55, -inf }
 0x827   :  { %v3123_v28 = vpop.f32.mrb[35].mxu0  ;;  %1980 = vmax.xlane.f32.xlu1 %v1979_v9  ;;  %v3099_v61 = vpop.f32.mrb[55].mxu1  ;;  %v2384_v10 = vsel %vm1033_vm1, %v2378_v53, 0 }
 0x838   :  { %2039 = vrot.lane.b32.xlu1 %v1929_v7, %s3408_s3 }
 0x83c   :  { %2266 = vrot.lane.b32.xlu1 %v4023_v17, %s3408_s3  ;;  %v4109_v17 = vsel %vm3620_vm3, %v2196_v20, -1e+30 }
 0x840   :  { %2490 = vrot.lane.b32.xlu1 %v2378_v53, %s3408_s3  ;;  %v4465_v53 = vunpack.c.l.s8.bf16 %v3707_v6 }
 0x8b4   :  { %v1981_v33 = vpop.xlane.xlu1 %1980 }
 0x8b5   :  { %v1982_v2 = vsub.f32 %v1978_v55, %v1981_v33  ;;  %v2203_v55 = vsel %vm1081_vm4, %v4109_v17, -inf }
 0x8b7   :  { %v1983_v25 = vmul.f32 1.442695, %v1982_v2  ;;  %v4466_v2 = vunpack.c.l.s8.bf16 %v3709_v5 }
 0x8b8   :  { %v2040_v43 = vpop.permute.xlu1 %2039 }
 0x8b9   :  { %3253 = vpow2.f32 %v1983_v25  ;;  %v4467_v25 = vunpack.c.h.s8.bf16 %v3707_v6  ;;  %v4474_v6 = vunpack.c.l.s8.bf16 %v3762_v48 }
 0x8bc   :  { %v2267_v27 = vpop.permute.xlu1 %2266 }
 0x8bd   :  { %v2272_v11 = vsel %vm1033_vm1, %v2267_v27, 0  ;;  %v4468_v27 = vunpack.c.h.s8.bf16 %v3709_v5  ;;  %v4475_v5 = vunpack.c.h.s8.bf16 %v3751_v42 }
 0x8be   :  { %3131 = vmatpush3.bf16.xpose.msra.mxu0 %v2272_v11  ;;  %v4469_v11 = vunpack.c.l.s8.bf16 %v3714_v14 }
 0x8bf   :  { %3142 = vmatprep.subr.bf16.mxu0 %v4464_v40 }
 0x8c0   :  { %v2491_v20 = vpop.permute.xlu1 %2490 }
 0x8c1   :  { %v2496_v61 = vsel %vm1033_vm1, %v2491_v20, 0  ;;  %v4489_v20 = vunpack.c.l.s8.bf16 %v3854_v35 }
 0x8c3   :  { %v3254_v7 = vpop.eup %3253 }
 0x8c4   :  { %v1985_v8 = vsel %vm1081_vm4, %v3254_v7, 0.0 }
 0x8c5   :  { %1986 = vadd.xlane.f32.xlu0 %v1985_v8  ;;  %v4472_v8 = vunpack.c.h.s8.bf16 %v3728_v22 }
 0x8db   :  { %2042 = vrot.lane.b32.xlu0 %v4019_v21, %s3408_s3 }
 0x8df   :  { %2263 = vrot.lane.b32.xlu0 %v4046_v54, %s3408_s3 }
 0x8e3   :  { %2487 = vrot.lane.b32.xlu0 %v2377_v13, %s3408_s3 }
 0x902   :  { %2204 = vmax.xlane.f32.xlu0 %v2203_v55  ;;  %v4476_v55 = vunpack.c.h.s8.bf16 %v3762_v48  ;;  %v4483_v48 = vunpack.c.h.s8.bf16 %v3815_v1 }
 0x952   :  { %v1987_v47 = vpop.xlane.xlu0 %1986 }
 0x953   :  { %3255 = vrcp.f32 %v1987_v47  ;;  %v4477_v47 = vunpack.c.l.s8.bf16 %v3783_v52 }
 0x956   :  { %v2043_v45 = vpop.permute.xlu0 %2042 }
 0x957   :  { %v2048_v28 = vsel %vm1033_vm1, %v2043_v45, 0  ;;  %v4480_v45 = vunpack.c.h.s8.bf16 %v3794_v56 }
 0x95a   :  { %v2264_v21 = vpop.permute.xlu0 %2263 }
 0x95b   :  { %3133 = vmatmul.mubr.msk.bf16.vlgmr.msra.gmra.mrb[36].mxu0 %vm1033_vm1, %v2264_v21  ;;  %v4481_v21 = vunpack.c.l.s8.bf16 %v3815_v1  ;;  %v4490_v1 = vunpack.c.l.s8.bf16 %v3862_v26 }
 0x95c   :  { %3143 = vmatpush3.bf16.xpose.msra.mxu0 %v2384_v10  ;;  %3144 = vmatprep.mubr.msk.bf16.mxu0 %vm3407_vm0, %v4464_v40  ;;  %v4484_v10 = vunpack.c.h.s8.bf16 %v3826_v57 }
 0x95d   :  { %v3256_v39 = vpop.eup %3255  ;;  %3154 = vmatprep.subr.bf16.mxu0 %v4464_v40 }
 0x95e   :  { %v1989_v54 = vmul.f32 %v3256_v39, %v3254_v7  ;;  %v2488_v33 = vpop.permute.xlu0 %2487  ;;  %v4470_v7 = vunpack.c.l.s8.bf16 %v3728_v22  ;;  %v4479_v22 = vunpack.c.h.s8.bf16 %v3783_v52  ;;  %v4485_v39 = vunpack.c.l.s8.bf16 %v3838_v50 }
 0x95f   :  { %v4486_v52 = vunpack.c.l.s8.bf16 %v3846_v0 }
 0x960   :  { %v1990_v9 = vpack.c.bf16 %v1989_v54, %v1989_v54  ;;  %v4488_v54 = vunpack.c.h.s8.bf16 %v3846_v0  ;;  %v4495_v0 = vunpack.c.h.s8.bf16 %v3870_v4 }
 0x962   :  { %3103 = vmatmul.mubr.msk.bf16.vlgmr.msra.gmra.mrb[56].mxu1 %vm1081_vm4, %v1990_v9  ;;  %v4492_v9 = vunpack.c.h.s8.bf16 %v3862_v26 }
 0x963   :  { %3107 = vmatpush3.bf16.xpose.msra.mxu1 %v2048_v28  ;;  %3145 = vmatmul.mubr.msk.bf16.vlgmr.msra.gmra.mrb[40].mxu0 %vm1033_vm1, %v2377_v13  ;;  %v4473_v13 = vunpack.c.l.s8.bf16 %v3751_v42  ;;  %v4482_v42 = vunpack.c.l.s8.bf16 %v3826_v57  ;;  %v4491_v57 = vunpack.c.h.s8.bf16 %v3854_v35  ;;  %v4493_v28 = vunpack.c.l.s8.bf16 %v3870_v4 }
 0x964   :  { %3155 = vmatpush3.bf16.xpose.msra.mxu0 %v2496_v61  ;;  %3108 = vmatprep.mubr.msk.bf16.mxu1 %vm3407_vm0, %v4464_v40  ;;  %v4496_v61 = vunpack.c.h.s8.bf16 %v3878_v32 }
 0x965   :  { %3156 = vmatprep.mubr.msk.bf16.mxu0 %vm3407_vm0, %v4464_v40  ;;  %3112 = vmatprep.subr.bf16.mxu1 %v4464_v40 }
 0x966   :  { %2622 = vmatprep.subr.bf16.mxu0 %v4465_v53  ;;  %v4497_v53 = vunpack.c.l.s8.bf16 %v3900_v24 }
 0x96a   :  { %3109 = vmatmul.mubr.msk.bf16.vlgmr.msra.gmra.mrb[60].mxu1 %vm1033_vm1, %v2040_v43  ;;  %v4471_v43 = vunpack.c.h.s8.bf16 %v3714_v14  ;;  %v4478_v14 = vunpack.c.l.s8.bf16 %v3794_v56  ;;  %v4487_v56 = vunpack.c.h.s8.bf16 %v3838_v50  ;;  %v4494_v50 = vunpack.c.l.s8.bf16 %v3878_v32 }
 0x96b   :  { %3157 = vmatmul.mubr.msk.bf16.vlgmr.msra.gmra.mrb[44].mxu0 %vm1033_vm1, %v2488_v33  ;;  %3114 = vmatprep.mubr.msk.bf16.mxu1 %vm3407_vm0, %v4464_v40 }
 0x96c   :  { %2623 = vmatpush1.bf16.msra.mxu0 %v4466_v2 }
 0x96d   :  { %2624 = vmatprep.subr.bf16.mxu0 %v4467_v25 }
 0x970   :  { %2625 = vmatpush1.bf16.msra.mxu0 %v4468_v27 }
 0x971   :  { %2626 = vmatprep.subr.bf16.mxu0 %v4469_v11 }
 0x974   :  { %2627 = vmatpush1.bf16.msra.mxu0 %v4470_v7 }
 0x975   :  { %2628 = vmatprep.subr.bf16.mxu0 %v4471_v43 }
 0x978   :  { %2629 = vmatpush1.bf16.msra.mxu0 %v4472_v8 }
 0x979   :  { %2630 = vmatprep.subr.bf16.mxu0 %v4473_v13 }
 0x97c   :  { %2631 = vmatpush1.bf16.msra.mxu0 %v4474_v6 }
 0x97d   :  { %2632 = vmatprep.subr.bf16.mxu0 %v4475_v5 }
 0x980   :  { %2633 = vmatpush1.bf16.msra.mxu0 %v4476_v55 }
 0x981   :  { %2634 = vmatprep.subr.bf16.mxu0 %v4477_v47 }
 0x984   :  { %2635 = vmatpush1.bf16.msra.mxu0 %v4478_v14 }
 0x985   :  { %2636 = vmatprep.subr.bf16.mxu0 %v4479_v22 }
 0x988   :  { %2637 = vmatpush1.bf16.msra.mxu0 %v4480_v45 }
 0x989   :  { %2638 = vmatprep.subr.bf16.mxu0 %v4481_v21 }
 0x98c   :  { %2639 = vmatpush1.bf16.msra.mxu0 %v4482_v42 }
 0x98d   :  { %2640 = vmatprep.subr.bf16.mxu0 %v4483_v48 }
 0x98f   :  { %v2205_v35 = vpop.xlane.xlu0 %2204 }
 0x990   :  { %2641 = vmatpush1.bf16.msra.mxu0 %v4484_v10  ;;  %v2206_v26 = vsub.f32 %v4109_v17, %v2205_v35 }
 0x991   :  { %2642 = vmatprep.subr.bf16.mxu0 %v4485_v39 }
 0x992   :  { %v2207_v7 = vmul.f32 1.442695, %v2206_v26 }
 0x994   :  { %2643 = vmatpush1.bf16.msra.mxu0 %v4486_v52  ;;  %3257 = vpow2.f32 %v2207_v7 }
 0x995   :  { %2644 = vmatprep.subr.bf16.mxu0 %v4487_v56 }
 0x998   :  { %2645 = vmatpush1.bf16.msra.mxu0 %v4488_v54 }
 0x999   :  { %2646 = vmatprep.subr.bf16.mxu0 %v4489_v20 }
 0x99c   :  { %2647 = vmatpush1.bf16.msra.mxu0 %v4490_v1 }
 0x99d   :  { %2648 = vmatprep.subr.bf16.mxu0 %v4491_v57 }
 0x99e   :  { %v3258_v20 = vpop.eup %3257 }
 0x9a0   :  { %2649 = vmatpush1.bf16.msra.mxu0 %v4492_v9  ;;  %v2209_v9 = vsel %vm1081_vm4, %v3258_v20, 0.0 }
 0x9a1   :  { %2650 = vmatprep.subr.bf16.mxu0 %v4493_v28 }
 0x9a4   :  { %2651 = vmatpush1.bf16.msra.mxu0 %v4494_v50 }
 0x9a5   :  { %2652 = vmatprep.subr.bf16.mxu0 %v4495_v0 }
 0x9a8   :  { %2653 = vmatpush1.bf16.msra.mxu0 %v4496_v61 }
 0x9a9   :  { %2663 = vmatprep.subr.bf16.mxu0 %v4497_v53 }
 0xa2e   :  { %v2308_v33 = vpop.f32.mrb[36].mxu0 }
 0xa2f   :  { %v2314_v2 = vsel %vm3620_vm3, %v2308_v33, -1e+30  ;;  %v3134_v25 = vpop.f32.mrb[37].mxu0 }
 0xa30   :  { %v2311_v27 = vpop.f32.mrb[38].mxu0  ;;  %v2315_v11 = vsel %vm1081_vm4, %v2314_v2, -inf }
 0xa31   :  { %2316 = vmax.xlane.f32.xlu0 %v2315_v11  ;;  %v3135_v4 = vpop.f32.mrb[39].mxu0 }
 0xa35   :  { %v4201_v43 = vpop.f32.mrb[56].mxu1 }
 0xa36   :  { %v3104_v32 = vpop.f32.mrb[57].mxu1  ;;  %v2420_v8 = vpop.f32.mrb[40].mxu0 }
 0xa37   :  { %v2034_v13 = vpop.f32.mrb[58].mxu1  ;;  %v3146_v6 = vpop.f32.mrb[41].mxu0  ;;  %v2426_v39 = vsel %vm3620_vm3, %v2420_v8, -1e+30 }
 0xa38   :  { %v3105_v5 = vpop.f32.mrb[59].mxu1  ;;  %v2423_v55 = vpop.f32.mrb[42].mxu0  ;;  %v2427_v57 = vsel %vm1081_vm4, %v2426_v39, -inf }
 0xa39   :  { %v3147_v17 = vpop.f32.mrb[43].mxu0 }
 0xa3d   :  { %v2084_v47 = vpop.f32.mrb[60].mxu1 }
 0xa3e   :  { %v2090_v14 = vsel %vm3620_vm3, %v2084_v47, -1e+30  ;;  %v3110_v22 = vpop.f32.mrb[61].mxu1  ;;  %v2532_v45 = vpop.f32.mrb[44].mxu0  ;;  %v2155_v47 = vpack.c.bf16 %v3596_v15, %v3596_v15 }
 0xa3f   :  { %v2538_v21 = vsel %vm3620_vm3, %v2532_v45, -1e+30  ;;  %v2087_v42 = vpop.f32.mrb[62].mxu1  ;;  %v3158_v48 = vpop.f32.mrb[45].mxu0  ;;  %v2091_v10 = vsel %vm1081_vm4, %v2090_v14, -inf }
 0xa40   :  { %v2535_v52 = vpop.f32.mrb[46].mxu0  ;;  %2092 = vmax.xlane.f32.xlu1 %v2091_v10  ;;  %v3111_v56 = vpop.f32.mrb[63].mxu1  ;;  %v2539_v54 = vsel %vm1081_vm4, %v2538_v21, -inf }
 0xa41   :  { %2540 = vmax.xlane.f32.xlu0 %v2539_v54  ;;  %v3159_v1 = vpop.f32.mrb[47].mxu0  ;;  %v2219_v52 = vsel %vm1097_vm2, %v2155_v47, 0 }
 0xa44   :  { %2428 = vmax.xlane.f32.xlu1 %v2427_v57 }
 0xa45   :  { %2210 = vadd.xlane.f32.xlu0 %v2209_v9 }
 0xa5b   :  { %2104 = vrot.lane.b32.xlu0 %v4040_v46, %s3408_s3 }
 0xabe   :  { %v2317_v28 = vpop.xlane.xlu0 %2316 }
 0xabf   :  { %v2318_v41 = vsub.f32 %v2314_v2, %v2317_v28 }
 0xac1   :  { %v2319_v35 = vmul.f32 1.442695, %v2318_v41 }
 0xacd   :  { %v2093_v50 = vpop.xlane.xlu1 %2092 }
 0xace   :  { %v2094_v0 = vsub.f32 %v2090_v14, %v2093_v50  ;;  %v2541_v61 = vpop.xlane.xlu0 %2540  ;;  %v2379_v14 = vpack.c.bf16 %v3616_v36, %v3616_v36 }
 0xacf   :  { %v2542_v53 = vsub.f32 %v2538_v21, %v2541_v61 }
 0xad0   :  { %v2095_v33 = vmul.f32 1.442695, %v2094_v0  ;;  %v2443_v41 = vsel %vm1097_vm2, %v2379_v14, 0 }
 0xad1   :  { %v2543_v26 = vmul.f32 1.442695, %v2542_v53  ;;  %v2429_v25 = vpop.xlane.xlu1 %2428 }
 0xad2   :  { %3259 = vpow2.f32 %v2095_v33  ;;  %v2430_v27 = vsub.f32 %v2426_v39, %v2429_v25  ;;  %v2211_v11 = vpop.xlane.xlu0 %2210 }
 0xad3   :  { %3261 = vpow2.f32 %v2543_v26  ;;  %v4498_v26 = vunpack.c.l.s8.bf16 %v3718_v16 }
 0xad4   :  { %3263 = vpow2.f32 %v2319_v35  ;;  %v2431_v4 = vmul.f32 1.442695, %v2430_v27  ;;  %v4499_v27 = vunpack.c.l.s8.bf16 %v3720_v18 }
 0xad6   :  { %v2105_v7 = vpop.permute.xlu0 %2104  ;;  %3265 = vpow2.f32 %v2431_v4  ;;  %v4501_v4 = vunpack.c.h.s8.bf16 %v3720_v18  ;;  %v4508_v18 = vunpack.c.h.s8.bf16 %v3767_v3 }
 0xad7   :  { %v2110_v32 = vsel %vm1097_vm2, %v2105_v7, 0  ;;  %v4502_v7 = vunpack.c.l.s8.bf16 %v3733_v29 }
 0xad8   :  { %3113 = vmatpush3.bf16.msra.mxu1 %v2110_v32  ;;  %v4503_v32 = vunpack.c.l.s8.bf16 %v3749_v37 }
 0xad9   :  { %3124 = vmatprep.subr.bf16.mxu1 %v4464_v40 }
 0xadc   :  { %v3260_v46 = vpop.eup %3259 }
 0xadd   :  { %v3262_v2 = vpop.eup %3261  ;;  %v2097_v8 = vsel %vm1081_vm4, %v3260_v46, 0.0 }
 0xade   :  { %v3264_v13 = vpop.eup %3263  ;;  %2098 = vadd.xlane.f32.xlu1 %v2097_v8  ;;  %v2545_v6 = vsel %vm1081_vm4, %v3262_v2, 0.0  ;;  %v4506_v8 = vunpack.c.l.s8.bf16 %v3767_v3 }
 0xadf   :  { %2546 = vadd.xlane.f32.xlu0 %v2545_v6  ;;  %v2321_v5 = vsel %vm1081_vm4, %v3264_v13, 0.0  ;;  %v4510_v6 = vunpack.c.l.s8.bf16 %v3799_v58 }
 0xae0   :  { %v3266_v55 = vpop.eup %3265 }
 0xae1   :  { %v2433_v17 = vsel %vm1081_vm4, %v3266_v55, 0.0 }
 0xae2   :  { %2322 = vadd.xlane.f32.xlu1 %v2321_v5  ;;  %v4513_v5 = vunpack.c.h.s8.bf16 %v3813_v63 }
 0xae6   :  { %2434 = vadd.xlane.f32.xlu1 %v2433_v17 }
 0xaf7   :  { %2328 = vrot.lane.b32.xlu1 %v2155_v47, %s3408_s3 }
 0xafb   :  { %2552 = vrot.lane.b32.xlu1 %v2379_v14, %s3408_s3 }
 0xb6b   :  { %v2099_v22 = vpop.xlane.xlu1 %2098 }
 0xb6c   :  { %3267 = vrcp.f32 %v2099_v22  ;;  %v2547_v57 = vpop.xlane.xlu0 %2546 }
 0xb6d   :  { %3269 = vrcp.f32 %v2211_v11  ;;  %v4500_v11 = vunpack.c.h.s8.bf16 %v3718_v16  ;;  %v4507_v16 = vunpack.c.l.s8.bf16 %v3781_v51 }
 0xb6f   :  { %v2323_v45 = vpop.xlane.xlu1 %2322 }
 0xb70   :  { %3271 = vrcp.f32 %v2323_v45 }
 0xb73   :  { %v2435_v39 = vpop.xlane.xlu1 %2434 }
 0xb74   :  { %3273 = vrcp.f32 %v2435_v39 }
 0xb75   :  { %3275 = vrcp.f32 %v2547_v57 }
 0xb76   :  { %v3268_v21 = vpop.eup %3267 }
 0xb77   :  { %v2101_v42 = vmul.f32 %v3268_v21, %v3260_v46  ;;  %v3270_v10 = vpop.eup %3269  ;;  %v2329_v36 = vpop.permute.xlu1 %2328  ;;  %v4504_v46 = vunpack.c.h.s8.bf16 %v3733_v29  ;;  %v4511_v29 = vunpack.c.l.s8.bf16 %v3813_v63 }
 0xb78   :  { %v2213_v15 = vmul.f32 %v3270_v10, %v3258_v20  ;;  %v2334_v1 = vsel %vm1097_vm2, %v2329_v36, 0 }
 0xb79   :  { %v2102_v48 = vpack.c.bf16 %v2101_v42, %v2101_v42 }
 0xb7a   :  { %v2214_v56 = vpack.c.bf16 %v2213_v15, %v2213_v15  ;;  %v3272_v54 = vpop.eup %3271 }
 0xb7b   :  { %3115 = vmatmul.mubr.msk.bf16.vlgmr.msra.gmra.mrb[64].mxu1 %vm1081_vm4, %v2102_v48  ;;  %v2325_v9 = vmul.f32 %v3272_v54, %v3264_v13  ;;  %v2553_v0 = vpop.permute.xlu1 %2552  ;;  %v4509_v13 = vunpack.c.h.s8.bf16 %v3781_v51 }
 0xb7c   :  { %3125 = vmatpush3.bf16.msra.mxu1 %v2219_v52  ;;  %3126 = vmatprep.mubr.msk.bf16.mxu1 %vm3407_vm0, %v4464_v40  ;;  %v2558_v35 = vsel %vm1097_vm2, %v2553_v0, 0 }
 0xb7d   :  { %3136 = vmatprep.subr.bf16.mxu1 %v4464_v40  ;;  %v2326_v20 = vpack.c.bf16 %v2325_v9, %v2325_v9 }
 0xb7e   :  { %v3274_v28 = vpop.eup %3273 }
 0xb7f   :  { %v2437_v50 = vmul.f32 %v3274_v28, %v3266_v55  ;;  %v3276_v53 = vpop.eup %3275 }
 0xb80   :  { %v2549_v33 = vmul.f32 %v3276_v53, %v3262_v2  ;;  %v4505_v2 = vunpack.c.h.s8.bf16 %v3749_v37  ;;  %v4512_v37 = vunpack.c.h.s8.bf16 %v3799_v58  ;;  %v4514_v53 = vunpack.c.l.s8.bf16 %v3910_v34 }
 0xb81   :  { %v2438_v61 = vpack.c.bf16 %v2437_v50, %v2437_v50  ;;  %v2037_v50 = vpack.c.bf16 %v4201_v43, %v4201_v43  ;;  %v4518_v43 = vunpack.c.h.s8.bf16 %v3910_v34  ;;  %v4524_v34 = vunpack.c.h.s8.bf16 %v3933_v60 }
 0xb82   :  { %v2550_v25 = vpack.c.bf16 %v2549_v33, %v2549_v33  ;;  %v4516_v33 = vunpack.c.h.s8.bf16 %v3900_v24  ;;  %v4521_v24 = vunpack.c.l.s8.bf16 %v3933_v60 }
 0xb83   :  { %3127 = vmatmul.mubr.msk.bf16.vlgmr.msra.gmra.mrb[68].mxu1 %vm1081_vm4, %v2214_v56 }
 0xb84   :  { %3137 = vmatpush3.bf16.msra.mxu1 %v2334_v1  ;;  %3138 = vmatprep.mubr.msk.bf16.mxu1 %vm3407_vm0, %v4464_v40 }
 0xb85   :  { %3148 = vmatprep.subr.bf16.mxu1 %v4464_v40 }
 0xb8b   :  { %3139 = vmatmul.mubr.msk.bf16.vlgmr.msra.gmra.mrb[72].mxu1 %vm1081_vm4, %v2326_v20 }
 0xb8c   :  { %3149 = vmatpush3.bf16.msra.mxu1 %v2443_v41  ;;  %3150 = vmatprep.mubr.msk.bf16.mxu1 %vm3407_vm0, %v4464_v40 }
 0xb8d   :  { %3160 = vmatprep.subr.bf16.mxu1 %v4464_v40 }
 0xb93   :  { %3151 = vmatmul.mubr.msk.bf16.vlgmr.msra.gmra.mrb[76].mxu1 %vm1081_vm4, %v2438_v61 }
 0xb94   :  { %3161 = vmatpush3.bf16.msra.mxu1 %v2558_v35  ;;  %3162 = vmatprep.mubr.msk.bf16.mxu1 %vm3407_vm0, %v4464_v40  ;;  %v4515_v35 = vunpack.c.l.s8.bf16 %v3912_v44 }
 0xb95   :  { %2951 = vmatprep.subr.bf16.mxu1 %v4498_v26  ;;  %v4517_v26 = vmov 0  }
 0xb9b   :  { %3163 = vmatmul.mubr.msk.bf16.vlgmr.msra.gmra.mrb[80].mxu1 %vm1081_vm4, %v2550_v25  ;;  %v4519_v25 = vunpack.c.h.s8.bf16 %v3912_v44  ;;  %v4525_v44 = vunpack.c.h.s8.bf16 %v3935_v62 }
 0xb9c   :  { %2952 = vmatpush3.bf16.msra.mxu1 %v4499_v27  ;;  %v4520_v27 = vunpack.c.l.s8.bf16 %v3921_v59 }
 0xb9d   :  { %2953 = vmatprep.subr.bf16.mxu1 %v4500_v11  ;;  %v4522_v11 = vunpack.c.l.s8.bf16 %v3935_v62 }
 0xba0   :  { %2954 = vmatpush3.bf16.msra.mxu1 %v4501_v4  ;;  %v4523_v4 = vunpack.c.h.s8.bf16 %v3921_v59  ;;  %v4531_v59 = vunpack.c.h.s8.bf16 %v3950_v49 }
 0xba1   :  { %2955 = vmatprep.subr.bf16.mxu1 %v4502_v7  ;;  %v4526_v7 = vunpack.c.l.s8.bf16 %v3950_v49 }
 0xba4   :  { %2956 = vmatpush3.bf16.msra.mxu1 %v4503_v32  ;;  %v4527_v32 = vld [vmem:[#allocation15_spill] sm:$0xff] }
 0xba5   :  { %2957 = vmatprep.subr.bf16.mxu1 %v4504_v46  ;;  %v4528_v46 = vunpack.c.l.s8.bf16 %v4527_v32  ;;  %v4532_v60 = vunpack.c.h.s8.bf16 %v4527_v32 }
 0xba8   :  { %2958 = vmatpush3.bf16.msra.mxu1 %v4505_v2  ;;  %v4529_v2 = vld [vmem:[#allocation16_spill] sm:$0xff] }
 0xba9   :  { %2959 = vmatprep.subr.bf16.mxu1 %v4506_v8  ;;  %v4530_v8 = vunpack.c.l.s8.bf16 %v4529_v2  ;;  %v4533_v62 = vunpack.c.h.s8.bf16 %v4529_v2 }
 0xbac   :  { %2960 = vmatpush3.bf16.msra.mxu1 %v4507_v16  ;;  %v4534_v16 = vld [vmem:[#allocation17_spill] sm:$0xff] }
 0xbad   :  { %2961 = vmatprep.subr.bf16.mxu1 %v4508_v18  ;;  %v4535_v18 = vunpack.c.l.s8.bf16 %v4534_v16  ;;  %v4540_v49 = vunpack.c.h.s8.bf16 %v4534_v16 }
 0xbb0   :  { %2962 = vmatpush3.bf16.msra.mxu1 %v4509_v13  ;;  %v4536_v13 = vld [vmem:[#allocation18_spill] sm:$0xff] }
 0xbb1   :  { %2963 = vmatprep.subr.bf16.mxu1 %v4510_v6  ;;  %v4537_v6 = vunpack.c.l.s8.bf16 %v4536_v13 }
 0xbb4   :  { %2964 = vmatpush3.bf16.msra.mxu1 %v4511_v29  ;;  %v4538_v29 = vld [vmem:[#allocation19_spill] sm:$0xff] }
 0xbb5   :  { %2965 = vmatprep.subr.bf16.mxu1 %v4512_v37  ;;  %v4539_v37 = vunpack.c.l.s8.bf16 %v4538_v29 }
 0xbb8   :  { %2966 = vmatpush3.bf16.msra.mxu1 %v4513_v5 }
 0xbb9   :  { %3166 = vmatprep.subr.bf16.mxu1 %v4464_v40 }
 0xc4e   :  { %v2146_v55 = vpop.f32.mrb[64].mxu1 }
 0xc4f   :  { %v3116_v3 = vpop.f32.mrb[65].mxu1  ;;  %v2152_v39 = vpack.c.bf16 %v2146_v55, %v2146_v55 }
 0xc50   :  { %v2149_v17 = vpop.f32.mrb[66].mxu1  ;;  %v4541_v3 = vunpack.c.h.s8.bf16 %v4536_v13 }
 0xc51   :  { %v3117_v47 = vpop.f32.mrb[67].mxu1  ;;  %v4542_v17 = vunpack.c.h.s8.bf16 %v4538_v29 }
 0xc56   :  { %v2255_v51 = vpop.f32.mrb[68].mxu1 }
 0xc57   :  { %v3128_v14 = vpop.f32.mrb[69].mxu1  ;;  %v2261_v20 = vpack.c.bf16 %v2255_v51, %v2255_v51 }
 0xc58   :  { %v2258_v22 = vpop.f32.mrb[70].mxu1 }
 0xc59   :  { %v3129_v45 = vpop.f32.mrb[71].mxu1 }
 0xc5e   :  { %v2370_v21 = vpop.f32.mrb[72].mxu1 }
 0xc5f   :  { %v2376_v42 = vpack.c.bf16 %v2370_v21, %v2370_v21  ;;  %v3140_v48 = vpop.f32.mrb[73].mxu1 }
 0xc60   :  { %v2373_v10 = vpop.f32.mrb[74].mxu1 }
 0xc61   :  { %2605 = vrot.lane.b32.xlu1 %v2376_v42, %s3408_s3  ;;  %v3141_v58 = vpop.f32.mrb[75].mxu1 }
 0xc65   :  { %2602 = vrot.lane.b32.xlu1 %v2152_v39, %s3408_s3 }
 0xc66   :  { %v2479_v63 = vpop.f32.mrb[76].mxu1 }
 0xc67   :  { %v3152_v52 = vpop.f32.mrb[77].mxu1  ;;  %v2485_v55 = vpack.c.bf16 %v2479_v63, %v2479_v63 }
 0xc68   :  { %v2482_v15 = vpop.f32.mrb[78].mxu1 }
 0xc69   :  { %v3153_v36 = vpop.f32.mrb[79].mxu1 }
 0xc6e   :  { %v2594_v56 = vpop.f32.mrb[80].mxu1 }
 0xc6f   :  { %v2600_v54 = vpack.c.bf16 %v2594_v56, %v2594_v56  ;;  %v3164_v1 = vpop.f32.mrb[81].mxu1 }
 0xc70   :  { %v2597_v57 = vpop.f32.mrb[82].mxu1 }
 0xc71   :  { %2608 = vrot.lane.b32.xlu1 %v2600_v54, %s3408_s3  ;;  %v3165_v9 = vpop.f32.mrb[83].mxu1 }
 0xcd3   :  { %v2606_v28 = vpop.permute.xlu1 %2605 }
 0xcd4   :  { %v2616_v41 = vsel %vm1033_vm1, %v2261_v20, %v2606_v28 }
 0xcd5   :  { %2654 = vmatprep.mubr.bf16.mxu0 %v2616_v41  ;;  %2736 = vmatprep.mubr.bf16.mxu1 %v2616_v41 }
 0xcd7   :  { %v2603_v0 = vpop.permute.xlu1 %2602 }
 0xcd8   :  { %v2612_v61 = vsel %vm1033_vm1, %v2037_v50, %v2603_v0 }
 0xcd9   :  { %2655 = vmatmul.mubr.bf16.vlgmr.msra.gmra.mrb[48].mxu0 %v2612_v61  ;;  %2737 = vmatmul.mubr.bf16.vlgmr.msra.gmra.mrb[84].mxu1 %v2612_v61 }
 0xcda   :  { %2664 = vmatpush1.bf16.msra.mxu0 %v4514_v53  ;;  %3167 = vmatpush3.bf16.msra.mxu1 %v4515_v35 }
 0xcdb   :  { %2665 = vmatprep.subr.bf16.mxu0 %v4516_v33  ;;  %3168 = vmatprep.subr.bf16.mxu1 %v4464_v40 }
 0xcdc   :  { %2695 = vmatprep.mubr.bf16.mxu0 %v4517_v26  ;;  %3182 = vmatprep.mubr.msk.bf16.mxu1 %vm3407_vm0, %v4464_v40 }
 0xcde   :  { %2666 = vmatpush1.bf16.msra.mxu0 %v4518_v43  ;;  %3169 = vmatpush3.bf16.msra.mxu1 %v4519_v25 }
 0xcdf   :  { %2667 = vmatprep.subr.bf16.mxu0 %v4520_v27  ;;  %3170 = vmatprep.subr.bf16.mxu1 %v4464_v40 }
 0xce2   :  { %2668 = vmatpush1.bf16.msra.mxu0 %v4521_v24  ;;  %3171 = vmatpush3.bf16.msra.mxu1 %v4522_v11 }
 0xce3   :  { %2669 = vmatprep.subr.bf16.mxu0 %v4523_v4  ;;  %3172 = vmatprep.subr.bf16.mxu1 %v4464_v40  ;;  %v2609_v5 = vpop.permute.xlu1 %2608 }
 0xce4   :  { %v2620_v47 = vsel %vm1033_vm1, %v2485_v55, %v2609_v5 }
 0xce6   :  { %2670 = vmatpush1.bf16.msra.mxu0 %v4524_v34  ;;  %3173 = vmatpush3.bf16.msra.mxu1 %v4525_v44 }
 0xce7   :  { %2671 = vmatprep.subr.bf16.mxu0 %v4526_v7  ;;  %3174 = vmatprep.subr.bf16.mxu1 %v4464_v40 }
 0xcea   :  { %2672 = vmatpush1.bf16.msra.mxu0 %v4528_v46  ;;  %3175 = vmatpush3.bf16.msra.mxu1 %v4530_v8 }
 0xceb   :  { %2673 = vmatprep.subr.bf16.mxu0 %v4531_v59  ;;  %3176 = vmatprep.subr.bf16.mxu1 %v4464_v40 }
 0xcee   :  { %2674 = vmatpush1.bf16.msra.mxu0 %v4532_v60  ;;  %3177 = vmatpush3.bf16.msra.mxu1 %v4533_v62 }
 0xcef   :  { %2675 = vmatprep.subr.bf16.mxu0 %v4535_v18  ;;  %3178 = vmatprep.subr.bf16.mxu1 %v4464_v40 }
 0xcf2   :  { %2676 = vmatpush1.bf16.msra.mxu0 %v4537_v6  ;;  %3179 = vmatpush3.bf16.msra.mxu1 %v4539_v37 }
 0xcf3   :  { %2677 = vmatprep.subr.bf16.mxu0 %v4540_v49  ;;  %3180 = vmatprep.subr.bf16.mxu1 %v4464_v40 }
 0xcf6   :  { %2678 = vmatpush1.bf16.msra.mxu0 %v4541_v3  ;;  %3181 = vmatpush3.bf16.msra.mxu1 %v4542_v17 }
 0xcf9   :  { %2696 = vmatmul.mubr.bf16.vlgmr.msra.gmra.mrb[48].mxu0 %v2620_v47  ;;  %3183 = vmatmul.mubr.bf16.vlgmr.msra.gmra.mrb[88].mxu1 %v2620_v47 }
 0xdac   :  { %v2967_v51 = vpop.f32.mrb[84].mxu1 }
 0xdad   :  { %v2968_v14 = vpop.f32.mrb[85].mxu1 }
 0xdae   :  { %v2969_v22 = vadd.f32 %v2968_v14, %v2967_v51  ;;  %v2970_v45 = vpop.f32.mrb[86].mxu1 }
 0xdaf   :  { %v2971_v21 = vpop.f32.mrb[87].mxu1 }
 0xdcc   :  { %v2697_v42 = vpop.f32.mrb[48].mxu0  ;;  %v2778_v48 = vpop.f32.mrb[88].mxu1 }
 0xdcd   :  { %v2784_v40 = vmul.f32 %v2697_v42, %v4065_v31  ;;  %v2779_v10 = vadd.f32 %v2969_v22, %v2778_v48  ;;  %v2699_v58 = vpop.f32.mrb[49].mxu0  ;;  %v3184_v39 = vpop.f32.mrb[89].mxu1 }
 0xdce   :  { %v2785_v63 = vmul.f32 %v2699_v58, %v4068_v30  ;;  %v2701_v52 = vpop.f32.mrb[50].mxu0  ;;  %v2781_v15 = vpop.f32.mrb[90].mxu1 }
 0xdcf   :  { %v2787_v36 = vadd.f32 %v2784_v40, %v4071_v19  ;;  %v2786_v56 = vmul.f32 %v2779_v10, %v4074_v38  ;;  %v2702_v54 = vpop.f32.mrb[51].mxu0  ;;  %v3185_v1 = vpop.f32.mrb[91].mxu1 }
 0xdd0   :  { %v2788_v57 = vadd.f32 %v2785_v63, %v4077_v23 }
 0xdd1   :  { %2791 = vst [vmem:[#allocation10 + $0x18] sm:$0xff] %v2787_v36  ;;  %v2789_v31 = vadd.f32 %v2786_v56, %v4081_v12 }
 0xdd2   :  { %2792 = vst [vmem:[#allocation10 + $0x20] sm:$0xff] %v2788_v57 }
 0xdd3   :  { %2793 = vst [vmem:[#allocation10 + $0x28] sm:$0xff] %v2789_v31 }
 0xdd4   :  { %3376 = shalt.err (!%p3373_p8)
}
 0xdd5   :  { %s3377_s7 = scalar_lea.hbm %s4371_s6, 768 }
 0xdd6   :  { %p3378_p9 = scmp.ne.s32.totalorder %s4371_s6, %s3377_s7  ;;  %p3381_p10 = scmp.lt.u32.totalorder %s3377_s7, %s4371_s6 }
 0xdd8   :  { %p3383_p11 = pnand %p3381_p10, %p3378_p9 }
 0xdda   :  { %3386 = shalt.err (!%p3383_p11)
}
 0xddb   :  { %2805 = dma.vmem_to_hbm [thread:$0]  %s2800_s5, 768, %s4371_s6, [#allocation4], %s3403_s2, %s3403_s2, %s3404_s21  }
 0xddc   :  { %3393 = dma.done.wait [#allocation4], 768  }
 0xddd   :  { %3394 = vsyncadd [#allocation4], 4294966528 }
 0xdde   :  { %2809 = vsyncpa [#allocation3], 1 }
 0xddf   :  { %2810 = vsyncpa [#allocation6], 1 }
 0xde0   :  { %2811 = vsyncpa [#allocation9], 1 }
 0xde1   :  { %2812 = vsyncpa [#allocation4], 1 }

</bundles_post_ra>
